<compile_context>
chip_gen: v7x
topology: tpu7x:2x2x1
jax: 0.10.0
libtpu: 0.0.40
codegen_flags: <defaults>
</compile_context>

<pallas_src>
import functools
import jax
import jax.numpy as jnp
from jax.experimental import pallas as pl
from jax.experimental.pallas import tpu as pltpu


# ---------------------------------------------------------------------------
# In-kernel helpers (traced inside the Pallas kernel body)
# ---------------------------------------------------------------------------
def _layernorm(x, gamma, beta, eps):
    mu = jnp.mean(x, axis=-1, keepdims=True)
    xc = x - mu
    var = jnp.mean(xc * xc, axis=-1, keepdims=True)
    return xc * jax.lax.rsqrt(var + eps) * gamma + beta


def _mha(x_rows, kv_rows, qw, qb, kw, kb, vw, vb, ow, ob,
         B, Sq, Sk, nh, hd, scale, mask):
    """Multi-head attention over a flattened query block.

    x_rows : (B*Sq, E) f32   query source
    kv_rows: (B*Sk, E) f32   key/value source
    qw/kw/vw: (nh, E, hd) bf16  per-head projection weights (leading-dim indexed,
              so no lane sub-slicing of activations in-kernel)
    qb/kb/vb: (nh, 1, hd) f32
    ow      : (nh, hd, E) bf16  per-head output-projection slabs (head merge is a
              sum of matmuls instead of a lane concatenate)
    ob      : (1, E) f32
    """
    xq = x_rows.astype(jnp.bfloat16)
    xkv = kv_rows.astype(jnp.bfloat16)

    q_heads, k_heads, v_heads = [], [], []
    for h in range(nh):
        qh = jnp.dot(xq, qw[h], preferred_element_type=jnp.float32) + qb[h]    # (B*Sq, hd)
        kh = jnp.dot(xkv, kw[h], preferred_element_type=jnp.float32) + kb[h]   # (B*Sk, hd)
        vh = jnp.dot(xkv, vw[h], preferred_element_type=jnp.float32) + vb[h]   # (B*Sk, hd)
        q_heads.append(qh.reshape(B, Sq, hd))
        k_heads.append(kh.reshape(B, Sk, hd))
        v_heads.append(vh.reshape(B, Sk, hd))

    # Head-major stacking on the leading axis -> one batched dot, one softmax,
    # one PV contraction for all (head, batch) pairs.
    q = jnp.concatenate(q_heads, axis=0)   # (nh*B, Sq, hd)
    k = jnp.concatenate(k_heads, axis=0)   # (nh*B, Sk, hd)
    v = jnp.concatenate(v_heads, axis=0)   # (nh*B, Sk, hd)

    s = jnp.einsum('bqd,bkd->bqk', q.astype(jnp.bfloat16), k.astype(jnp.bfloat16),
                   preferred_element_type=jnp.float32) * scale                  # (nh*B, Sq, Sk) f32
    if mask is not None:
        s = s + mask                        # (Sq, Sk) broadcasts over heads*batch, added once
    s = s - jnp.max(s, axis=-1, keepdims=True)
    p = jnp.exp(s)
    p = p * pl.reciprocal(jnp.sum(p, axis=-1, keepdims=True), approx=True)
    ctx = jnp.einsum('bqk,bkd->bqd', p.astype(jnp.bfloat16), v.astype(jnp.bfloat16),
                     preferred_element_type=jnp.float32)                        # (nh*B, Sq, hd)

    out = None
    for h in range(nh):
        ch = ctx[h * B:(h + 1) * B].reshape(B * Sq, hd).astype(jnp.bfloat16)
        contrib = jnp.dot(ch, ow[h], preferred_element_type=jnp.float32)
        out = contrib if out is None else out + contrib
    return out + ob                         # (B*Sq, E) f32


# ---------------------------------------------------------------------------
# Fused TransformerBlock kernel (whole batch block per grid step)
# ---------------------------------------------------------------------------
def transformer_block_kernel(
    tgt_ref, mem_ref,
    sa_qw_ref, sa_qb_ref, sa_kw_ref, sa_kb_ref, sa_vw_ref, sa_vb_ref,
    sa_ow_ref, sa_ob_ref, g1_ref, b1_ref,
    ca_qw_ref, ca_qb_ref, ca_kw_ref, ca_kb_ref, ca_vw_ref, ca_vb_ref,
    ca_ow_ref, ca_ob_ref, g2_ref, b2_ref,
    fc1_w_ref, fc1_b_ref, fc2_w_ref, fc2_b_ref, g3_ref, b3_ref,
    out_ref,
    *, B, S, Sk, nh, hd, eps,
):
    E = nh * hd
    scale = hd ** (-0.5)

    x = tgt_ref[...].reshape(B * S, E)        # (B*S, E)  f32 rows
    mem = mem_ref[...].reshape(B * Sk, E)     # (B*Sk, E) f32 rows

    # Causal additive mask built in-kernel (NRTR decoder self-attention mask).
    row = jax.lax.broadcasted_iota(jnp.int32, (S, S), 0)
    col = jax.lax.broadcasted_iota(jnp.int32, (S, S), 1)
    causal_mask = jnp.where(row >= col, 0.0, -1e9).astype(jnp.float32)

    # ---------------- self attention + norm1 ----------------
    sa = _mha(x, x,
              sa_qw_ref[...], sa_qb_ref[...], sa_kw_ref[...], sa_kb_ref[...],
              sa_vw_ref[...], sa_vb_ref[...], sa_ow_ref[...], sa_ob_ref[...],
              B, S, S, nh, hd, scale, causal_mask)
    x = _layernorm(x + sa, g1_ref[...], b1_ref[...], eps)

    # ---------------- cross attention + norm2 ----------------
    ca = _mha(x, mem,
              ca_qw_ref[...], ca_qb_ref[...], ca_kw_ref[...], ca_kb_ref[...],
              ca_vw_ref[...], ca_vb_ref[...], ca_ow_ref[...], ca_ob_ref[...],
              B, S, Sk, nh, hd, scale, None)
    x = _layernorm(x + ca, g2_ref[...], b2_ref[...], eps)

    # ---------------- MLP (fc2(ReLU(fc1))) + norm3 ----------------
    h1 = jnp.dot(x.astype(jnp.bfloat16), fc1_w_ref[...],
                 preferred_element_type=jnp.float32) + fc1_b_ref[...]
    h1 = jnp.maximum(h1, 0.0)                 # ReLU (act_layer=nn.ReLU in NRTR head)
    m = jnp.dot(h1.astype(jnp.bfloat16), fc2_w_ref[...],
                preferred_element_type=jnp.float32) + fc2_b_ref[...]
    x = _layernorm(x + m, g3_ref[...], b3_ref[...], eps)

    out_ref[...] = x.reshape(B, S, E)


def transformer_block(tgt, memory, params, *, num_heads, eps=1e-5, batch_blocks=1):
    """Fused NRTR decoder TransformerBlock forward (eval mode, causal self-attn mask).

    batch_blocks: number of grid steps the batch is split into (1 = whole batch in a
    single invocation; use 2 on v7x so both TensorCores get work).
    """
    N, S, E = tgt.shape
    Sk = memory.shape[1]
    hd = E // num_heads
    assert E == num_heads * hd
    assert N % batch_blocks == 0
    Bblk = N // batch_blocks

    bf16, f32 = jnp.bfloat16, jnp.float32

    # Wrapper-side (XLA) weight re-layouts: head split lives in the weights so the
    # kernel never lane-slices activations.
    def heads_in_out(w):   # (E, nh*hd) -> (nh, E, hd)
        return jnp.transpose(w.reshape(E, num_heads, hd), (1, 0, 2))

    def heads_bias(b):     # (1, nh*hd) -> (nh, 1, hd)
        return b.reshape(num_heads, hd)[:, None, :]

    def heads_rows(w):     # (nh*hd, E) -> (nh, hd, E)
        return w.reshape(num_heads, hd, E)

    qkv_w, qkv_b = params["qkv_w"], params["qkv_b"]
    kv_w, kv_b = params["kv_w"], params["kv_b"]

    args = [
        tgt.astype(f32), memory.astype(f32),
        # self-attn q / k / v per-head projections (from fused qkv_proj)
        heads_in_out(qkv_w[:, 0 * E:1 * E]).astype(bf16), heads_bias(qkv_b[:, 0 * E:1 * E]).astype(f32),
        heads_in_out(qkv_w[:, 1 * E:2 * E]).astype(bf16), heads_bias(qkv_b[:, 1 * E:2 * E]).astype(f32),
        heads_in_out(qkv_w[:, 2 * E:3 * E]).astype(bf16), heads_bias(qkv_b[:, 2 * E:3 * E]).astype(f32),
        heads_rows(params["sa_ow"]).astype(bf16), params["sa_ob"].astype(f32),
        params["g1"].astype(f32), params["b1"].astype(f32),
        # cross-attn q / k / v per-head projections (k,v from fused kv_proj)
        heads_in_out(params["q_w"]).astype(bf16), heads_bias(params["q_b"]).astype(f32),
        heads_in_out(kv_w[:, 0 * E:1 * E]).astype(bf16), heads_bias(kv_b[:, 0 * E:1 * E]).astype(f32),
        heads_in_out(kv_w[:, 1 * E:2 * E]).astype(bf16), heads_bias(kv_b[:, 1 * E:2 * E]).astype(f32),
        heads_rows(params["ca_ow"]).astype(bf16), params["ca_ob"].astype(f32),
        params["g2"].astype(f32), params["b2"].astype(f32),
        # MLP
        params["fc1_w"].astype(bf16), params["fc1_b"].astype(f32),
        params["fc2_w"].astype(bf16), params["fc2_b"].astype(f32),
        params["g3"].astype(f32), params["b3"].astype(f32),
    ]

    def const_spec(a):
        zeros = (0,) * a.ndim
        return pl.BlockSpec(a.shape, lambda b, zeros=zeros: zeros)

    in_specs = [
        pl.BlockSpec((Bblk, S, E), lambda b: (b, 0, 0)),   # tgt batch block
        pl.BlockSpec((Bblk, Sk, E), lambda b: (b, 0, 0)),  # memory batch block
    ] + [const_spec(a) for a in args[2:]]

    kernel = functools.partial(
        transformer_block_kernel, B=Bblk, S=S, Sk=Sk, nh=num_heads, hd=hd, eps=eps
    )

    return pl.pallas_call(
        kernel,
        out_shape=jax.ShapeDtypeStruct((N, S, E), jnp.float32),
        grid=(batch_blocks,),
        in_specs=in_specs,
        out_specs=pl.BlockSpec((Bblk, S, E), lambda b: (b, 0, 0)),
        compiler_params=pltpu.CompilerParams(
            dimension_semantics=("parallel",),   # independent batch blocks (v7x dual-TC)
        ),
    )(*args)


# ---------------------------------------------------------------------------
# Pure-JAX f32 reference (mirrors the PyTorch forward exactly, eval mode)
# ---------------------------------------------------------------------------
def reference_block(tgt, memory, mask, p, *, num_heads, eps=1e-5):
    N, S, E = tgt.shape
    hd = E // num_heads
    scale = hd ** (-0.5)

    def ln(x, g, b):
        mu = x.mean(-1, keepdims=True)
        var = ((x - mu) ** 2).mean(-1, keepdims=True)
        return (x - mu) / jnp.sqrt(var + eps) * g + b

    def mha(q, k, v, m):
        def heads(t):
            return t.reshape(t.shape[0], t.shape[1], num_heads, hd).transpose(0, 2, 1, 3)
        qh, kh, vh = heads(q), heads(k), heads(v)
        s = jnp.einsum("nhqd,nhkd->nhqk", qh, kh) * scale
        if m is not None:
            s = s + m
        pr = jax.nn.softmax(s, axis=-1)
        c = jnp.einsum("nhqk,nhkd->nhqd", pr, vh)
        return c.transpose(0, 2, 1, 3).reshape(q.shape[0], q.shape[1], E)

    qkv = tgt @ p["qkv_w"] + p["qkv_b"][0]
    q, k, v = qkv[..., :E], qkv[..., E:2 * E], qkv[..., 2 * E:]
    sa = mha(q, k, v, mask) @ p["sa_ow"] + p["sa_ob"][0]
    x = ln(tgt + sa, p["g1"][0], p["b1"][0])

    q2 = x @ p["q_w"] + p["q_b"][0]
    kv = memory @ p["kv_w"] + p["kv_b"][0]
    k2, v2 = kv[..., :E], kv[..., E:]
    ca = mha(q2, k2, v2, None) @ p["ca_ow"] + p["ca_ob"][0]
    x = ln(x + ca, p["g2"][0], p["b2"][0])

    h = jnp.maximum(x @ p["fc1_w"] + p["fc1_b"][0], 0.0)
    m = h @ p["fc2_w"] + p["fc2_b"][0]
    return ln(x + m, p["g3"][0], p["b3"][0])


# ---------------------------------------------------------------------------
# Main
# ---------------------------------------------------------------------------
if __name__ == "__main__":
    # Small shapes consistent with the module's forward.
    N, S, Sk = 2, 8, 16          # batch, tgt seq, memory seq
    d_model, nhead, dim_ff = 32, 4, 64

    key = jax.random.PRNGKey(0)
    ks = jax.random.split(key, 20)

    def w(k, shape, scale=0.02):
        return jax.random.normal(k, shape, dtype=jnp.float32) * scale

    params = {
        # self-attn qkv_proj / out_proj (already in (in, out) layout == W.T of nn.Linear)
        "qkv_w": w(ks[0], (d_model, 3 * d_model)),
        "qkv_b": w(ks[1], (1, 3 * d_model)),
        "sa_ow": w(ks[2], (d_model, d_model)),
        "sa_ob": w(ks[3], (1, d_model)),
        "g1": jnp.ones((1, d_model), jnp.float32),
        "b1": jnp.zeros((1, d_model), jnp.float32),
        # cross-attn q_proj / kv_proj / out_proj
        "q_w": w(ks[4], (d_model, d_model)),
        "q_b": w(ks[5], (1, d_model)),
        "kv_w": w(ks[6], (d_model, 2 * d_model)),
        "kv_b": w(ks[7], (1, 2 * d_model)),
        "ca_ow": w(ks[8], (d_model, d_model)),
        "ca_ob": w(ks[9], (1, d_model)),
        "g2": jnp.ones((1, d_model), jnp.float32),
        "b2": jnp.zeros((1, d_model), jnp.float32),
        # mlp
        "fc1_w": w(ks[10], (d_model, dim_ff)),
        "fc1_b": w(ks[11], (1, dim_ff)),
        "fc2_w": w(ks[12], (dim_ff, d_model)),
        "fc2_b": w(ks[13], (1, d_model)),
        "g3": jnp.ones((1, d_model), jnp.float32),
        "b3": jnp.zeros((1, d_model), jnp.float32),
    }

    tgt = jax.random.normal(ks[14], (N, S, d_model), dtype=jnp.float32)
    memory = jax.random.normal(ks[15], (N, Sk, d_model), dtype=jnp.float32)

    # Kernel builds the same causal additive mask internally (NRTR decoder mask).
    causal = jnp.tril(jnp.ones((S, S), dtype=jnp.bool_))
    self_attn_mask = jnp.where(causal, 0.0, -1e9).astype(jnp.float32)

    out = transformer_block(tgt, memory, params, num_heads=nhead, eps=1e-5, batch_blocks=1)
    out = jax.block_until_ready(out)

    ref = reference_block(tgt, memory, self_attn_mask, params, num_heads=nhead, eps=1e-5)
    assert out.shape == (N, S, d_model)
    max_diff = float(jnp.max(jnp.abs(out - ref)))
    # bf16 MXU inputs + approx reciprocal vs. a pure-f32 reference => loosened tolerance.
    assert jnp.allclose(out, ref, atol=2e-2, rtol=2e-2), f"max abs diff {max_diff}"

    # NOTE: Dropout layers (attn_drop, dropout1/2/3, Mlp.drop) are identity in eval mode.
    print("KERNEL_OK")
</pallas_src>

<mosaic_0001>
module attributes {stable_mosaic.version = 11 : i64} {
  func.func @transformer_block_kernel(%arg0: i32, %arg1: memref<2x8x32xf32, #tpu.memory_space<vmem>>, %arg2: memref<2x16x32xf32, #tpu.memory_space<vmem>>, %arg3: memref<4x32x8xbf16, #tpu.memory_space<vmem>>, %arg4: memref<4x1x8xf32, #tpu.memory_space<vmem>>, %arg5: memref<4x32x8xbf16, #tpu.memory_space<vmem>>, %arg6: memref<4x1x8xf32, #tpu.memory_space<vmem>>, %arg7: memref<4x32x8xbf16, #tpu.memory_space<vmem>>, %arg8: memref<4x1x8xf32, #tpu.memory_space<vmem>>, %arg9: memref<4x8x32xbf16, #tpu.memory_space<vmem>>, %arg10: memref<1x32xf32, #tpu.memory_space<vmem>>, %arg11: memref<1x32xf32, #tpu.memory_space<vmem>>, %arg12: memref<1x32xf32, #tpu.memory_space<vmem>>, %arg13: memref<4x32x8xbf16, #tpu.memory_space<vmem>>, %arg14: memref<4x1x8xf32, #tpu.memory_space<vmem>>, %arg15: memref<4x32x8xbf16, #tpu.memory_space<vmem>>, %arg16: memref<4x1x8xf32, #tpu.memory_space<vmem>>, %arg17: memref<4x32x8xbf16, #tpu.memory_space<vmem>>, %arg18: memref<4x1x8xf32, #tpu.memory_space<vmem>>, %arg19: memref<4x8x32xbf16, #tpu.memory_space<vmem>>, %arg20: memref<1x32xf32, #tpu.memory_space<vmem>>, %arg21: memref<1x32xf32, #tpu.memory_space<vmem>>, %arg22: memref<1x32xf32, #tpu.memory_space<vmem>>, %arg23: memref<32x64xbf16, #tpu.memory_space<vmem>>, %arg24: memref<1x64xf32, #tpu.memory_space<vmem>>, %arg25: memref<64x32xbf16, #tpu.memory_space<vmem>>, %arg26: memref<1x32xf32, #tpu.memory_space<vmem>>, %arg27: memref<1x32xf32, #tpu.memory_space<vmem>>, %arg28: memref<1x32xf32, #tpu.memory_space<vmem>>, %arg29: memref<2x8x32xf32, #tpu.memory_space<vmem>>) attributes {dimension_semantics = [#tpu.dimension_semantics<parallel>], iteration_bounds = array<i64: 1>, scalar_prefetch = 0 : i64, scratch_operands = 0 : i64, tpu.core_type = #tpu.core_type<tc>, window_params = [{transform_indices = @transform_0, window_bounds = array<i64: 2, 8, 32>}, {transform_indices = @transform_1, window_bounds = array<i64: 2, 16, 32>}, {pipeline_mode = #tpu.pipeline_mode<synchronous>, transform_indices = @transform_2, window_bounds = array<i64: 4, 32, 8>}, {pipeline_mode = #tpu.pipeline_mode<synchronous>, transform_indices = @transform_3, window_bounds = array<i64: 4, 1, 8>}, {pipeline_mode = #tpu.pipeline_mode<synchronous>, transform_indices = @transform_4, window_bounds = array<i64: 4, 32, 8>}, {pipeline_mode = #tpu.pipeline_mode<synchronous>, transform_indices = @transform_5, window_bounds = array<i64: 4, 1, 8>}, {pipeline_mode = #tpu.pipeline_mode<synchronous>, transform_indices = @transform_6, window_bounds = array<i64: 4, 32, 8>}, {pipeline_mode = #tpu.pipeline_mode<synchronous>, transform_indices = @transform_7, window_bounds = array<i64: 4, 1, 8>}, {pipeline_mode = #tpu.pipeline_mode<synchronous>, transform_indices = @transform_8, window_bounds = array<i64: 4, 8, 32>}, {pipeline_mode = #tpu.pipeline_mode<synchronous>, transform_indices = @transform_9, window_bounds = array<i64: 1, 32>}, {pipeline_mode = #tpu.pipeline_mode<synchronous>, transform_indices = @transform_10, window_bounds = array<i64: 1, 32>}, {pipeline_mode = #tpu.pipeline_mode<synchronous>, transform_indices = @transform_11, window_bounds = array<i64: 1, 32>}, {pipeline_mode = #tpu.pipeline_mode<synchronous>, transform_indices = @transform_12, window_bounds = array<i64: 4, 32, 8>}, {pipeline_mode = #tpu.pipeline_mode<synchronous>, transform_indices = @transform_13, window_bounds = array<i64: 4, 1, 8>}, {pipeline_mode = #tpu.pipeline_mode<synchronous>, transform_indices = @transform_14, window_bounds = array<i64: 4, 32, 8>}, {pipeline_mode = #tpu.pipeline_mode<synchronous>, transform_indices = @transform_15, window_bounds = array<i64: 4, 1, 8>}, {pipeline_mode = #tpu.pipeline_mode<synchronous>, transform_indices = @transform_16, window_bounds = array<i64: 4, 32, 8>}, {pipeline_mode = #tpu.pipeline_mode<synchronous>, transform_indices = @transform_17, window_bounds = array<i64: 4, 1, 8>}, {pipeline_mode = #tpu.pipeline_mode<synchronous>, transform_indices = @transform_18, window_bounds = array<i64: 4, 8, 32>}, {pipeline_mode = #tpu.pipeline_mode<synchronous>, transform_indices = @transform_19, window_bounds = array<i64: 1, 32>}, {pipeline_mode = #tpu.pipeline_mode<synchronous>, transform_indices = @transform_20, window_bounds = array<i64: 1, 32>}, {pipeline_mode = #tpu.pipeline_mode<synchronous>, transform_indices = @transform_21, window_bounds = array<i64: 1, 32>}, {pipeline_mode = #tpu.pipeline_mode<synchronous>, transform_indices = @transform_22, window_bounds = array<i64: 32, 64>}, {pipeline_mode = #tpu.pipeline_mode<synchronous>, transform_indices = @transform_23, window_bounds = array<i64: 1, 64>}, {pipeline_mode = #tpu.pipeline_mode<synchronous>, transform_indices = @transform_24, window_bounds = array<i64: 64, 32>}, {pipeline_mode = #tpu.pipeline_mode<synchronous>, transform_indices = @transform_25, window_bounds = array<i64: 1, 32>}, {pipeline_mode = #tpu.pipeline_mode<synchronous>, transform_indices = @transform_26, window_bounds = array<i64: 1, 32>}, {pipeline_mode = #tpu.pipeline_mode<synchronous>, transform_indices = @transform_27, window_bounds = array<i64: 1, 32>}, {transform_indices = @transform_28, window_bounds = array<i64: 2, 8, 32>}]} {
    %c0 = arith.constant 0 : index
    %c0_0 = arith.constant 0 : index
    %c0_1 = arith.constant 0 : index
    %0 = vector.load %arg1[%c0, %c0_0, %c0_1] : memref<2x8x32xf32, #tpu.memory_space<vmem>>, vector<2x8x32xf32>
    %1 = vector.shape_cast %0 : vector<2x8x32xf32> to vector<16x32xf32>
    %c0_2 = arith.constant 0 : index
    %c0_3 = arith.constant 0 : index
    %c0_4 = arith.constant 0 : index
    %2 = vector.load %arg2[%c0_2, %c0_3, %c0_4] : memref<2x16x32xf32, #tpu.memory_space<vmem>>, vector<2x16x32xf32>
    %3 = vector.shape_cast %2 : vector<2x16x32xf32> to vector<32x32xf32>
    %4 = tpu.iota {dimensions = array<i32: 0>} : vector<8x8xi32>
    %5 = tpu.iota {dimensions = array<i32: 1>} : vector<8x8xi32>
    %6 = arith.cmpi sge, %4, %5 : vector<8x8xi32>
    %cst = arith.constant 0.000000e+00 : f32
    %cst_5 = arith.constant -1.000000e+09 : f32
    %7 = vector.broadcast %cst : f32 to vector<8x8xf32>
    %8 = vector.broadcast %cst_5 : f32 to vector<8x8xf32>
    %9 = arith.select %6, %7, %8 : vector<8x8xi1>, vector<8x8xf32>
    %c0_6 = arith.constant 0 : index
    %c0_7 = arith.constant 0 : index
    %c0_8 = arith.constant 0 : index
    %10 = vector.load %arg3[%c0_6, %c0_7, %c0_8] : memref<4x32x8xbf16, #tpu.memory_space<vmem>>, vector<4x32x8xbf16>
    %c0_9 = arith.constant 0 : index
    %c0_10 = arith.constant 0 : index
    %c0_11 = arith.constant 0 : index
    %11 = vector.load %arg4[%c0_9, %c0_10, %c0_11] : memref<4x1x8xf32, #tpu.memory_space<vmem>>, vector<4x1x8xf32>
    %c0_12 = arith.constant 0 : index
    %c0_13 = arith.constant 0 : index
    %c0_14 = arith.constant 0 : index
    %12 = vector.load %arg5[%c0_12, %c0_13, %c0_14] : memref<4x32x8xbf16, #tpu.memory_space<vmem>>, vector<4x32x8xbf16>
    %c0_15 = arith.constant 0 : index
    %c0_16 = arith.constant 0 : index
    %c0_17 = arith.constant 0 : index
    %13 = vector.load %arg6[%c0_15, %c0_16, %c0_17] : memref<4x1x8xf32, #tpu.memory_space<vmem>>, vector<4x1x8xf32>
    %c0_18 = arith.constant 0 : index
    %c0_19 = arith.constant 0 : index
    %c0_20 = arith.constant 0 : index
    %14 = vector.load %arg7[%c0_18, %c0_19, %c0_20] : memref<4x32x8xbf16, #tpu.memory_space<vmem>>, vector<4x32x8xbf16>
    %c0_21 = arith.constant 0 : index
    %c0_22 = arith.constant 0 : index
    %c0_23 = arith.constant 0 : index
    %15 = vector.load %arg8[%c0_21, %c0_22, %c0_23] : memref<4x1x8xf32, #tpu.memory_space<vmem>>, vector<4x1x8xf32>
    %c0_24 = arith.constant 0 : index
    %c0_25 = arith.constant 0 : index
    %c0_26 = arith.constant 0 : index
    %16 = vector.load %arg9[%c0_24, %c0_25, %c0_26] : memref<4x8x32xbf16, #tpu.memory_space<vmem>>, vector<4x8x32xbf16>
    %c0_27 = arith.constant 0 : index
    %c0_28 = arith.constant 0 : index
    %17 = vector.load %arg10[%c0_27, %c0_28] : memref<1x32xf32, #tpu.memory_space<vmem>>, vector<1x32xf32>
    %18 = arith.truncf %1 : vector<16x32xf32> to vector<16x32xbf16>
    %19 = arith.truncf %1 : vector<16x32xf32> to vector<16x32xbf16>
    %20 = vector.extract_strided_slice %10 {offsets = [0, 0, 0], sizes = [1, 32, 8], strides = [1, 1, 1]} : vector<4x32x8xbf16> to vector<1x32x8xbf16>
    %21 = vector.shape_cast %20 : vector<1x32x8xbf16> to vector<32x8xbf16>
    %cst_29 = arith.constant dense<0.000000e+00> : vector<16x8xf32>
    %22 = tpu.matmul %18, %21, %cst_29 {dimension_numbers = #tpu.dot_dimension_numbers<[1], [0], [0], [1], [0, 0, 1, 1], [], []>} : vector<16x32xbf16>, vector<32x8xbf16>, vector<16x8xf32> -> vector<16x8xf32>
    %23 = vector.extract_strided_slice %11 {offsets = [0, 0, 0], sizes = [1, 1, 8], strides = [1, 1, 1]} : vector<4x1x8xf32> to vector<1x1x8xf32>
    %24 = vector.shape_cast %23 : vector<1x1x8xf32> to vector<1x8xf32>
    %25 = vector.broadcast %24 : vector<1x8xf32> to vector<16x8xf32>
    %26 = arith.addf %22, %25 : vector<16x8xf32>
    %27 = vector.extract_strided_slice %12 {offsets = [0, 0, 0], sizes = [1, 32, 8], strides = [1, 1, 1]} : vector<4x32x8xbf16> to vector<1x32x8xbf16>
    %28 = vector.shape_cast %27 : vector<1x32x8xbf16> to vector<32x8xbf16>
    %cst_30 = arith.constant dense<0.000000e+00> : vector<16x8xf32>
    %29 = tpu.matmul %19, %28, %cst_30 {dimension_numbers = #tpu.dot_dimension_numbers<[1], [0], [0], [1], [0, 0, 1, 1], [], []>} : vector<16x32xbf16>, vector<32x8xbf16>, vector<16x8xf32> -> vector<16x8xf32>
    %30 = vector.extract_strided_slice %13 {offsets = [0, 0, 0], sizes = [1, 1, 8], strides = [1, 1, 1]} : vector<4x1x8xf32> to vector<1x1x8xf32>
    %31 = vector.shape_cast %30 : vector<1x1x8xf32> to vector<1x8xf32>
    %32 = vector.broadcast %31 : vector<1x8xf32> to vector<16x8xf32>
    %33 = arith.addf %29, %32 : vector<16x8xf32>
    %34 = vector.extract_strided_slice %14 {offsets = [0, 0, 0], sizes = [1, 32, 8], strides = [1, 1, 1]} : vector<4x32x8xbf16> to vector<1x32x8xbf16>
    %35 = vector.shape_cast %34 : vector<1x32x8xbf16> to vector<32x8xbf16>
    %cst_31 = arith.constant dense<0.000000e+00> : vector<16x8xf32>
    %36 = tpu.matmul %19, %35, %cst_31 {dimension_numbers = #tpu.dot_dimension_numbers<[1], [0], [0], [1], [0, 0, 1, 1], [], []>} : vector<16x32xbf16>, vector<32x8xbf16>, vector<16x8xf32> -> vector<16x8xf32>
    %37 = vector.extract_strided_slice %15 {offsets = [0, 0, 0], sizes = [1, 1, 8], strides = [1, 1, 1]} : vector<4x1x8xf32> to vector<1x1x8xf32>
    %38 = vector.shape_cast %37 : vector<1x1x8xf32> to vector<1x8xf32>
    %39 = vector.broadcast %38 : vector<1x8xf32> to vector<16x8xf32>
    %40 = arith.addf %36, %39 : vector<16x8xf32>
    %41 = vector.shape_cast %26 : vector<16x8xf32> to vector<2x8x8xf32>
    %42 = vector.shape_cast %33 : vector<16x8xf32> to vector<2x8x8xf32>
    %43 = vector.shape_cast %40 : vector<16x8xf32> to vector<2x8x8xf32>
    %44 = vector.extract_strided_slice %10 {offsets = [1, 0, 0], sizes = [1, 32, 8], strides = [1, 1, 1]} : vector<4x32x8xbf16> to vector<1x32x8xbf16>
    %45 = vector.shape_cast %44 : vector<1x32x8xbf16> to vector<32x8xbf16>
    %cst_32 = arith.constant dense<0.000000e+00> : vector<16x8xf32>
    %46 = tpu.matmul %18, %45, %cst_32 {dimension_numbers = #tpu.dot_dimension_numbers<[1], [0], [0], [1], [0, 0, 1, 1], [], []>} : vector<16x32xbf16>, vector<32x8xbf16>, vector<16x8xf32> -> vector<16x8xf32>
    %47 = vector.extract_strided_slice %11 {offsets = [1, 0, 0], sizes = [1, 1, 8], strides = [1, 1, 1]} : vector<4x1x8xf32> to vector<1x1x8xf32>
    %48 = vector.shape_cast %47 : vector<1x1x8xf32> to vector<1x8xf32>
    %49 = vector.broadcast %48 : vector<1x8xf32> to vector<16x8xf32>
    %50 = arith.addf %46, %49 : vector<16x8xf32>
    %51 = vector.extract_strided_slice %12 {offsets = [1, 0, 0], sizes = [1, 32, 8], strides = [1, 1, 1]} : vector<4x32x8xbf16> to vector<1x32x8xbf16>
    %52 = vector.shape_cast %51 : vector<1x32x8xbf16> to vector<32x8xbf16>
    %cst_33 = arith.constant dense<0.000000e+00> : vector<16x8xf32>
    %53 = tpu.matmul %19, %52, %cst_33 {dimension_numbers = #tpu.dot_dimension_numbers<[1], [0], [0], [1], [0, 0, 1, 1], [], []>} : vector<16x32xbf16>, vector<32x8xbf16>, vector<16x8xf32> -> vector<16x8xf32>
    %54 = vector.extract_strided_slice %13 {offsets = [1, 0, 0], sizes = [1, 1, 8], strides = [1, 1, 1]} : vector<4x1x8xf32> to vector<1x1x8xf32>
    %55 = vector.shape_cast %54 : vector<1x1x8xf32> to vector<1x8xf32>
    %56 = vector.broadcast %55 : vector<1x8xf32> to vector<16x8xf32>
    %57 = arith.addf %53, %56 : vector<16x8xf32>
    %58 = vector.extract_strided_slice %14 {offsets = [1, 0, 0], sizes = [1, 32, 8], strides = [1, 1, 1]} : vector<4x32x8xbf16> to vector<1x32x8xbf16>
    %59 = vector.shape_cast %58 : vector<1x32x8xbf16> to vector<32x8xbf16>
    %cst_34 = arith.constant dense<0.000000e+00> : vector<16x8xf32>
    %60 = tpu.matmul %19, %59, %cst_34 {dimension_numbers = #tpu.dot_dimension_numbers<[1], [0], [0], [1], [0, 0, 1, 1], [], []>} : vector<16x32xbf16>, vector<32x8xbf16>, vector<16x8xf32> -> vector<16x8xf32>
    %61 = vector.extract_strided_slice %15 {offsets = [1, 0, 0], sizes = [1, 1, 8], strides = [1, 1, 1]} : vector<4x1x8xf32> to vector<1x1x8xf32>
    %62 = vector.shape_cast %61 : vector<1x1x8xf32> to vector<1x8xf32>
    %63 = vector.broadcast %62 : vector<1x8xf32> to vector<16x8xf32>
    %64 = arith.addf %60, %63 : vector<16x8xf32>
    %65 = vector.shape_cast %50 : vector<16x8xf32> to vector<2x8x8xf32>
    %66 = vector.shape_cast %57 : vector<16x8xf32> to vector<2x8x8xf32>
    %67 = vector.shape_cast %64 : vector<16x8xf32> to vector<2x8x8xf32>
    %68 = vector.extract_strided_slice %10 {offsets = [2, 0, 0], sizes = [1, 32, 8], strides = [1, 1, 1]} : vector<4x32x8xbf16> to vector<1x32x8xbf16>
    %69 = vector.shape_cast %68 : vector<1x32x8xbf16> to vector<32x8xbf16>
    %cst_35 = arith.constant dense<0.000000e+00> : vector<16x8xf32>
    %70 = tpu.matmul %18, %69, %cst_35 {dimension_numbers = #tpu.dot_dimension_numbers<[1], [0], [0], [1], [0, 0, 1, 1], [], []>} : vector<16x32xbf16>, vector<32x8xbf16>, vector<16x8xf32> -> vector<16x8xf32>
    %71 = vector.extract_strided_slice %11 {offsets = [2, 0, 0], sizes = [1, 1, 8], strides = [1, 1, 1]} : vector<4x1x8xf32> to vector<1x1x8xf32>
    %72 = vector.shape_cast %71 : vector<1x1x8xf32> to vector<1x8xf32>
    %73 = vector.broadcast %72 : vector<1x8xf32> to vector<16x8xf32>
    %74 = arith.addf %70, %73 : vector<16x8xf32>
    %75 = vector.extract_strided_slice %12 {offsets = [2, 0, 0], sizes = [1, 32, 8], strides = [1, 1, 1]} : vector<4x32x8xbf16> to vector<1x32x8xbf16>
    %76 = vector.shape_cast %75 : vector<1x32x8xbf16> to vector<32x8xbf16>
    %cst_36 = arith.constant dense<0.000000e+00> : vector<16x8xf32>
    %77 = tpu.matmul %19, %76, %cst_36 {dimension_numbers = #tpu.dot_dimension_numbers<[1], [0], [0], [1], [0, 0, 1, 1], [], []>} : vector<16x32xbf16>, vector<32x8xbf16>, vector<16x8xf32> -> vector<16x8xf32>
    %78 = vector.extract_strided_slice %13 {offsets = [2, 0, 0], sizes = [1, 1, 8], strides = [1, 1, 1]} : vector<4x1x8xf32> to vector<1x1x8xf32>
    %79 = vector.shape_cast %78 : vector<1x1x8xf32> to vector<1x8xf32>
    %80 = vector.broadcast %79 : vector<1x8xf32> to vector<16x8xf32>
    %81 = arith.addf %77, %80 : vector<16x8xf32>
    %82 = vector.extract_strided_slice %14 {offsets = [2, 0, 0], sizes = [1, 32, 8], strides = [1, 1, 1]} : vector<4x32x8xbf16> to vector<1x32x8xbf16>
    %83 = vector.shape_cast %82 : vector<1x32x8xbf16> to vector<32x8xbf16>
    %cst_37 = arith.constant dense<0.000000e+00> : vector<16x8xf32>
    %84 = tpu.matmul %19, %83, %cst_37 {dimension_numbers = #tpu.dot_dimension_numbers<[1], [0], [0], [1], [0, 0, 1, 1], [], []>} : vector<16x32xbf16>, vector<32x8xbf16>, vector<16x8xf32> -> vector<16x8xf32>
    %85 = vector.extract_strided_slice %15 {offsets = [2, 0, 0], sizes = [1, 1, 8], strides = [1, 1, 1]} : vector<4x1x8xf32> to vector<1x1x8xf32>
    %86 = vector.shape_cast %85 : vector<1x1x8xf32> to vector<1x8xf32>
    %87 = vector.broadcast %86 : vector<1x8xf32> to vector<16x8xf32>
    %88 = arith.addf %84, %87 : vector<16x8xf32>
    %89 = vector.shape_cast %74 : vector<16x8xf32> to vector<2x8x8xf32>
    %90 = vector.shape_cast %81 : vector<16x8xf32> to vector<2x8x8xf32>
    %91 = vector.shape_cast %88 : vector<16x8xf32> to vector<2x8x8xf32>
    %92 = vector.extract_strided_slice %10 {offsets = [3, 0, 0], sizes = [1, 32, 8], strides = [1, 1, 1]} : vector<4x32x8xbf16> to vector<1x32x8xbf16>
    %93 = vector.shape_cast %92 : vector<1x32x8xbf16> to vector<32x8xbf16>
    %cst_38 = arith.constant dense<0.000000e+00> : vector<16x8xf32>
    %94 = tpu.matmul %18, %93, %cst_38 {dimension_numbers = #tpu.dot_dimension_numbers<[1], [0], [0], [1], [0, 0, 1, 1], [], []>} : vector<16x32xbf16>, vector<32x8xbf16>, vector<16x8xf32> -> vector<16x8xf32>
    %95 = vector.extract_strided_slice %11 {offsets = [3, 0, 0], sizes = [1, 1, 8], strides = [1, 1, 1]} : vector<4x1x8xf32> to vector<1x1x8xf32>
    %96 = vector.shape_cast %95 : vector<1x1x8xf32> to vector<1x8xf32>
    %97 = vector.broadcast %96 : vector<1x8xf32> to vector<16x8xf32>
    %98 = arith.addf %94, %97 : vector<16x8xf32>
    %99 = vector.extract_strided_slice %12 {offsets = [3, 0, 0], sizes = [1, 32, 8], strides = [1, 1, 1]} : vector<4x32x8xbf16> to vector<1x32x8xbf16>
    %100 = vector.shape_cast %99 : vector<1x32x8xbf16> to vector<32x8xbf16>
    %cst_39 = arith.constant dense<0.000000e+00> : vector<16x8xf32>
    %101 = tpu.matmul %19, %100, %cst_39 {dimension_numbers = #tpu.dot_dimension_numbers<[1], [0], [0], [1], [0, 0, 1, 1], [], []>} : vector<16x32xbf16>, vector<32x8xbf16>, vector<16x8xf32> -> vector<16x8xf32>
    %102 = vector.extract_strided_slice %13 {offsets = [3, 0, 0], sizes = [1, 1, 8], strides = [1, 1, 1]} : vector<4x1x8xf32> to vector<1x1x8xf32>
    %103 = vector.shape_cast %102 : vector<1x1x8xf32> to vector<1x8xf32>
    %104 = vector.broadcast %103 : vector<1x8xf32> to vector<16x8xf32>
    %105 = arith.addf %101, %104 : vector<16x8xf32>
    %106 = vector.extract_strided_slice %14 {offsets = [3, 0, 0], sizes = [1, 32, 8], strides = [1, 1, 1]} : vector<4x32x8xbf16> to vector<1x32x8xbf16>
    %107 = vector.shape_cast %106 : vector<1x32x8xbf16> to vector<32x8xbf16>
    %cst_40 = arith.constant dense<0.000000e+00> : vector<16x8xf32>
    %108 = tpu.matmul %19, %107, %cst_40 {dimension_numbers = #tpu.dot_dimension_numbers<[1], [0], [0], [1], [0, 0, 1, 1], [], []>} : vector<16x32xbf16>, vector<32x8xbf16>, vector<16x8xf32> -> vector<16x8xf32>
    %109 = vector.extract_strided_slice %15 {offsets = [3, 0, 0], sizes = [1, 1, 8], strides = [1, 1, 1]} : vector<4x1x8xf32> to vector<1x1x8xf32>
    %110 = vector.shape_cast %109 : vector<1x1x8xf32> to vector<1x8xf32>
    %111 = vector.broadcast %110 : vector<1x8xf32> to vector<16x8xf32>
    %112 = arith.addf %108, %111 : vector<16x8xf32>
    %113 = vector.shape_cast %98 : vector<16x8xf32> to vector<2x8x8xf32>
    %114 = vector.shape_cast %105 : vector<16x8xf32> to vector<2x8x8xf32>
    %115 = vector.shape_cast %112 : vector<16x8xf32> to vector<2x8x8xf32>
    %116 = tpu.concatenate %41, %65, %89, %113 in 0 : vector<2x8x8xf32>, vector<2x8x8xf32>, vector<2x8x8xf32>, vector<2x8x8xf32> -> vector<8x8x8xf32>
    %117 = tpu.concatenate %42, %66, %90, %114 in 0 : vector<2x8x8xf32>, vector<2x8x8xf32>, vector<2x8x8xf32>, vector<2x8x8xf32> -> vector<8x8x8xf32>
    %118 = tpu.concatenate %43, %67, %91, %115 in 0 : vector<2x8x8xf32>, vector<2x8x8xf32>, vector<2x8x8xf32>, vector<2x8x8xf32> -> vector<8x8x8xf32>
    %119 = arith.truncf %116 : vector<8x8x8xf32> to vector<8x8x8xbf16>
    %120 = arith.truncf %117 : vector<8x8x8xf32> to vector<8x8x8xbf16>
    "tpu.trace_start"() <{level = 10 : i32, message = "bqd,bkd->bqk"}> : () -> ()
    %cst_41 = arith.constant dense<0.000000e+00> : vector<8x8x8xf32>
    %121 = tpu.matmul %119, %120, %cst_41 {dimension_numbers = #tpu.dot_dimension_numbers<[2], [2], [1], [1], [0, 0, 0, 1, 1, 1], [0], [0]>} : vector<8x8x8xbf16>, vector<8x8x8xbf16>, vector<8x8x8xf32> -> vector<8x8x8xf32>
    "tpu.trace_stop"() : () -> ()
    %cst_42 = arith.constant 0.353553385 : f32
    %122 = vector.broadcast %cst_42 : f32 to vector<8x8x8xf32>
    %123 = arith.mulf %121, %122 : vector<8x8x8xf32>
    %124 = vector.shape_cast %9 : vector<8x8xf32> to vector<1x8x8xf32>
    %125 = vector.broadcast %124 : vector<1x8x8xf32> to vector<8x8x8xf32>
    %126 = arith.addf %123, %125 : vector<8x8x8xf32>
    %cst_43 = arith.constant dense<0xFF800000> : vector<8x8xf32>
    %127 = vector.multi_reduction <maximumf>, %126, %cst_43 [2] : vector<8x8x8xf32> to vector<8x8xf32>
    %128 = vector.shape_cast %127 : vector<8x8xf32> to vector<8x8x1xf32>
    %129 = vector.broadcast %128 : vector<8x8x1xf32> to vector<8x8x8xf32>
    %130 = arith.subf %126, %129 : vector<8x8x8xf32>
    %131 = math.exp %130 : vector<8x8x8xf32>
    %cst_44 = arith.constant dense<0.000000e+00> : vector<8x8xf32>
    %132 = vector.multi_reduction <add>, %131, %cst_44 [2] : vector<8x8x8xf32> to vector<8x8xf32>
    %133 = vector.shape_cast %132 : vector<8x8xf32> to vector<8x8x1xf32>
    %134 = tpu.reciprocal %133 {approx = true} : vector<8x8x1xf32> -> vector<8x8x1xf32>
    %135 = vector.broadcast %134 : vector<8x8x1xf32> to vector<8x8x8xf32>
    %136 = arith.mulf %131, %135 : vector<8x8x8xf32>
    %137 = arith.truncf %136 : vector<8x8x8xf32> to vector<8x8x8xbf16>
    %138 = arith.truncf %118 : vector<8x8x8xf32> to vector<8x8x8xbf16>
    "tpu.trace_start"() <{level = 10 : i32, message = "bqk,bkd->bqd"}> : () -> ()
    %cst_45 = arith.constant dense<0.000000e+00> : vector<8x8x8xf32>
    %139 = tpu.matmul %137, %138, %cst_45 {dimension_numbers = #tpu.dot_dimension_numbers<[2], [1], [1], [2], [0, 0, 0, 1, 1, 2], [0], [0]>} : vector<8x8x8xbf16>, vector<8x8x8xbf16>, vector<8x8x8xf32> -> vector<8x8x8xf32>
    "tpu.trace_stop"() : () -> ()
    %140 = vector.extract_strided_slice %139 {offsets = [0, 0, 0], sizes = [2, 8, 8], strides = [1, 1, 1]} : vector<8x8x8xf32> to vector<2x8x8xf32>
    %141 = vector.shape_cast %140 : vector<2x8x8xf32> to vector<16x8xf32>
    %142 = arith.truncf %141 : vector<16x8xf32> to vector<16x8xbf16>
    %143 = vector.extract_strided_slice %16 {offsets = [0, 0, 0], sizes = [1, 8, 32], strides = [1, 1, 1]} : vector<4x8x32xbf16> to vector<1x8x32xbf16>
    %144 = vector.shape_cast %143 : vector<1x8x32xbf16> to vector<8x32xbf16>
    %cst_46 = arith.constant dense<0.000000e+00> : vector<16x32xf32>
    %145 = tpu.matmul %142, %144, %cst_46 {dimension_numbers = #tpu.dot_dimension_numbers<[1], [0], [0], [1], [0, 0, 1, 1], [], []>} : vector<16x8xbf16>, vector<8x32xbf16>, vector<16x32xf32> -> vector<16x32xf32>
    %146 = vector.extract_strided_slice %139 {offsets = [2, 0, 0], sizes = [2, 8, 8], strides = [1, 1, 1]} : vector<8x8x8xf32> to vector<2x8x8xf32>
    %147 = vector.shape_cast %146 : vector<2x8x8xf32> to vector<16x8xf32>
    %148 = arith.truncf %147 : vector<16x8xf32> to vector<16x8xbf16>
    %149 = vector.extract_strided_slice %16 {offsets = [1, 0, 0], sizes = [1, 8, 32], strides = [1, 1, 1]} : vector<4x8x32xbf16> to vector<1x8x32xbf16>
    %150 = vector.shape_cast %149 : vector<1x8x32xbf16> to vector<8x32xbf16>
    %cst_47 = arith.constant dense<0.000000e+00> : vector<16x32xf32>
    %151 = tpu.matmul %148, %150, %cst_47 {dimension_numbers = #tpu.dot_dimension_numbers<[1], [0], [0], [1], [0, 0, 1, 1], [], []>} : vector<16x8xbf16>, vector<8x32xbf16>, vector<16x32xf32> -> vector<16x32xf32>
    %152 = arith.addf %145, %151 : vector<16x32xf32>
    %153 = vector.extract_strided_slice %139 {offsets = [4, 0, 0], sizes = [2, 8, 8], strides = [1, 1, 1]} : vector<8x8x8xf32> to vector<2x8x8xf32>
    %154 = vector.shape_cast %153 : vector<2x8x8xf32> to vector<16x8xf32>
    %155 = arith.truncf %154 : vector<16x8xf32> to vector<16x8xbf16>
    %156 = vector.extract_strided_slice %16 {offsets = [2, 0, 0], sizes = [1, 8, 32], strides = [1, 1, 1]} : vector<4x8x32xbf16> to vector<1x8x32xbf16>
    %157 = vector.shape_cast %156 : vector<1x8x32xbf16> to vector<8x32xbf16>
    %cst_48 = arith.constant dense<0.000000e+00> : vector<16x32xf32>
    %158 = tpu.matmul %155, %157, %cst_48 {dimension_numbers = #tpu.dot_dimension_numbers<[1], [0], [0], [1], [0, 0, 1, 1], [], []>} : vector<16x8xbf16>, vector<8x32xbf16>, vector<16x32xf32> -> vector<16x32xf32>
    %159 = arith.addf %152, %158 : vector<16x32xf32>
    %160 = vector.extract_strided_slice %139 {offsets = [6, 0, 0], sizes = [2, 8, 8], strides = [1, 1, 1]} : vector<8x8x8xf32> to vector<2x8x8xf32>
    %161 = vector.shape_cast %160 : vector<2x8x8xf32> to vector<16x8xf32>
    %162 = arith.truncf %161 : vector<16x8xf32> to vector<16x8xbf16>
    %163 = vector.extract_strided_slice %16 {offsets = [3, 0, 0], sizes = [1, 8, 32], strides = [1, 1, 1]} : vector<4x8x32xbf16> to vector<1x8x32xbf16>
    %164 = vector.shape_cast %163 : vector<1x8x32xbf16> to vector<8x32xbf16>
    %cst_49 = arith.constant dense<0.000000e+00> : vector<16x32xf32>
    %165 = tpu.matmul %162, %164, %cst_49 {dimension_numbers = #tpu.dot_dimension_numbers<[1], [0], [0], [1], [0, 0, 1, 1], [], []>} : vector<16x8xbf16>, vector<8x32xbf16>, vector<16x32xf32> -> vector<16x32xf32>
    %166 = arith.addf %159, %165 : vector<16x32xf32>
    %167 = vector.broadcast %17 : vector<1x32xf32> to vector<16x32xf32>
    %168 = arith.addf %166, %167 : vector<16x32xf32>
    %169 = arith.addf %1, %168 : vector<16x32xf32>
    %c0_50 = arith.constant 0 : index
    %c0_51 = arith.constant 0 : index
    %170 = vector.load %arg11[%c0_50, %c0_51] : memref<1x32xf32, #tpu.memory_space<vmem>>, vector<1x32xf32>
    %c0_52 = arith.constant 0 : index
    %c0_53 = arith.constant 0 : index
    %171 = vector.load %arg12[%c0_52, %c0_53] : memref<1x32xf32, #tpu.memory_space<vmem>>, vector<1x32xf32>
    %cst_54 = arith.constant dense<0.000000e+00> : vector<16xf32>
    %172 = vector.multi_reduction <add>, %169, %cst_54 [1] : vector<16x32xf32> to vector<16xf32>
    %173 = vector.shape_cast %172 : vector<16xf32> to vector<16x1xf32>
    %cst_55 = arith.constant 3.200000e+01 : f32
    %174 = vector.broadcast %cst_55 : f32 to vector<16x1xf32>
    %175 = arith.divf %173, %174 : vector<16x1xf32>
    %176 = vector.broadcast %175 : vector<16x1xf32> to vector<16x32xf32>
    %177 = arith.subf %169, %176 : vector<16x32xf32>
    %178 = arith.mulf %177, %177 : vector<16x32xf32>
    %cst_56 = arith.constant dense<0.000000e+00> : vector<16xf32>
    %179 = vector.multi_reduction <add>, %178, %cst_56 [1] : vector<16x32xf32> to vector<16xf32>
    %180 = vector.shape_cast %179 : vector<16xf32> to vector<16x1xf32>
    %cst_57 = arith.constant 3.200000e+01 : f32
    %181 = vector.broadcast %cst_57 : f32 to vector<16x1xf32>
    %182 = arith.divf %180, %181 : vector<16x1xf32>
    %cst_58 = arith.constant 9.99999974E-6 : f32
    %183 = vector.broadcast %cst_58 : f32 to vector<16x1xf32>
    %184 = arith.addf %182, %183 : vector<16x1xf32>
    %185 = math.rsqrt %184 : vector<16x1xf32>
    %186 = vector.broadcast %185 : vector<16x1xf32> to vector<16x32xf32>
    %187 = arith.mulf %177, %186 : vector<16x32xf32>
    %188 = vector.broadcast %170 : vector<1x32xf32> to vector<16x32xf32>
    %189 = arith.mulf %187, %188 : vector<16x32xf32>
    %190 = vector.broadcast %171 : vector<1x32xf32> to vector<16x32xf32>
    %191 = arith.addf %189, %190 : vector<16x32xf32>
    %c0_59 = arith.constant 0 : index
    %c0_60 = arith.constant 0 : index
    %c0_61 = arith.constant 0 : index
    %192 = vector.load %arg13[%c0_59, %c0_60, %c0_61] : memref<4x32x8xbf16, #tpu.memory_space<vmem>>, vector<4x32x8xbf16>
    %c0_62 = arith.constant 0 : index
    %c0_63 = arith.constant 0 : index
    %c0_64 = arith.constant 0 : index
    %193 = vector.load %arg14[%c0_62, %c0_63, %c0_64] : memref<4x1x8xf32, #tpu.memory_space<vmem>>, vector<4x1x8xf32>
    %c0_65 = arith.constant 0 : index
    %c0_66 = arith.constant 0 : index
    %c0_67 = arith.constant 0 : index
    %194 = vector.load %arg15[%c0_65, %c0_66, %c0_67] : memref<4x32x8xbf16, #tpu.memory_space<vmem>>, vector<4x32x8xbf16>
    %c0_68 = arith.constant 0 : index
    %c0_69 = arith.constant 0 : index
    %c0_70 = arith.constant 0 : index
    %195 = vector.load %arg16[%c0_68, %c0_69, %c0_70] : memref<4x1x8xf32, #tpu.memory_space<vmem>>, vector<4x1x8xf32>
    %c0_71 = arith.constant 0 : index
    %c0_72 = arith.constant 0 : index
    %c0_73 = arith.constant 0 : index
    %196 = vector.load %arg17[%c0_71, %c0_72, %c0_73] : memref<4x32x8xbf16, #tpu.memory_space<vmem>>, vector<4x32x8xbf16>
    %c0_74 = arith.constant 0 : index
    %c0_75 = arith.constant 0 : index
    %c0_76 = arith.constant 0 : index
    %197 = vector.load %arg18[%c0_74, %c0_75, %c0_76] : memref<4x1x8xf32, #tpu.memory_space<vmem>>, vector<4x1x8xf32>
    %c0_77 = arith.constant 0 : index
    %c0_78 = arith.constant 0 : index
    %c0_79 = arith.constant 0 : index
    %198 = vector.load %arg19[%c0_77, %c0_78, %c0_79] : memref<4x8x32xbf16, #tpu.memory_space<vmem>>, vector<4x8x32xbf16>
    %c0_80 = arith.constant 0 : index
    %c0_81 = arith.constant 0 : index
    %199 = vector.load %arg20[%c0_80, %c0_81] : memref<1x32xf32, #tpu.memory_space<vmem>>, vector<1x32xf32>
    %200 = arith.truncf %191 : vector<16x32xf32> to vector<16x32xbf16>
    %201 = arith.truncf %3 : vector<32x32xf32> to vector<32x32xbf16>
    %202 = vector.extract_strided_slice %192 {offsets = [0, 0, 0], sizes = [1, 32, 8], strides = [1, 1, 1]} : vector<4x32x8xbf16> to vector<1x32x8xbf16>
    %203 = vector.shape_cast %202 : vector<1x32x8xbf16> to vector<32x8xbf16>
    %cst_82 = arith.constant dense<0.000000e+00> : vector<16x8xf32>
    %204 = tpu.matmul %200, %203, %cst_82 {dimension_numbers = #tpu.dot_dimension_numbers<[1], [0], [0], [1], [0, 0, 1, 1], [], []>} : vector<16x32xbf16>, vector<32x8xbf16>, vector<16x8xf32> -> vector<16x8xf32>
    %205 = vector.extract_strided_slice %193 {offsets = [0, 0, 0], sizes = [1, 1, 8], strides = [1, 1, 1]} : vector<4x1x8xf32> to vector<1x1x8xf32>
    %206 = vector.shape_cast %205 : vector<1x1x8xf32> to vector<1x8xf32>
    %207 = vector.broadcast %206 : vector<1x8xf32> to vector<16x8xf32>
    %208 = arith.addf %204, %207 : vector<16x8xf32>
    %209 = vector.extract_strided_slice %194 {offsets = [0, 0, 0], sizes = [1, 32, 8], strides = [1, 1, 1]} : vector<4x32x8xbf16> to vector<1x32x8xbf16>
    %210 = vector.shape_cast %209 : vector<1x32x8xbf16> to vector<32x8xbf16>
    %cst_83 = arith.constant dense<0.000000e+00> : vector<32x8xf32>
    %211 = tpu.matmul %201, %210, %cst_83 {dimension_numbers = #tpu.dot_dimension_numbers<[1], [0], [0], [1], [0, 0, 1, 1], [], []>} : vector<32x32xbf16>, vector<32x8xbf16>, vector<32x8xf32> -> vector<32x8xf32>
    %212 = vector.extract_strided_slice %195 {offsets = [0, 0, 0], sizes = [1, 1, 8], strides = [1, 1, 1]} : vector<4x1x8xf32> to vector<1x1x8xf32>
    %213 = vector.shape_cast %212 : vector<1x1x8xf32> to vector<1x8xf32>
    %214 = vector.broadcast %213 : vector<1x8xf32> to vector<32x8xf32>
    %215 = arith.addf %211, %214 : vector<32x8xf32>
    %216 = vector.extract_strided_slice %196 {offsets = [0, 0, 0], sizes = [1, 32, 8], strides = [1, 1, 1]} : vector<4x32x8xbf16> to vector<1x32x8xbf16>
    %217 = vector.shape_cast %216 : vector<1x32x8xbf16> to vector<32x8xbf16>
    %cst_84 = arith.constant dense<0.000000e+00> : vector<32x8xf32>
    %218 = tpu.matmul %201, %217, %cst_84 {dimension_numbers = #tpu.dot_dimension_numbers<[1], [0], [0], [1], [0, 0, 1, 1], [], []>} : vector<32x32xbf16>, vector<32x8xbf16>, vector<32x8xf32> -> vector<32x8xf32>
    %219 = vector.extract_strided_slice %197 {offsets = [0, 0, 0], sizes = [1, 1, 8], strides = [1, 1, 1]} : vector<4x1x8xf32> to vector<1x1x8xf32>
    %220 = vector.shape_cast %219 : vector<1x1x8xf32> to vector<1x8xf32>
    %221 = vector.broadcast %220 : vector<1x8xf32> to vector<32x8xf32>
    %222 = arith.addf %218, %221 : vector<32x8xf32>
    %223 = vector.shape_cast %208 : vector<16x8xf32> to vector<2x8x8xf32>
    %224 = vector.shape_cast %215 : vector<32x8xf32> to vector<2x16x8xf32>
    %225 = vector.shape_cast %222 : vector<32x8xf32> to vector<2x16x8xf32>
    %226 = vector.extract_strided_slice %192 {offsets = [1, 0, 0], sizes = [1, 32, 8], strides = [1, 1, 1]} : vector<4x32x8xbf16> to vector<1x32x8xbf16>
    %227 = vector.shape_cast %226 : vector<1x32x8xbf16> to vector<32x8xbf16>
    %cst_85 = arith.constant dense<0.000000e+00> : vector<16x8xf32>
    %228 = tpu.matmul %200, %227, %cst_85 {dimension_numbers = #tpu.dot_dimension_numbers<[1], [0], [0], [1], [0, 0, 1, 1], [], []>} : vector<16x32xbf16>, vector<32x8xbf16>, vector<16x8xf32> -> vector<16x8xf32>
    %229 = vector.extract_strided_slice %193 {offsets = [1, 0, 0], sizes = [1, 1, 8], strides = [1, 1, 1]} : vector<4x1x8xf32> to vector<1x1x8xf32>
    %230 = vector.shape_cast %229 : vector<1x1x8xf32> to vector<1x8xf32>
    %231 = vector.broadcast %230 : vector<1x8xf32> to vector<16x8xf32>
    %232 = arith.addf %228, %231 : vector<16x8xf32>
    %233 = vector.extract_strided_slice %194 {offsets = [1, 0, 0], sizes = [1, 32, 8], strides = [1, 1, 1]} : vector<4x32x8xbf16> to vector<1x32x8xbf16>
    %234 = vector.shape_cast %233 : vector<1x32x8xbf16> to vector<32x8xbf16>
    %cst_86 = arith.constant dense<0.000000e+00> : vector<32x8xf32>
    %235 = tpu.matmul %201, %234, %cst_86 {dimension_numbers = #tpu.dot_dimension_numbers<[1], [0], [0], [1], [0, 0, 1, 1], [], []>} : vector<32x32xbf16>, vector<32x8xbf16>, vector<32x8xf32> -> vector<32x8xf32>
    %236 = vector.extract_strided_slice %195 {offsets = [1, 0, 0], sizes = [1, 1, 8], strides = [1, 1, 1]} : vector<4x1x8xf32> to vector<1x1x8xf32>
    %237 = vector.shape_cast %236 : vector<1x1x8xf32> to vector<1x8xf32>
    %238 = vector.broadcast %237 : vector<1x8xf32> to vector<32x8xf32>
    %239 = arith.addf %235, %238 : vector<32x8xf32>
    %240 = vector.extract_strided_slice %196 {offsets = [1, 0, 0], sizes = [1, 32, 8], strides = [1, 1, 1]} : vector<4x32x8xbf16> to vector<1x32x8xbf16>
    %241 = vector.shape_cast %240 : vector<1x32x8xbf16> to vector<32x8xbf16>
    %cst_87 = arith.constant dense<0.000000e+00> : vector<32x8xf32>
    %242 = tpu.matmul %201, %241, %cst_87 {dimension_numbers = #tpu.dot_dimension_numbers<[1], [0], [0], [1], [0, 0, 1, 1], [], []>} : vector<32x32xbf16>, vector<32x8xbf16>, vector<32x8xf32> -> vector<32x8xf32>
    %243 = vector.extract_strided_slice %197 {offsets = [1, 0, 0], sizes = [1, 1, 8], strides = [1, 1, 1]} : vector<4x1x8xf32> to vector<1x1x8xf32>
    %244 = vector.shape_cast %243 : vector<1x1x8xf32> to vector<1x8xf32>
    %245 = vector.broadcast %244 : vector<1x8xf32> to vector<32x8xf32>
    %246 = arith.addf %242, %245 : vector<32x8xf32>
    %247 = vector.shape_cast %232 : vector<16x8xf32> to vector<2x8x8xf32>
    %248 = vector.shape_cast %239 : vector<32x8xf32> to vector<2x16x8xf32>
    %249 = vector.shape_cast %246 : vector<32x8xf32> to vector<2x16x8xf32>
    %250 = vector.extract_strided_slice %192 {offsets = [2, 0, 0], sizes = [1, 32, 8], strides = [1, 1, 1]} : vector<4x32x8xbf16> to vector<1x32x8xbf16>
    %251 = vector.shape_cast %250 : vector<1x32x8xbf16> to vector<32x8xbf16>
    %cst_88 = arith.constant dense<0.000000e+00> : vector<16x8xf32>
    %252 = tpu.matmul %200, %251, %cst_88 {dimension_numbers = #tpu.dot_dimension_numbers<[1], [0], [0], [1], [0, 0, 1, 1], [], []>} : vector<16x32xbf16>, vector<32x8xbf16>, vector<16x8xf32> -> vector<16x8xf32>
    %253 = vector.extract_strided_slice %193 {offsets = [2, 0, 0], sizes = [1, 1, 8], strides = [1, 1, 1]} : vector<4x1x8xf32> to vector<1x1x8xf32>
    %254 = vector.shape_cast %253 : vector<1x1x8xf32> to vector<1x8xf32>
    %255 = vector.broadcast %254 : vector<1x8xf32> to vector<16x8xf32>
    %256 = arith.addf %252, %255 : vector<16x8xf32>
    %257 = vector.extract_strided_slice %194 {offsets = [2, 0, 0], sizes = [1, 32, 8], strides = [1, 1, 1]} : vector<4x32x8xbf16> to vector<1x32x8xbf16>
    %258 = vector.shape_cast %257 : vector<1x32x8xbf16> to vector<32x8xbf16>
    %cst_89 = arith.constant dense<0.000000e+00> : vector<32x8xf32>
    %259 = tpu.matmul %201, %258, %cst_89 {dimension_numbers = #tpu.dot_dimension_numbers<[1], [0], [0], [1], [0, 0, 1, 1], [], []>} : vector<32x32xbf16>, vector<32x8xbf16>, vector<32x8xf32> -> vector<32x8xf32>
    %260 = vector.extract_strided_slice %195 {offsets = [2, 0, 0], sizes = [1, 1, 8], strides = [1, 1, 1]} : vector<4x1x8xf32> to vector<1x1x8xf32>
    %261 = vector.shape_cast %260 : vector<1x1x8xf32> to vector<1x8xf32>
    %262 = vector.broadcast %261 : vector<1x8xf32> to vector<32x8xf32>
    %263 = arith.addf %259, %262 : vector<32x8xf32>
    %264 = vector.extract_strided_slice %196 {offsets = [2, 0, 0], sizes = [1, 32, 8], strides = [1, 1, 1]} : vector<4x32x8xbf16> to vector<1x32x8xbf16>
    %265 = vector.shape_cast %264 : vector<1x32x8xbf16> to vector<32x8xbf16>
    %cst_90 = arith.constant dense<0.000000e+00> : vector<32x8xf32>
    %266 = tpu.matmul %201, %265, %cst_90 {dimension_numbers = #tpu.dot_dimension_numbers<[1], [0], [0], [1], [0, 0, 1, 1], [], []>} : vector<32x32xbf16>, vector<32x8xbf16>, vector<32x8xf32> -> vector<32x8xf32>
    %267 = vector.extract_strided_slice %197 {offsets = [2, 0, 0], sizes = [1, 1, 8], strides = [1, 1, 1]} : vector<4x1x8xf32> to vector<1x1x8xf32>
    %268 = vector.shape_cast %267 : vector<1x1x8xf32> to vector<1x8xf32>
    %269 = vector.broadcast %268 : vector<1x8xf32> to vector<32x8xf32>
    %270 = arith.addf %266, %269 : vector<32x8xf32>
    %271 = vector.shape_cast %256 : vector<16x8xf32> to vector<2x8x8xf32>
    %272 = vector.shape_cast %263 : vector<32x8xf32> to vector<2x16x8xf32>
    %273 = vector.shape_cast %270 : vector<32x8xf32> to vector<2x16x8xf32>
    %274 = vector.extract_strided_slice %192 {offsets = [3, 0, 0], sizes = [1, 32, 8], strides = [1, 1, 1]} : vector<4x32x8xbf16> to vector<1x32x8xbf16>
    %275 = vector.shape_cast %274 : vector<1x32x8xbf16> to vector<32x8xbf16>
    %cst_91 = arith.constant dense<0.000000e+00> : vector<16x8xf32>
    %276 = tpu.matmul %200, %275, %cst_91 {dimension_numbers = #tpu.dot_dimension_numbers<[1], [0], [0], [1], [0, 0, 1, 1], [], []>} : vector<16x32xbf16>, vector<32x8xbf16>, vector<16x8xf32> -> vector<16x8xf32>
    %277 = vector.extract_strided_slice %193 {offsets = [3, 0, 0], sizes = [1, 1, 8], strides = [1, 1, 1]} : vector<4x1x8xf32> to vector<1x1x8xf32>
    %278 = vector.shape_cast %277 : vector<1x1x8xf32> to vector<1x8xf32>
    %279 = vector.broadcast %278 : vector<1x8xf32> to vector<16x8xf32>
    %280 = arith.addf %276, %279 : vector<16x8xf32>
    %281 = vector.extract_strided_slice %194 {offsets = [3, 0, 0], sizes = [1, 32, 8], strides = [1, 1, 1]} : vector<4x32x8xbf16> to vector<1x32x8xbf16>
    %282 = vector.shape_cast %281 : vector<1x32x8xbf16> to vector<32x8xbf16>
    %cst_92 = arith.constant dense<0.000000e+00> : vector<32x8xf32>
    %283 = tpu.matmul %201, %282, %cst_92 {dimension_numbers = #tpu.dot_dimension_numbers<[1], [0], [0], [1], [0, 0, 1, 1], [], []>} : vector<32x32xbf16>, vector<32x8xbf16>, vector<32x8xf32> -> vector<32x8xf32>
    %284 = vector.extract_strided_slice %195 {offsets = [3, 0, 0], sizes = [1, 1, 8], strides = [1, 1, 1]} : vector<4x1x8xf32> to vector<1x1x8xf32>
    %285 = vector.shape_cast %284 : vector<1x1x8xf32> to vector<1x8xf32>
    %286 = vector.broadcast %285 : vector<1x8xf32> to vector<32x8xf32>
    %287 = arith.addf %283, %286 : vector<32x8xf32>
    %288 = vector.extract_strided_slice %196 {offsets = [3, 0, 0], sizes = [1, 32, 8], strides = [1, 1, 1]} : vector<4x32x8xbf16> to vector<1x32x8xbf16>
    %289 = vector.shape_cast %288 : vector<1x32x8xbf16> to vector<32x8xbf16>
    %cst_93 = arith.constant dense<0.000000e+00> : vector<32x8xf32>
    %290 = tpu.matmul %201, %289, %cst_93 {dimension_numbers = #tpu.dot_dimension_numbers<[1], [0], [0], [1], [0, 0, 1, 1], [], []>} : vector<32x32xbf16>, vector<32x8xbf16>, vector<32x8xf32> -> vector<32x8xf32>
    %291 = vector.extract_strided_slice %197 {offsets = [3, 0, 0], sizes = [1, 1, 8], strides = [1, 1, 1]} : vector<4x1x8xf32> to vector<1x1x8xf32>
    %292 = vector.shape_cast %291 : vector<1x1x8xf32> to vector<1x8xf32>
    %293 = vector.broadcast %292 : vector<1x8xf32> to vector<32x8xf32>
    %294 = arith.addf %290, %293 : vector<32x8xf32>
    %295 = vector.shape_cast %280 : vector<16x8xf32> to vector<2x8x8xf32>
    %296 = vector.shape_cast %287 : vector<32x8xf32> to vector<2x16x8xf32>
    %297 = vector.shape_cast %294 : vector<32x8xf32> to vector<2x16x8xf32>
    %298 = tpu.concatenate %223, %247, %271, %295 in 0 : vector<2x8x8xf32>, vector<2x8x8xf32>, vector<2x8x8xf32>, vector<2x8x8xf32> -> vector<8x8x8xf32>
    %299 = tpu.concatenate %224, %248, %272, %296 in 0 : vector<2x16x8xf32>, vector<2x16x8xf32>, vector<2x16x8xf32>, vector<2x16x8xf32> -> vector<8x16x8xf32>
    %300 = tpu.concatenate %225, %249, %273, %297 in 0 : vector<2x16x8xf32>, vector<2x16x8xf32>, vector<2x16x8xf32>, vector<2x16x8xf32> -> vector<8x16x8xf32>
    %301 = arith.truncf %298 : vector<8x8x8xf32> to vector<8x8x8xbf16>
    %302 = arith.truncf %299 : vector<8x16x8xf32> to vector<8x16x8xbf16>
    "tpu.trace_start"() <{level = 10 : i32, message = "bqd,bkd->bqk"}> : () -> ()
    %cst_94 = arith.constant dense<0.000000e+00> : vector<8x8x16xf32>
    %303 = tpu.matmul %301, %302, %cst_94 {dimension_numbers = #tpu.dot_dimension_numbers<[2], [2], [1], [1], [0, 0, 0, 1, 1, 1], [0], [0]>} : vector<8x8x8xbf16>, vector<8x16x8xbf16>, vector<8x8x16xf32> -> vector<8x8x16xf32>
    "tpu.trace_stop"() : () -> ()
    %cst_95 = arith.constant 0.353553385 : f32
    %304 = vector.broadcast %cst_95 : f32 to vector<8x8x16xf32>
    %305 = arith.mulf %303, %304 : vector<8x8x16xf32>
    %cst_96 = arith.constant dense<0xFF800000> : vector<8x8xf32>
    %306 = vector.multi_reduction <maximumf>, %305, %cst_96 [2] : vector<8x8x16xf32> to vector<8x8xf32>
    %307 = vector.shape_cast %306 : vector<8x8xf32> to vector<8x8x1xf32>
    %308 = vector.broadcast %307 : vector<8x8x1xf32> to vector<8x8x16xf32>
    %309 = arith.subf %305, %308 : vector<8x8x16xf32>
    %310 = math.exp %309 : vector<8x8x16xf32>
    %cst_97 = arith.constant dense<0.000000e+00> : vector<8x8xf32>
    %311 = vector.multi_reduction <add>, %310, %cst_97 [2] : vector<8x8x16xf32> to vector<8x8xf32>
    %312 = vector.shape_cast %311 : vector<8x8xf32> to vector<8x8x1xf32>
    %313 = tpu.reciprocal %312 {approx = true} : vector<8x8x1xf32> -> vector<8x8x1xf32>
    %314 = vector.broadcast %313 : vector<8x8x1xf32> to vector<8x8x16xf32>
    %315 = arith.mulf %310, %314 : vector<8x8x16xf32>
    %316 = arith.truncf %315 : vector<8x8x16xf32> to vector<8x8x16xbf16>
    %317 = arith.truncf %300 : vector<8x16x8xf32> to vector<8x16x8xbf16>
    "tpu.trace_start"() <{level = 10 : i32, message = "bqk,bkd->bqd"}> : () -> ()
    %cst_98 = arith.constant dense<0.000000e+00> : vector<8x8x8xf32>
    %318 = tpu.matmul %316, %317, %cst_98 {dimension_numbers = #tpu.dot_dimension_numbers<[2], [1], [1], [2], [0, 0, 0, 1, 1, 2], [0], [0]>} : vector<8x8x16xbf16>, vector<8x16x8xbf16>, vector<8x8x8xf32> -> vector<8x8x8xf32>
    "tpu.trace_stop"() : () -> ()
    %319 = vector.extract_strided_slice %318 {offsets = [0, 0, 0], sizes = [2, 8, 8], strides = [1, 1, 1]} : vector<8x8x8xf32> to vector<2x8x8xf32>
    %320 = vector.shape_cast %319 : vector<2x8x8xf32> to vector<16x8xf32>
    %321 = arith.truncf %320 : vector<16x8xf32> to vector<16x8xbf16>
    %322 = vector.extract_strided_slice %198 {offsets = [0, 0, 0], sizes = [1, 8, 32], strides = [1, 1, 1]} : vector<4x8x32xbf16> to vector<1x8x32xbf16>
    %323 = vector.shape_cast %322 : vector<1x8x32xbf16> to vector<8x32xbf16>
    %cst_99 = arith.constant dense<0.000000e+00> : vector<16x32xf32>
    %324 = tpu.matmul %321, %323, %cst_99 {dimension_numbers = #tpu.dot_dimension_numbers<[1], [0], [0], [1], [0, 0, 1, 1], [], []>} : vector<16x8xbf16>, vector<8x32xbf16>, vector<16x32xf32> -> vector<16x32xf32>
    %325 = vector.extract_strided_slice %318 {offsets = [2, 0, 0], sizes = [2, 8, 8], strides = [1, 1, 1]} : vector<8x8x8xf32> to vector<2x8x8xf32>
    %326 = vector.shape_cast %325 : vector<2x8x8xf32> to vector<16x8xf32>
    %327 = arith.truncf %326 : vector<16x8xf32> to vector<16x8xbf16>
    %328 = vector.extract_strided_slice %198 {offsets = [1, 0, 0], sizes = [1, 8, 32], strides = [1, 1, 1]} : vector<4x8x32xbf16> to vector<1x8x32xbf16>
    %329 = vector.shape_cast %328 : vector<1x8x32xbf16> to vector<8x32xbf16>
    %cst_100 = arith.constant dense<0.000000e+00> : vector<16x32xf32>
    %330 = tpu.matmul %327, %329, %cst_100 {dimension_numbers = #tpu.dot_dimension_numbers<[1], [0], [0], [1], [0, 0, 1, 1], [], []>} : vector<16x8xbf16>, vector<8x32xbf16>, vector<16x32xf32> -> vector<16x32xf32>
    %331 = arith.addf %324, %330 : vector<16x32xf32>
    %332 = vector.extract_strided_slice %318 {offsets = [4, 0, 0], sizes = [2, 8, 8], strides = [1, 1, 1]} : vector<8x8x8xf32> to vector<2x8x8xf32>
    %333 = vector.shape_cast %332 : vector<2x8x8xf32> to vector<16x8xf32>
    %334 = arith.truncf %333 : vector<16x8xf32> to vector<16x8xbf16>
    %335 = vector.extract_strided_slice %198 {offsets = [2, 0, 0], sizes = [1, 8, 32], strides = [1, 1, 1]} : vector<4x8x32xbf16> to vector<1x8x32xbf16>
    %336 = vector.shape_cast %335 : vector<1x8x32xbf16> to vector<8x32xbf16>
    %cst_101 = arith.constant dense<0.000000e+00> : vector<16x32xf32>
    %337 = tpu.matmul %334, %336, %cst_101 {dimension_numbers = #tpu.dot_dimension_numbers<[1], [0], [0], [1], [0, 0, 1, 1], [], []>} : vector<16x8xbf16>, vector<8x32xbf16>, vector<16x32xf32> -> vector<16x32xf32>
    %338 = arith.addf %331, %337 : vector<16x32xf32>
    %339 = vector.extract_strided_slice %318 {offsets = [6, 0, 0], sizes = [2, 8, 8], strides = [1, 1, 1]} : vector<8x8x8xf32> to vector<2x8x8xf32>
    %340 = vector.shape_cast %339 : vector<2x8x8xf32> to vector<16x8xf32>
    %341 = arith.truncf %340 : vector<16x8xf32> to vector<16x8xbf16>
    %342 = vector.extract_strided_slice %198 {offsets = [3, 0, 0], sizes = [1, 8, 32], strides = [1, 1, 1]} : vector<4x8x32xbf16> to vector<1x8x32xbf16>
    %343 = vector.shape_cast %342 : vector<1x8x32xbf16> to vector<8x32xbf16>
    %cst_102 = arith.constant dense<0.000000e+00> : vector<16x32xf32>
    %344 = tpu.matmul %341, %343, %cst_102 {dimension_numbers = #tpu.dot_dimension_numbers<[1], [0], [0], [1], [0, 0, 1, 1], [], []>} : vector<16x8xbf16>, vector<8x32xbf16>, vector<16x32xf32> -> vector<16x32xf32>
    %345 = arith.addf %338, %344 : vector<16x32xf32>
    %346 = vector.broadcast %199 : vector<1x32xf32> to vector<16x32xf32>
    %347 = arith.addf %345, %346 : vector<16x32xf32>
    %348 = arith.addf %191, %347 : vector<16x32xf32>
    %c0_103 = arith.constant 0 : index
    %c0_104 = arith.constant 0 : index
    %349 = vector.load %arg21[%c0_103, %c0_104] : memref<1x32xf32, #tpu.memory_space<vmem>>, vector<1x32xf32>
    %c0_105 = arith.constant 0 : index
    %c0_106 = arith.constant 0 : index
    %350 = vector.load %arg22[%c0_105, %c0_106] : memref<1x32xf32, #tpu.memory_space<vmem>>, vector<1x32xf32>
    %cst_107 = arith.constant dense<0.000000e+00> : vector<16xf32>
    %351 = vector.multi_reduction <add>, %348, %cst_107 [1] : vector<16x32xf32> to vector<16xf32>
    %352 = vector.shape_cast %351 : vector<16xf32> to vector<16x1xf32>
    %cst_108 = arith.constant 3.200000e+01 : f32
    %353 = vector.broadcast %cst_108 : f32 to vector<16x1xf32>
    %354 = arith.divf %352, %353 : vector<16x1xf32>
    %355 = vector.broadcast %354 : vector<16x1xf32> to vector<16x32xf32>
    %356 = arith.subf %348, %355 : vector<16x32xf32>
    %357 = arith.mulf %356, %356 : vector<16x32xf32>
    %cst_109 = arith.constant dense<0.000000e+00> : vector<16xf32>
    %358 = vector.multi_reduction <add>, %357, %cst_109 [1] : vector<16x32xf32> to vector<16xf32>
    %359 = vector.shape_cast %358 : vector<16xf32> to vector<16x1xf32>
    %cst_110 = arith.constant 3.200000e+01 : f32
    %360 = vector.broadcast %cst_110 : f32 to vector<16x1xf32>
    %361 = arith.divf %359, %360 : vector<16x1xf32>
    %cst_111 = arith.constant 9.99999974E-6 : f32
    %362 = vector.broadcast %cst_111 : f32 to vector<16x1xf32>
    %363 = arith.addf %361, %362 : vector<16x1xf32>
    %364 = math.rsqrt %363 : vector<16x1xf32>
    %365 = vector.broadcast %364 : vector<16x1xf32> to vector<16x32xf32>
    %366 = arith.mulf %356, %365 : vector<16x32xf32>
    %367 = vector.broadcast %349 : vector<1x32xf32> to vector<16x32xf32>
    %368 = arith.mulf %366, %367 : vector<16x32xf32>
    %369 = vector.broadcast %350 : vector<1x32xf32> to vector<16x32xf32>
    %370 = arith.addf %368, %369 : vector<16x32xf32>
    %371 = arith.truncf %370 : vector<16x32xf32> to vector<16x32xbf16>
    %c0_112 = arith.constant 0 : index
    %c0_113 = arith.constant 0 : index
    %372 = vector.load %arg23[%c0_112, %c0_113] : memref<32x64xbf16, #tpu.memory_space<vmem>>, vector<32x64xbf16>
    %cst_114 = arith.constant dense<0.000000e+00> : vector<16x64xf32>
    %373 = tpu.matmul %371, %372, %cst_114 {dimension_numbers = #tpu.dot_dimension_numbers<[1], [0], [0], [1], [0, 0, 1, 1], [], []>} : vector<16x32xbf16>, vector<32x64xbf16>, vector<16x64xf32> -> vector<16x64xf32>
    %c0_115 = arith.constant 0 : index
    %c0_116 = arith.constant 0 : index
    %374 = vector.load %arg24[%c0_115, %c0_116] : memref<1x64xf32, #tpu.memory_space<vmem>>, vector<1x64xf32>
    %375 = vector.broadcast %374 : vector<1x64xf32> to vector<16x64xf32>
    %376 = arith.addf %373, %375 : vector<16x64xf32>
    %cst_117 = arith.constant 0.000000e+00 : f32
    %377 = vector.broadcast %cst_117 : f32 to vector<16x64xf32>
    %378 = arith.maximumf %376, %377 : vector<16x64xf32>
    %379 = arith.truncf %378 : vector<16x64xf32> to vector<16x64xbf16>
    %c0_118 = arith.constant 0 : index
    %c0_119 = arith.constant 0 : index
    %380 = vector.load %arg25[%c0_118, %c0_119] : memref<64x32xbf16, #tpu.memory_space<vmem>>, vector<64x32xbf16>
    %cst_120 = arith.constant dense<0.000000e+00> : vector<16x32xf32>
    %381 = tpu.matmul %379, %380, %cst_120 {dimension_numbers = #tpu.dot_dimension_numbers<[1], [0], [0], [1], [0, 0, 1, 1], [], []>} : vector<16x64xbf16>, vector<64x32xbf16>, vector<16x32xf32> -> vector<16x32xf32>
    %c0_121 = arith.constant 0 : index
    %c0_122 = arith.constant 0 : index
    %382 = vector.load %arg26[%c0_121, %c0_122] : memref<1x32xf32, #tpu.memory_space<vmem>>, vector<1x32xf32>
    %383 = vector.broadcast %382 : vector<1x32xf32> to vector<16x32xf32>
    %384 = arith.addf %381, %383 : vector<16x32xf32>
    %385 = arith.addf %370, %384 : vector<16x32xf32>
    %c0_123 = arith.constant 0 : index
    %c0_124 = arith.constant 0 : index
    %386 = vector.load %arg27[%c0_123, %c0_124] : memref<1x32xf32, #tpu.memory_space<vmem>>, vector<1x32xf32>
    %c0_125 = arith.constant 0 : index
    %c0_126 = arith.constant 0 : index
    %387 = vector.load %arg28[%c0_125, %c0_126] : memref<1x32xf32, #tpu.memory_space<vmem>>, vector<1x32xf32>
    %cst_127 = arith.constant dense<0.000000e+00> : vector<16xf32>
    %388 = vector.multi_reduction <add>, %385, %cst_127 [1] : vector<16x32xf32> to vector<16xf32>
    %389 = vector.shape_cast %388 : vector<16xf32> to vector<16x1xf32>
    %cst_128 = arith.constant 3.200000e+01 : f32
    %390 = vector.broadcast %cst_128 : f32 to vector<16x1xf32>
    %391 = arith.divf %389, %390 : vector<16x1xf32>
    %392 = vector.broadcast %391 : vector<16x1xf32> to vector<16x32xf32>
    %393 = arith.subf %385, %392 : vector<16x32xf32>
    %394 = arith.mulf %393, %393 : vector<16x32xf32>
    %cst_129 = arith.constant dense<0.000000e+00> : vector<16xf32>
    %395 = vector.multi_reduction <add>, %394, %cst_129 [1] : vector<16x32xf32> to vector<16xf32>
    %396 = vector.shape_cast %395 : vector<16xf32> to vector<16x1xf32>
    %cst_130 = arith.constant 3.200000e+01 : f32
    %397 = vector.broadcast %cst_130 : f32 to vector<16x1xf32>
    %398 = arith.divf %396, %397 : vector<16x1xf32>
    %cst_131 = arith.constant 9.99999974E-6 : f32
    %399 = vector.broadcast %cst_131 : f32 to vector<16x1xf32>
    %400 = arith.addf %398, %399 : vector<16x1xf32>
    %401 = math.rsqrt %400 : vector<16x1xf32>
    %402 = vector.broadcast %401 : vector<16x1xf32> to vector<16x32xf32>
    %403 = arith.mulf %393, %402 : vector<16x32xf32>
    %404 = vector.broadcast %386 : vector<1x32xf32> to vector<16x32xf32>
    %405 = arith.mulf %403, %404 : vector<16x32xf32>
    %406 = vector.broadcast %387 : vector<1x32xf32> to vector<16x32xf32>
    %407 = arith.addf %405, %406 : vector<16x32xf32>
    %408 = vector.shape_cast %407 : vector<16x32xf32> to vector<2x8x32xf32>
    %c0_132 = arith.constant 0 : index
    %c0_133 = arith.constant 0 : index
    %c0_134 = arith.constant 0 : index
    %409 = vector.load %arg29[%c0_132, %c0_133, %c0_134] : memref<2x8x32xf32, #tpu.memory_space<vmem>>, vector<2x8x32xf32>
    tpu.vector_store %arg29[%c0_132, %c0_133, %c0_134], %408 {strides = array<i32>} : memref<2x8x32xf32, #tpu.memory_space<vmem>>, vector<2x8x32xf32>,
    return
  }
  func.func @transform_0(%arg0: i32) -> (i32, i32, i32) {
    %c0_i32 = arith.constant 0 : i32
    %c0_i32_0 = arith.constant 0 : i32
    %c0_i32_1 = arith.constant 0 : i32
    return %arg0, %c0_i32, %c0_i32_0 : i32, i32, i32
  }
  func.func @transform_1(%arg0: i32) -> (i32, i32, i32) {
    %c0_i32 = arith.constant 0 : i32
    %c0_i32_0 = arith.constant 0 : i32
    %c0_i32_1 = arith.constant 0 : i32
    return %arg0, %c0_i32, %c0_i32_0 : i32, i32, i32
  }
  func.func @transform_2(%arg0: i32) -> (i32, i32, i32) {
    %c0_i32 = arith.constant 0 : i32
    %c0_i32_0 = arith.constant 0 : i32
    %c0_i32_1 = arith.constant 0 : i32
    %c0_i32_2 = arith.constant 0 : i32
    return %c0_i32, %c0_i32_0, %c0_i32_1 : i32, i32, i32
  }
  func.func @transform_3(%arg0: i32) -> (i32, i32, i32) {
    %c0_i32 = arith.constant 0 : i32
    %c0_i32_0 = arith.constant 0 : i32
    %c0_i32_1 = arith.constant 0 : i32
    %c0_i32_2 = arith.constant 0 : i32
    return %c0_i32, %c0_i32_0, %c0_i32_1 : i32, i32, i32
  }
  func.func @transform_4(%arg0: i32) -> (i32, i32, i32) {
    %c0_i32 = arith.constant 0 : i32
    %c0_i32_0 = arith.constant 0 : i32
    %c0_i32_1 = arith.constant 0 : i32
    %c0_i32_2 = arith.constant 0 : i32
    return %c0_i32, %c0_i32_0, %c0_i32_1 : i32, i32, i32
  }
  func.func @transform_5(%arg0: i32) -> (i32, i32, i32) {
    %c0_i32 = arith.constant 0 : i32
    %c0_i32_0 = arith.constant 0 : i32
    %c0_i32_1 = arith.constant 0 : i32
    %c0_i32_2 = arith.constant 0 : i32
    return %c0_i32, %c0_i32_0, %c0_i32_1 : i32, i32, i32
  }
  func.func @transform_6(%arg0: i32) -> (i32, i32, i32) {
    %c0_i32 = arith.constant 0 : i32
    %c0_i32_0 = arith.constant 0 : i32
    %c0_i32_1 = arith.constant 0 : i32
    %c0_i32_2 = arith.constant 0 : i32
    return %c0_i32, %c0_i32_0, %c0_i32_1 : i32, i32, i32
  }
  func.func @transform_7(%arg0: i32) -> (i32, i32, i32) {
    %c0_i32 = arith.constant 0 : i32
    %c0_i32_0 = arith.constant 0 : i32
    %c0_i32_1 = arith.constant 0 : i32
    %c0_i32_2 = arith.constant 0 : i32
    return %c0_i32, %c0_i32_0, %c0_i32_1 : i32, i32, i32
  }
  func.func @transform_8(%arg0: i32) -> (i32, i32, i32) {
    %c0_i32 = arith.constant 0 : i32
    %c0_i32_0 = arith.constant 0 : i32
    %c0_i32_1 = arith.constant 0 : i32
    %c0_i32_2 = arith.constant 0 : i32
    return %c0_i32, %c0_i32_0, %c0_i32_1 : i32, i32, i32
  }
  func.func @transform_9(%arg0: i32) -> (i32, i32) {
    %c0_i32 = arith.constant 0 : i32
    %c0_i32_0 = arith.constant 0 : i32
    %c0_i32_1 = arith.constant 0 : i32
    return %c0_i32, %c0_i32_0 : i32, i32
  }
  func.func @transform_10(%arg0: i32) -> (i32, i32) {
    %c0_i32 = arith.constant 0 : i32
    %c0_i32_0 = arith.constant 0 : i32
    %c0_i32_1 = arith.constant 0 : i32
    return %c0_i32, %c0_i32_0 : i32, i32
  }
  func.func @transform_11(%arg0: i32) -> (i32, i32) {
    %c0_i32 = arith.constant 0 : i32
    %c0_i32_0 = arith.constant 0 : i32
    %c0_i32_1 = arith.constant 0 : i32
    return %c0_i32, %c0_i32_0 : i32, i32
  }
  func.func @transform_12(%arg0: i32) -> (i32, i32, i32) {
    %c0_i32 = arith.constant 0 : i32
    %c0_i32_0 = arith.constant 0 : i32
    %c0_i32_1 = arith.constant 0 : i32
    %c0_i32_2 = arith.constant 0 : i32
    return %c0_i32, %c0_i32_0, %c0_i32_1 : i32, i32, i32
  }
  func.func @transform_13(%arg0: i32) -> (i32, i32, i32) {
    %c0_i32 = arith.constant 0 : i32
    %c0_i32_0 = arith.constant 0 : i32
    %c0_i32_1 = arith.constant 0 : i32
    %c0_i32_2 = arith.constant 0 : i32
    return %c0_i32, %c0_i32_0, %c0_i32_1 : i32, i32, i32
  }
  func.func @transform_14(%arg0: i32) -> (i32, i32, i32) {
    %c0_i32 = arith.constant 0 : i32
    %c0_i32_0 = arith.constant 0 : i32
    %c0_i32_1 = arith.constant 0 : i32
    %c0_i32_2 = arith.constant 0 : i32
    return %c0_i32, %c0_i32_0, %c0_i32_1 : i32, i32, i32
  }
  func.func @transform_15(%arg0: i32) -> (i32, i32, i32) {
    %c0_i32 = arith.constant 0 : i32
    %c0_i32_0 = arith.constant 0 : i32
    %c0_i32_1 = arith.constant 0 : i32
    %c0_i32_2 = arith.constant 0 : i32
    return %c0_i32, %c0_i32_0, %c0_i32_1 : i32, i32, i32
  }
  func.func @transform_16(%arg0: i32) -> (i32, i32, i32) {
    %c0_i32 = arith.constant 0 : i32
    %c0_i32_0 = arith.constant 0 : i32
    %c0_i32_1 = arith.constant 0 : i32
    %c0_i32_2 = arith.constant 0 : i32
    return %c0_i32, %c0_i32_0, %c0_i32_1 : i32, i32, i32
  }
  func.func @transform_17(%arg0: i32) -> (i32, i32, i32) {
    %c0_i32 = arith.constant 0 : i32
    %c0_i32_0 = arith.constant 0 : i32
    %c0_i32_1 = arith.constant 0 : i32
    %c0_i32_2 = arith.constant 0 : i32
    return %c0_i32, %c0_i32_0, %c0_i32_1 : i32, i32, i32
  }
  func.func @transform_18(%arg0: i32) -> (i32, i32, i32) {
    %c0_i32 = arith.constant 0 : i32
    %c0_i32_0 = arith.constant 0 : i32
    %c0_i32_1 = arith.constant 0 : i32
    %c0_i32_2 = arith.constant 0 : i32
    return %c0_i32, %c0_i32_0, %c0_i32_1 : i32, i32, i32
  }
  func.func @transform_19(%arg0: i32) -> (i32, i32) {
    %c0_i32 = arith.constant 0 : i32
    %c0_i32_0 = arith.constant 0 : i32
    %c0_i32_1 = arith.constant 0 : i32
    return %c0_i32, %c0_i32_0 : i32, i32
  }
  func.func @transform_20(%arg0: i32) -> (i32, i32) {
    %c0_i32 = arith.constant 0 : i32
    %c0_i32_0 = arith.constant 0 : i32
    %c0_i32_1 = arith.constant 0 : i32
    return %c0_i32, %c0_i32_0 : i32, i32
  }
  func.func @transform_21(%arg0: i32) -> (i32, i32) {
    %c0_i32 = arith.constant 0 : i32
    %c0_i32_0 = arith.constant 0 : i32
    %c0_i32_1 = arith.constant 0 : i32
    return %c0_i32, %c0_i32_0 : i32, i32
  }
  func.func @transform_22(%arg0: i32) -> (i32, i32) {
    %c0_i32 = arith.constant 0 : i32
    %c0_i32_0 = arith.constant 0 : i32
    %c0_i32_1 = arith.constant 0 : i32
    return %c0_i32, %c0_i32_0 : i32, i32
  }
  func.func @transform_23(%arg0: i32) -> (i32, i32) {
    %c0_i32 = arith.constant 0 : i32
    %c0_i32_0 = arith.constant 0 : i32
    %c0_i32_1 = arith.constant 0 : i32
    return %c0_i32, %c0_i32_0 : i32, i32
  }
  func.func @transform_24(%arg0: i32) -> (i32, i32) {
    %c0_i32 = arith.constant 0 : i32
    %c0_i32_0 = arith.constant 0 : i32
    %c0_i32_1 = arith.constant 0 : i32
    return %c0_i32, %c0_i32_0 : i32, i32
  }
  func.func @transform_25(%arg0: i32) -> (i32, i32) {
    %c0_i32 = arith.constant 0 : i32
    %c0_i32_0 = arith.constant 0 : i32
    %c0_i32_1 = arith.constant 0 : i32
    return %c0_i32, %c0_i32_0 : i32, i32
  }
  func.func @transform_26(%arg0: i32) -> (i32, i32) {
    %c0_i32 = arith.constant 0 : i32
    %c0_i32_0 = arith.constant 0 : i32
    %c0_i32_1 = arith.constant 0 : i32
    return %c0_i32, %c0_i32_0 : i32, i32
  }
  func.func @transform_27(%arg0: i32) -> (i32, i32) {
    %c0_i32 = arith.constant 0 : i32
    %c0_i32_0 = arith.constant 0 : i32
    %c0_i32_1 = arith.constant 0 : i32
    return %c0_i32, %c0_i32_0 : i32, i32
  }
  func.func @transform_28(%arg0: i32) -> (i32, i32, i32) {
    %c0_i32 = arith.constant 0 : i32
    %c0_i32_0 = arith.constant 0 : i32
    %c0_i32_1 = arith.constant 0 : i32
    return %arg0, %c0_i32, %c0_i32_0 : i32, i32, i32
  }
}

</mosaic_0001>

<bundles_post_ra>
// kernel: tpu_custom_call.1
= control target key start
LH: loop header
LB: loop body
LE: loop exit
PB: predicated region body
PF: predicated region fallthrough
CT: control target
= control target key end

     0   :  { %s6105_s0 = inlined_call_operand.vmem [shape: f32[2,8,32], index: 0, kind: input, shape index: {}]   ;;  %s6106_s1 = inlined_call_operand.vmem [shape: f32[2,16,32], index: 1, kind: input, shape index: {}]   ;;  %s6107_s2 = inlined_call_operand.vmem [shape: bf16[4,32,8], index: 2, kind: input, shape index: {}]   ;;  %s6108_s3 = inlined_call_operand.vmem [shape: f32[4,1,8], index: 3, kind: input, shape index: {}]   ;;  %s6109_s4 = inlined_call_operand.vmem [shape: bf16[4,32,8], index: 4, kind: input, shape index: {}]   ;;  %s6110_s5 = inlined_call_operand.vmem [shape: f32[4,1,8], index: 5, kind: input, shape index: {}]   ;;  %s6111_s6 = inlined_call_operand.vmem [shape: bf16[4,32,8], index: 6, kind: input, shape index: {}]   ;;  %s6112_s7 = inlined_call_operand.vmem [shape: f32[4,1,8], index: 7, kind: input, shape index: {}]   ;;  %s6113_s8 = inlined_call_operand.vmem [shape: bf16[4,8,32], index: 8, kind: input, shape index: {}]   ;;  %s6114_s9 = inlined_call_operand.vmem [shape: f32[1,32], index: 9, kind: input, shape index: {}]   ;;  %s6115_s10 = inlined_call_operand.vmem [shape: f32[1,32], index: 10, kind: input, shape index: {}]   ;;  %s6116_s11 = inlined_call_operand.vmem [shape: f32[1,32], index: 11, kind: input, shape index: {}]   ;;  %s6117_s12 = inlined_call_operand.vmem [shape: bf16[4,32,8], index: 12, kind: input, shape index: {}]   ;;  %s6118_s13 = inlined_call_operand.vmem [shape: f32[4,1,8], index: 13, kind: input, shape index: {}]   ;;  %s6119_s14 = inlined_call_operand.vmem [shape: bf16[4,32,8], index: 14, kind: input, shape index: {}]   ;;  %s6120_s15 = inlined_call_operand.vmem [shape: f32[4,1,8], index: 15, kind: input, shape index: {}]   ;;  %s6121_s16 = inlined_call_operand.vmem [shape: bf16[4,32,8], index: 16, kind: input, shape index: {}]   ;;  %s6122_s17 = inlined_call_operand.vmem [shape: f32[4,1,8], index: 17, kind: input, shape index: {}]   ;;  %s6123_s18 = inlined_call_operand.vmem [shape: bf16[4,8,32], index: 18, kind: input, shape index: {}]   ;;  %s6124_s19 = inlined_call_operand.vmem [shape: f32[1,32], index: 19, kind: input, shape index: {}]   ;;  %s6125_s20 = inlined_call_operand.vmem [shape: f32[1,32], index: 20, kind: input, shape index: {}]   ;;  %s6126_s21 = inlined_call_operand.vmem [shape: f32[1,32], index: 21, kind: input, shape index: {}]   ;;  %s6127_s22 = inlined_call_operand.vmem [shape: bf16[32,64], index: 22, kind: input, shape index: {}]   ;;  %s6128_s23 = inlined_call_operand.vmem [shape: f32[1,64], index: 23, kind: input, shape index: {}]   ;;  %s6129_s24 = inlined_call_operand.vmem [shape: bf16[64,32], index: 24, kind: input, shape index: {}]   ;;  %s6130_s25 = inlined_call_operand.vmem [shape: f32[1,32], index: 25, kind: input, shape index: {}]   ;;  %s6131_s26 = inlined_call_operand.vmem [shape: f32[1,32], index: 26, kind: input, shape index: {}]   ;;  %s6132_s27 = inlined_call_operand.vmem [shape: f32[1,32], index: 27, kind: input, shape index: {}]   ;;  %s6133_s28 = inlined_call_operand.hbm [shape: f32[2,8,32], index: 28, kind: output, shape index: {}]  }
   0x1   :  { %6144 = sst [smem:[#allocation5_spill]] %s6105_s0 }
   0x2   :  { %6145 = sst [smem:[#allocation6_spill]] %s6106_s1 }
   0x3   :  { %6146 = sst [smem:[#allocation7_spill]] %s6107_s2 }
   0x4   :  { %6147 = sst [smem:[#allocation8_spill]] %s6108_s3 }
   0x5   :  { %6148 = sst [smem:[#allocation9_spill]] %s6109_s4 }
   0x6   :  { %6149 = sst [smem:[#allocation10_spill]] %s6110_s5 }
   0x7   :  { %6150 = sst [smem:[#allocation11_spill]] %s6111_s6 }
   0x8   :  { %6151 = sst [smem:[#allocation12_spill]] %s6112_s7 }
   0x9   :  { %6152 = sst [smem:[#allocation13_spill]] %s6113_s8 }
   0xa   :  { %6153 = sst [smem:[#allocation14_spill]] %s6114_s9 }
   0xb   :  { %6154 = sst [smem:[#allocation15_spill]] %s6115_s10 }
   0xc   :  { %6155 = sst [smem:[#allocation16_spill]] %s6116_s11 }
   0xd   :  { %6156 = sst [smem:[#allocation17_spill]] %s6117_s12 }
   0xe   :  { %s6157_s9 = sld [smem:[#allocation7_spill]]  ;;  %v5109_v1 = vmov 0.0   ;;  %s6158_s6 = sld [smem:[#allocation9_spill]]  ;;  %vm5110_vm0 = vmmov 0   ;;  %vm187_vm1 = vcmask 261120  }
   0xf   :  { %4495 = vmatprep.subr.bf16.mxu0 %v5109_v1  ;;  %4503 = vmatprep.subr.bf16.mxu1 %v5109_v1  ;;  %s6159_s12 = sld [smem:[#allocation5_spill]]  ;;  %s6160_s30 = sld [smem:[#allocation11_spill]] }
  0x10   :  { %4499 = vmatprep.mubr.msk.bf16.mxu0 %vm5110_vm0, %v5109_v1  ;;  %4507 = vmatprep.mubr.msk.bf16.mxu1 %vm5110_vm0, %v5109_v1 }
  0x14   :  { %v4953_v0 = vld [vmem:[%s6157_s9] sm:$0xff]   ;;  %v4955_v3 = vld [vmem:[%s6157_s9 + $0x8] sm:$0xff]   ;;  %v4958_v9 = vld [vmem:[%s6157_s9 + $0x10] sm:$0xff]  }
  0x15   :  { %v4954_v2 = vld [vmem:[%s6158_s6] sm:$0xff]   ;;  %4496 = vmatpush3.bf16.msra.mxu0 %v4953_v0  ;;  %v4956_v4 = vld [vmem:[%s6158_s6 + $0x8] sm:$0xff]   ;;  %v4960_v11 = vld [vmem:[%s6157_s9 + $0x18] sm:$0xff]  }
  0x16   :  { %4504 = vmatpush3.bf16.msra.mxu1 %v4954_v2  ;;  %4497 = vmatprep.subr.bf16.mxu0 %v5109_v1  ;;  %v91_v5 = vld [vmem:[%s6159_s12] sm:$0xff]  ;;  %v92_v6 = vld [vmem:[%s6159_s12 + $0x8] sm:$0xff]  ;;  %v4961_v12 = vld [vmem:[%s6158_s6 + $0x10] sm:$0xff]  }
  0x17   :  { %4505 = vmatprep.subr.bf16.mxu1 %v5109_v1  ;;  %v5286_v7 = vpack.c.bf16 %v92_v6, %v91_v5  ;;  %v4957_v8 = vld [vmem:[%s6160_s30] sm:$0xff]   ;;  %v4959_v10 = vld [vmem:[%s6160_s30 + $0x8] sm:$0xff]   ;;  %v4962_v13 = vld [vmem:[%s6160_s30 + $0x10] sm:$0xff]  }
  0x18   :  { %v4963_v14 = vld [vmem:[%s6158_s6 + $0x18] sm:$0xff]   ;;  %v4965_v16 = vld [vmem:[%s6157_s9 + $0x20] sm:$0xff]   ;;  %v4967_v18 = vld [vmem:[%s6157_s9 + $0x28] sm:$0xff]  }
  0x19   :  { %4498 = vmatpush3.bf16.msra.mxu0 %v4955_v3  ;;  %v4964_v15 = vld [vmem:[%s6160_s30 + $0x18] sm:$0xff]   ;;  %v4966_v17 = vld [vmem:[%s6158_s6 + $0x20] sm:$0xff]   ;;  %v4968_v19 = vld [vmem:[%s6158_s6 + $0x28] sm:$0xff]  }
  0x1a   :  { %4506 = vmatpush3.bf16.msra.mxu1 %v4956_v4  ;;  %4511 = vmatprep.subr.bf16.mxu0 %v5109_v1  ;;  %v4969_v20 = vld [vmem:[%s6160_s30 + $0x20] sm:$0xff]   ;;  %v4973_v21 = vld [vmem:[%s6157_s9 + $0x30] sm:$0xff]   ;;  %v4970_v22 = vld [vmem:[%s6160_s30 + $0x28] sm:$0xff]  }
  0x1b   :  { %4519 = vmatprep.subr.bf16.mxu1 %v5109_v1  ;;  %v4974_v23 = vld [vmem:[%s6157_s9 + $0x38] sm:$0xff]   ;;  %v4971_v24 = vld [vmem:[%s6158_s6 + $0x30] sm:$0xff]  }
  0x1c   :  { %4500 = vmatmul.mubr.msk.bf16.vlgmr.msra.gmra.mrb[0].mxu0 %vm187_vm1, %v5286_v7  ;;  %v4975_v25 = vld [vmem:[%s6160_s30 + $0x30] sm:$0xff]   ;;  %v4972_v26 = vld [vmem:[%s6158_s6 + $0x38] sm:$0xff]  }
  0x1d   :  { %4508 = vmatmul.mubr.msk.bf16.vlgmr.msra.gmra.mrb[0].mxu1 %vm187_vm1, %v5286_v7  ;;  %4512 = vmatpush3.bf16.msra.mxu0 %v4957_v8  ;;  %v4976_v27 = vld [vmem:[%s6160_s30 + $0x38] sm:$0xff]  }
  0x1e   :  { %4520 = vmatpush3.bf16.msra.mxu1 %v4958_v9  ;;  %4513 = vmatprep.subr.bf16.mxu0 %v5109_v1 }
  0x1f   :  { %4521 = vmatprep.subr.bf16.mxu1 %v5109_v1  ;;  %4515 = vmatprep.mubr.msk.bf16.mxu0 %vm5110_vm0, %v5109_v1 }
  0x20   :  { %4523 = vmatprep.mubr.msk.bf16.mxu1 %vm5110_vm0, %v5109_v1 }
  0x21   :  { %4514 = vmatpush3.bf16.msra.mxu0 %v4959_v10 }
  0x22   :  { %4522 = vmatpush3.bf16.msra.mxu1 %v4960_v11  ;;  %4527 = vmatprep.subr.bf16.mxu0 %v5109_v1 }
  0x23   :  { %4535 = vmatprep.subr.bf16.mxu1 %v5109_v1 }
  0x24   :  { %4516 = vmatmul.mubr.msk.bf16.vlgmr.msra.gmra.mrb[4].mxu0 %vm187_vm1, %v5286_v7 }
  0x25   :  { %4524 = vmatmul.mubr.msk.bf16.vlgmr.msra.gmra.mrb[4].mxu1 %vm187_vm1, %v5286_v7  ;;  %4528 = vmatpush3.bf16.msra.mxu0 %v4961_v12 }
  0x26   :  { %4536 = vmatpush3.bf16.msra.mxu1 %v4962_v13  ;;  %4529 = vmatprep.subr.bf16.mxu0 %v5109_v1 }
  0x27   :  { %4537 = vmatprep.subr.bf16.mxu1 %v5109_v1  ;;  %4531 = vmatprep.mubr.msk.bf16.mxu0 %vm5110_vm0, %v5109_v1 }
  0x28   :  { %4539 = vmatprep.mubr.msk.bf16.mxu1 %vm5110_vm0, %v5109_v1 }
  0x29   :  { %4530 = vmatpush3.bf16.msra.mxu0 %v4963_v14 }
  0x2a   :  { %4538 = vmatpush3.bf16.msra.mxu1 %v4964_v15  ;;  %4543 = vmatprep.subr.bf16.mxu0 %v5109_v1 }
  0x2b   :  { %4551 = vmatprep.subr.bf16.mxu1 %v5109_v1 }
  0x2c   :  { %4532 = vmatmul.mubr.msk.bf16.vlgmr.msra.gmra.mrb[8].mxu0 %vm187_vm1, %v5286_v7 }
  0x2d   :  { %4540 = vmatmul.mubr.msk.bf16.vlgmr.msra.gmra.mrb[8].mxu1 %vm187_vm1, %v5286_v7  ;;  %4544 = vmatpush3.bf16.msra.mxu0 %v4965_v16 }
  0x2e   :  { %4552 = vmatpush3.bf16.msra.mxu1 %v4966_v17  ;;  %4545 = vmatprep.subr.bf16.mxu0 %v5109_v1 }
  0x2f   :  { %4553 = vmatprep.subr.bf16.mxu1 %v5109_v1  ;;  %4547 = vmatprep.mubr.msk.bf16.mxu0 %vm5110_vm0, %v5109_v1 }
  0x30   :  { %4555 = vmatprep.mubr.msk.bf16.mxu1 %vm5110_vm0, %v5109_v1 }
  0x31   :  { %4546 = vmatpush3.bf16.msra.mxu0 %v4967_v18 }
  0x32   :  { %4554 = vmatpush3.bf16.msra.mxu1 %v4968_v19  ;;  %4559 = vmatprep.subr.bf16.mxu0 %v5109_v1 }
  0x33   :  { %4567 = vmatprep.subr.bf16.mxu1 %v5109_v1 }
  0x34   :  { %4548 = vmatmul.mubr.msk.bf16.vlgmr.msra.gmra.mrb[12].mxu0 %vm187_vm1, %v5286_v7 }
  0x35   :  { %4556 = vmatmul.mubr.msk.bf16.vlgmr.msra.gmra.mrb[12].mxu1 %vm187_vm1, %v5286_v7  ;;  %4560 = vmatpush3.bf16.msra.mxu0 %v4969_v20 }
  0x36   :  { %4561 = vmatprep.subr.bf16.mxu0 %v5109_v1  ;;  %4563 = vmatprep.mubr.msk.bf16.mxu0 %vm5110_vm0, %v5109_v1 }
  0x37   :  { %4568 = vmatpush3.bf16.msra.mxu1 %v4973_v21  ;;  %4571 = vmatprep.mubr.msk.bf16.mxu1 %vm5110_vm0, %v5109_v1 }
  0x38   :  { %4569 = vmatprep.subr.bf16.mxu1 %v5109_v1 }
  0x39   :  { %4562 = vmatpush3.bf16.msra.mxu0 %v4970_v22 }
  0x3a   :  { %4575 = vmatprep.subr.bf16.mxu0 %v5109_v1 }
  0x3b   :  { %4570 = vmatpush3.bf16.msra.mxu1 %v4974_v23 }
  0x3c   :  { %4564 = vmatmul.mubr.msk.bf16.vlgmr.msra.gmra.mrb[16].mxu0 %vm187_vm1, %v5286_v7  ;;  %4583 = vmatprep.subr.bf16.mxu1 %v5109_v1 }
  0x3d   :  { %4576 = vmatpush3.bf16.msra.mxu0 %v4971_v24  ;;  %4579 = vmatprep.mubr.msk.bf16.mxu0 %vm5110_vm0, %v5109_v1 }
  0x3e   :  { %4577 = vmatprep.subr.bf16.mxu0 %v5109_v1  ;;  %4572 = vmatmul.mubr.msk.bf16.vlgmr.msra.gmra.mrb[16].mxu1 %vm187_vm1, %v5286_v7 }
  0x3f   :  { %4584 = vmatpush3.bf16.msra.mxu1 %v4975_v25  ;;  %4587 = vmatprep.mubr.msk.bf16.mxu1 %vm5110_vm0, %v5109_v1 }
  0x40   :  { %4585 = vmatprep.subr.bf16.mxu1 %v5109_v1 }
  0x41   :  { %33 = vsyncpa [#allocation3], 0  ;;  %4578 = vmatpush3.bf16.msra.mxu0 %v4972_v26  ;;  %s6161_s29 = sld [smem:[#allocation10_spill]]  ;;  %vm897_vm2 = vcmask 64512   ;;  %s6162_s1 = sld [smem:[#allocation8_spill]]  ;;  %vm1389_vm3 = vcmask 1043456  }
  0x42   :  { %4591 = vmatprep.subr.bf16.mxu0 %v5109_v1  ;;  %s6163_s4 = sld [smem:[#allocation12_spill]]  ;;  %s6164_s30 = sld [smem:[#allocation13_spill]]  ;;  %vm3247_vm5 = vcmask 130048   ;;  %vm4056_vm6 = vcmask 523264  }
  0x43   :  { %4586 = vmatpush3.bf16.msra.mxu1 %v4976_v27  ;;  %s6165_s9 = sld [smem:[#allocation14_spill]]  ;;  %s6168_s11 = sld [smem:[#allocation15_spill]] }
  0x44   :  { %4580 = vmatmul.mubr.msk.bf16.vlgmr.msra.gmra.mrb[20].mxu0 %vm187_vm1, %v5286_v7  ;;  %4597 = vmatprep.subr.bf16.mxu1 %v5109_v1  ;;  %s6166_s5 = sld [smem:[#allocation6_spill]]  ;;  %s6169_s2 = sld [smem:[#allocation16_spill]] }
  0x45   :  { %4593 = vmatprep.mubr.msk.bf16.mxu0 %vm5110_vm0, %v5109_v1 }
  0x46   :  { %4588 = vmatmul.mubr.msk.bf16.vlgmr.msra.gmra.mrb[20].mxu1 %vm187_vm1, %v5286_v7 }
  0x47   :  { %4599 = vmatprep.mubr.msk.bf16.mxu1 %vm5110_vm0, %v5109_v1  ;;  %v4169_v28 = vld [vmem:[%s6161_s29] ss:$0 sm:$0xff]  ;;  %v4181_v56 = vld [vmem:[%s6161_s29 + $0x1] ss:$0 sm:$0xff]  ;;  %v4193_v10 = vld [vmem:[%s6161_s29 + $0x2] ss:$0 sm:$0xff] }
  0x48   :  { %v4165_v40 = vld [vmem:[%s6162_s1] ss:$0 sm:$0xff]  ;;  %v4177_v4 = vld [vmem:[%s6162_s1 + $0x1] ss:$0 sm:$0xff]  ;;  %v4189_v25 = vld [vmem:[%s6162_s1 + $0x2] ss:$0 sm:$0xff] }
  0xef   :  { %v225_v29 = vpop.f32.mrb[0].mxu0 }
  0xf0   :  { %v284_v30 = vpop.f32.mrb[0].mxu1  ;;  %v4501_v31 = vpop.f32.mrb[1].mxu0  ;;  %v226_v43 = vadd.f32 %v4165_v40, %v225_v29 }
  0xf1   :  { %v285_v32 = vadd.f32 %v4169_v28, %v284_v30  ;;  %v4509_v33 = vpop.f32.mrb[1].mxu1  ;;  %v228_v34 = vpop.f32.mrb[2].mxu0 }
  0xf2   :  { %v287_v35 = vpop.f32.mrb[2].mxu1  ;;  %v4502_v36 = vpop.f32.mrb[3].mxu0  ;;  %v229_v48 = vadd.f32 %v4165_v40, %v228_v34  ;;  %v881_v53 = vpack.c.bf16 %v226_v43, %v226_v43 }
  0xf3   :  { %v889_v37 = vpack.c.bf16 %v285_v32, %v285_v32  ;;  %v288_v38 = vadd.f32 %v4169_v28, %v287_v35  ;;  %v4510_v39 = vpop.f32.mrb[3].mxu1 }
  0xf4   :  { %v882_v55 = vpack.c.bf16 %v229_v48, %v229_v48  ;;  %v4201_v48 = vld [vmem:[%s6162_s1 + $0x3] ss:$0 sm:$0xff] }
  0xf5   :  { %v902_v41 = vsel %vm897_vm2, %v889_v37, 0  ;;  %v890_v42 = vpack.c.bf16 %v288_v38, %v288_v38 }
  0xf6   :  { %4592 = vmatpush3.bf16.xpose.msra.mxu0 %v902_v41  ;;  %v4205_v41 = vld [vmem:[%s6161_s29 + $0x3] ss:$0 sm:$0xff] }
  0xf7   :  { %v948_v44 = vsel %vm897_vm2, %v890_v42, 0  ;;  %v5426_v45 = vpop.f32.mrb[4].mxu0  ;;  %4603 = vmatprep.subr.bf16.mxu0 %v5109_v1 }
  0xf8   :  { %4598 = vmatpush3.bf16.xpose.msra.mxu1 %v948_v44  ;;  %v4517_v46 = vpop.f32.mrb[5].mxu0  ;;  %v402_v47 = vpop.f32.mrb[4].mxu1 }
  0xf9   :  { %v5429_v49 = vpop.f32.mrb[6].mxu0  ;;  %v4525_v50 = vpop.f32.mrb[5].mxu1  ;;  %4609 = vmatprep.subr.bf16.mxu1 %v5109_v1  ;;  %v403_v8 = vadd.f32 %v4177_v4, %v402_v47  ;;  %v4173_v46 = vld [vmem:[%s6163_s4] ss:$0 sm:$0xff] }
  0xfa   :  { %v4518_v51 = vpop.f32.mrb[7].mxu0  ;;  %v405_v52 = vpop.f32.mrb[6].mxu1 }
  0xfb   :  { %v4526_v54 = vpop.f32.mrb[7].mxu1  ;;  %v406_v12 = vadd.f32 %v4177_v4, %v405_v52  ;;  %v883_v18 = vpack.c.bf16 %v403_v8, %v403_v8 }
  0xfd   :  { %4594 = vmatmul.mubr.msk.bf16.vlgmr.msra.gmra.mrb[24].mxu0 %vm897_vm2, %v881_v53  ;;  %v884_v24 = vpack.c.bf16 %v406_v12, %v406_v12 }
  0xfe   :  { %4605 = vmatprep.mubr.msk.bf16.mxu0 %vm5110_vm0, %v5109_v1 }
  0xff   :  { %4600 = vmatmul.mubr.msk.bf16.vlgmr.msra.gmra.mrb[24].mxu1 %vm897_vm2, %v882_v55  ;;  %v461_v57 = vpop.f32.mrb[8].mxu0 }
 0x100   :  { %v462_v58 = vadd.f32 %v4181_v56, %v461_v57  ;;  %v4533_v59 = vpop.f32.mrb[9].mxu0  ;;  %v5439_v60 = vpop.f32.mrb[8].mxu1  ;;  %4611 = vmatprep.mubr.msk.bf16.mxu1 %vm5110_vm0, %v5109_v1 }
 0x101   :  { %v464_v61 = vpop.f32.mrb[10].mxu0  ;;  %v4541_v62 = vpop.f32.mrb[9].mxu1 }
 0x102   :  { %v891_v63 = vpack.c.bf16 %v462_v58, %v462_v58  ;;  %v465_v0 = vadd.f32 %v4181_v56, %v464_v61  ;;  %v4534_v2 = vpop.f32.mrb[11].mxu0  ;;  %v5443_v3 = vpop.f32.mrb[10].mxu1  ;;  %v344_v56 = vadd.f32 %v4173_v46, %v5426_v45  ;;  %v347_v62 = vadd.f32 %v4173_v46, %v5429_v49 }
 0x103   :  { %v4542_v5 = vpop.f32.mrb[11].mxu1 }
 0x104   :  { %v994_v6 = vsel %vm897_vm2, %v891_v63, 0  ;;  %v892_v7 = vpack.c.bf16 %v465_v0, %v465_v0  ;;  %v1378_v0 = vpack.c.bf16 %v344_v56, %v344_v56  ;;  %v1379_v45 = vpack.c.bf16 %v347_v62, %v347_v62 }
 0x105   :  { %4604 = vmatpush3.bf16.xpose.msra.mxu0 %v994_v6 }
 0x106   :  { %v1040_v9 = vsel %vm897_vm2, %v892_v7, 0  ;;  %4615 = vmatprep.subr.bf16.mxu0 %v5109_v1  ;;  %v1391_v5 = vsel %vm1389_vm3, %v1378_v0, 0  ;;  %v1437_v49 = vsel %vm1389_vm3, %v1379_v45, 0  ;;  %v97_v7 = vlaneseq }
 0x107   :  { %v579_v11 = vpop.f32.mrb[12].mxu0  ;;  %4610 = vmatpush3.bf16.xpose.msra.mxu1 %v1040_v9 }
 0x108   :  { %v638_v13 = vpop.f32.mrb[12].mxu1  ;;  %v4549_v14 = vpop.f32.mrb[13].mxu0  ;;  %4621 = vmatprep.subr.bf16.mxu1 %v5109_v1  ;;  %v580_v28 = vadd.f32 %v4189_v25, %v579_v11  ;;  %v98_v8 = vshrl.u32 %v97_v7, 7  ;;  %v100_v9 = vand.u32 127, %v97_v7  ;;  %v5111_v11 = vmov -1e+09  }
 0x109   :  { %v639_v15 = vadd.f32 %v4193_v10, %v638_v13  ;;  %v4557_v16 = vpop.f32.mrb[13].mxu1  ;;  %v582_v17 = vpop.f32.mrb[14].mxu0 }
 0x10a   :  { %v641_v19 = vpop.f32.mrb[14].mxu1  ;;  %v4550_v20 = vpop.f32.mrb[15].mxu0  ;;  %v583_v32 = vadd.f32 %v4189_v25, %v582_v17  ;;  %v885_v37 = vpack.c.bf16 %v580_v28, %v580_v28  ;;  %vm101_vm4 = vcmp.ge.s32.totalorder %v98_v8, %v100_v9 }
 0x10b   :  { %v893_v21 = vpack.c.bf16 %v639_v15, %v639_v15  ;;  %v642_v22 = vadd.f32 %v4193_v10, %v641_v19  ;;  %v4558_v23 = vpop.f32.mrb[15].mxu1  ;;  %v102_v12 = vsel %vm101_vm4, 0.0, %v5111_v11 }
 0x10c   :  { %4606 = vmatmul.mubr.msk.bf16.vlgmr.msra.gmra.mrb[28].mxu0 %vm897_vm2, %v883_v18  ;;  %v886_v40 = vpack.c.bf16 %v583_v32, %v583_v32 }
 0x10d   :  { %v1086_v26 = vsel %vm897_vm2, %v893_v21, 0  ;;  %v894_v27 = vpack.c.bf16 %v642_v22, %v642_v22  ;;  %4617 = vmatprep.mubr.msk.bf16.mxu0 %vm5110_vm0, %v5109_v1 }
 0x10e   :  { %4616 = vmatpush3.bf16.xpose.msra.mxu0 %v1086_v26  ;;  %4612 = vmatmul.mubr.msk.bf16.vlgmr.msra.gmra.mrb[28].mxu1 %vm897_vm2, %v884_v24 }
 0x10f   :  { %v1132_v29 = vsel %vm897_vm2, %v894_v27, 0  ;;  %v5464_v30 = vpop.f32.mrb[16].mxu0  ;;  %4623 = vmatprep.mubr.msk.bf16.mxu1 %vm5110_vm0, %v5109_v1  ;;  %4627 = vmatprep.subr.bf16.mxu0 %v5109_v1 }
 0x110   :  { %4622 = vmatpush3.bf16.xpose.msra.mxu1 %v1132_v29  ;;  %v4565_v31 = vpop.f32.mrb[17].mxu0 }
 0x111   :  { %v5469_v33 = vpop.f32.mrb[18].mxu0  ;;  %v756_v34 = vpop.f32.mrb[16].mxu1  ;;  %4633 = vmatprep.subr.bf16.mxu1 %v5109_v1 }
 0x112   :  { %v4566_v35 = vpop.f32.mrb[19].mxu0  ;;  %v4573_v36 = vpop.f32.mrb[17].mxu1  ;;  %v757_v59 = vadd.f32 %v4201_v48, %v756_v34 }
 0x113   :  { %v759_v38 = vpop.f32.mrb[18].mxu1 }
 0x114   :  { %v4574_v39 = vpop.f32.mrb[19].mxu1  ;;  %v887_v2 = vpack.c.bf16 %v757_v59, %v757_v59  ;;  %v760_v4 = vadd.f32 %v4201_v48, %v759_v38 }
 0x115   :  { %4618 = vmatmul.mubr.msk.bf16.vlgmr.msra.gmra.mrb[32].mxu0 %vm897_vm2, %v885_v37 }
 0x116   :  { %4629 = vmatprep.mubr.msk.bf16.mxu0 %vm5110_vm0, %v5109_v1  ;;  %v888_v6 = vpack.c.bf16 %v760_v4, %v760_v4 }
 0x117   :  { %4624 = vmatmul.mubr.msk.bf16.vlgmr.msra.gmra.mrb[32].mxu1 %vm897_vm2, %v886_v40  ;;  %v815_v42 = vpop.f32.mrb[20].mxu0 }
 0x118   :  { %v816_v43 = vadd.f32 %v4205_v41, %v815_v42  ;;  %v4581_v44 = vpop.f32.mrb[21].mxu0  ;;  %4635 = vmatprep.mubr.msk.bf16.mxu1 %vm5110_vm0, %v5109_v1 }
 0x119   :  { %v818_v47 = vpop.f32.mrb[22].mxu0  ;;  %v5487_v50 = vpop.f32.mrb[20].mxu1 }
 0x11a   :  { %v895_v51 = vpack.c.bf16 %v816_v43, %v816_v43  ;;  %v819_v52 = vadd.f32 %v4205_v41, %v818_v47  ;;  %v4582_v53 = vpop.f32.mrb[23].mxu0  ;;  %v4589_v54 = vpop.f32.mrb[21].mxu1 }
 0x11b   :  { %v5489_v55 = vpop.f32.mrb[22].mxu1 }
 0x11c   :  { %v1178_v57 = vsel %vm897_vm2, %v895_v51, 0  ;;  %v896_v58 = vpack.c.bf16 %v819_v52, %v819_v52  ;;  %v4590_v61 = vpop.f32.mrb[23].mxu1 }
 0x11d   :  { %4628 = vmatpush3.bf16.xpose.msra.mxu0 %v1178_v57 }
 0x11e   :  { %v1224_v63 = vsel %vm897_vm2, %v896_v58, 0  ;;  %4639 = vmatprep.subr.bf16.mxu0 %v5109_v1 }
 0x11f   :  { %4634 = vmatpush3.bf16.xpose.msra.mxu1 %v1224_v63 }
 0x120   :  { %4645 = vmatprep.subr.bf16.mxu1 %v5109_v1 }
 0x124   :  { %4630 = vmatmul.mubr.msk.bf16.vlgmr.msra.gmra.mrb[36].mxu0 %vm897_vm2, %v887_v2 }
 0x125   :  { %4640 = vmatpush3.bf16.msra.mxu0 %v1391_v5  ;;  %4641 = vmatprep.mubr.msk.bf16.mxu0 %vm5110_vm0, %v5109_v1 }
 0x126   :  { %4636 = vmatmul.mubr.msk.bf16.vlgmr.msra.gmra.mrb[36].mxu1 %vm897_vm2, %v888_v6  ;;  %4651 = vmatprep.subr.bf16.mxu0 %v5109_v1 }
 0x127   :  { %4646 = vmatpush3.bf16.msra.mxu1 %v1437_v49  ;;  %4647 = vmatprep.mubr.msk.bf16.mxu1 %vm5110_vm0, %v5109_v1 }
 0x128   :  { %4657 = vmatprep.subr.bf16.mxu1 %v5109_v1 }
 0x1d0   :  { %v938_v10 = vpop.f32.mrb[24].mxu0 }
 0x1d1   :  { %v1266_v13 = vmul.f32 0.35355338, %v938_v10  ;;  %v4595_v14 = vpop.f32.mrb[25].mxu0 }
 0x1d2   :  { %v941_v15 = vpop.f32.mrb[26].mxu0  ;;  %v984_v16 = vpop.f32.mrb[24].mxu1 }
 0x1d3   :  { %v1267_v17 = vmul.f32 0.35355338, %v984_v16  ;;  %v4596_v18 = vpop.f32.mrb[27].mxu0  ;;  %v4601_v19 = vpop.f32.mrb[25].mxu1  ;;  %v1274_v20 = vadd.f32 %v1266_v13, %v102_v12 }
 0x1d4   :  { %v987_v21 = vpop.f32.mrb[26].mxu1 }
 0x1d5   :  { %v4602_v22 = vpop.f32.mrb[27].mxu1  ;;  %v1282_v23 = vsel %vm897_vm2, %v1274_v20, -inf  ;;  %v1275_v24 = vadd.f32 %v1267_v17, %v102_v12 }
 0x1d6   :  { %1283 = vmax.xlane.f32.xlu0 %v1282_v23 }
 0x1d7   :  { %v1285_v25 = vsel %vm897_vm2, %v1275_v24, -inf }
 0x1da   :  { %1286 = vmax.xlane.f32.xlu0 %v1285_v25 }
 0x1df   :  { %v1030_v26 = vpop.f32.mrb[28].mxu0 }
 0x1e0   :  { %v1268_v27 = vmul.f32 0.35355338, %v1030_v26  ;;  %v4607_v28 = vpop.f32.mrb[29].mxu0 }
 0x1e1   :  { %v1033_v29 = vpop.f32.mrb[30].mxu0  ;;  %v1076_v31 = vpop.f32.mrb[28].mxu1 }
 0x1e2   :  { %v1269_v32 = vmul.f32 0.35355338, %v1076_v31  ;;  %v4608_v34 = vpop.f32.mrb[31].mxu0  ;;  %v4613_v35 = vpop.f32.mrb[29].mxu1  ;;  %v1276_v36 = vadd.f32 %v1268_v27, %v102_v12 }
 0x1e3   :  { %v1079_v37 = vpop.f32.mrb[30].mxu1 }
 0x1e4   :  { %v4614_v38 = vpop.f32.mrb[31].mxu1  ;;  %v1288_v39 = vsel %vm897_vm2, %v1276_v36, -inf  ;;  %v1277_v40 = vadd.f32 %v1269_v32, %v102_v12 }
 0x1e5   :  { %1289 = vmax.xlane.f32.xlu1 %v1288_v39 }
 0x1e6   :  { %v1291_v42 = vsel %vm897_vm2, %v1277_v40, -inf }
 0x1e8   :  { %v1122_v41 = vpop.f32.mrb[32].mxu0 }
 0x1e9   :  { %v1270_v43 = vmul.f32 0.35355338, %v1122_v41  ;;  %v4619_v44 = vpop.f32.mrb[33].mxu0  ;;  %1292 = vmax.xlane.f32.xlu1 %v1291_v42 }
 0x1ea   :  { %v1168_v46 = vpop.f32.mrb[32].mxu1  ;;  %v1125_v47 = vpop.f32.mrb[34].mxu0 }
 0x1eb   :  { %v1271_v48 = vmul.f32 0.35355338, %v1168_v46  ;;  %v4620_v51 = vpop.f32.mrb[35].mxu0  ;;  %v4625_v52 = vpop.f32.mrb[33].mxu1  ;;  %v1278_v53 = vadd.f32 %v1270_v43, %v102_v12 }
 0x1ec   :  { %v1171_v54 = vpop.f32.mrb[34].mxu1 }
 0x1ed   :  { %v4626_v56 = vpop.f32.mrb[35].mxu1  ;;  %v1294_v57 = vsel %vm897_vm2, %v1278_v53, -inf  ;;  %v1279_v58 = vadd.f32 %v1271_v48, %v102_v12 }
 0x1ee   :  { %1295 = vmax.xlane.f32.xlu0 %v1294_v57 }
 0x1ef   :  { %v1297_v59 = vsel %vm897_vm2, %v1279_v58, -inf }
 0x1f0   :  { %1298 = vmax.xlane.f32.xlu1 %v1297_v59  ;;  %v4185_v59 = vld [vmem:[%s6163_s4 + $0x1] ss:$0 sm:$0xff] }
 0x1f7   :  { %v1214_v61 = vpop.f32.mrb[36].mxu0 }
 0x1f8   :  { %v1272_v62 = vmul.f32 0.35355338, %v1214_v61  ;;  %v4631_v63 = vpop.f32.mrb[37].mxu0  ;;  %v521_v61 = vadd.f32 %v4185_v59, %v5439_v60 }
 0x1f9   :  { %v1217_v0 = vpop.f32.mrb[38].mxu0  ;;  %v1260_v2 = vpop.f32.mrb[36].mxu1 }
 0x1fa   :  { %v1273_v4 = vmul.f32 0.35355338, %v1260_v2  ;;  %v4632_v45 = vpop.f32.mrb[39].mxu0  ;;  %v4637_v5 = vpop.f32.mrb[37].mxu1  ;;  %v1280_v6 = vadd.f32 %v1272_v62, %v102_v12  ;;  %v1380_v63 = vpack.c.bf16 %v521_v61, %v521_v61  ;;  %v524_v0 = vadd.f32 %v4185_v59, %v5443_v3 }
 0x1fb   :  { %v1263_v49 = vpop.f32.mrb[38].mxu1 }
 0x1fc   :  { %v4638_v7 = vpop.f32.mrb[39].mxu1  ;;  %v1300_v8 = vsel %vm897_vm2, %v1280_v6, -inf  ;;  %v1281_v9 = vadd.f32 %v1273_v4, %v102_v12  ;;  %v1381_v49 = vpack.c.bf16 %v524_v0, %v524_v0 }
 0x1fd   :  { %1301 = vmax.xlane.f32.xlu0 %v1300_v8 }
 0x1fe   :  { %v1303_v10 = vsel %vm897_vm2, %v1281_v9, -inf  ;;  %v1529_v3 = vsel %vm1389_vm3, %v1381_v49, 0 }
 0x1ff   :  { %1304 = vmax.xlane.f32.xlu1 %v1303_v10 }
 0x263   :  { %v1284_v11 = vpop.xlane.xlu0 %1283 }
 0x264   :  { %v1306_v13 = vsub.f32 %v1274_v20, %v1284_v11 }
 0x266   :  { %v1314_v14 = vmul.f32 1.442695, %v1306_v13 }
 0x267   :  { %v1287_v15 = vpop.xlane.xlu0 %1286 }
 0x268   :  { %5007 = vpow2.f32 %v1314_v14  ;;  %v1307_v16 = vsub.f32 %v1275_v24, %v1287_v15 }
 0x26a   :  { %v1316_v17 = vmul.f32 1.442695, %v1307_v16 }
 0x26c   :  { %5009 = vpow2.f32 %v1316_v17 }
 0x272   :  { %v5008_v18 = vpop.eup %5007  ;;  %v1290_v19 = vpop.xlane.xlu1 %1289 }
 0x273   :  { %v1308_v21 = vsub.f32 %v1276_v36, %v1290_v19  ;;  %v1330_v22 = vsel %vm897_vm2, %v5008_v18, 0.0 }
 0x274   :  { %1331 = vadd.xlane.f32.xlu0 %v1330_v22 }
 0x275   :  { %v1318_v23 = vmul.f32 1.442695, %v1308_v21 }
 0x276   :  { %v5010_v12 = vpop.eup %5009  ;;  %v1293_v25 = vpop.xlane.xlu1 %1292 }
 0x277   :  { %5011 = vpow2.f32 %v1318_v23  ;;  %v1309_v26 = vsub.f32 %v1277_v40, %v1293_v25  ;;  %v1333_v27 = vsel %vm897_vm2, %v5010_v12, 0.0 }
 0x278   :  { %1334 = vadd.xlane.f32.xlu1 %v1333_v27 }
 0x279   :  { %v1320_v20 = vmul.f32 1.442695, %v1309_v26 }
 0x27b   :  { %5013 = vpow2.f32 %v1320_v20  ;;  %v1296_v28 = vpop.xlane.xlu0 %1295 }
 0x27c   :  { %v1310_v24 = vsub.f32 %v1278_v53, %v1296_v28 }
 0x27d   :  { %v1299_v29 = vpop.xlane.xlu1 %1298 }
 0x27e   :  { %v1322_v31 = vmul.f32 1.442695, %v1310_v24  ;;  %v1311_v32 = vsub.f32 %v1279_v58, %v1299_v29 }
 0x280   :  { %5015 = vpow2.f32 %v1322_v31  ;;  %v1324_v34 = vmul.f32 1.442695, %v1311_v32 }
 0x281   :  { %v5517_v35 = vpop.eup %5011 }
 0x282   :  { %5017 = vpow2.f32 %v1324_v34  ;;  %v1336_v36 = vsel %vm897_vm2, %v5517_v35, 0.0 }
 0x283   :  { %1337 = vadd.xlane.f32.xlu0 %v1336_v36 }
 0x285   :  { %v5521_v37 = vpop.eup %5013 }
 0x286   :  { %v1339_v38 = vsel %vm897_vm2, %v5521_v37, 0.0 }
 0x287   :  { %1340 = vadd.xlane.f32.xlu1 %v1339_v38 }
 0x28a   :  { %v5525_v39 = vpop.eup %5015  ;;  %v1302_v40 = vpop.xlane.xlu0 %1301 }
 0x28b   :  { %v1312_v41 = vsub.f32 %v1280_v6, %v1302_v40  ;;  %v1342_v42 = vsel %vm897_vm2, %v5525_v39, 0.0  ;;  %v1483_v6 = vsel %vm1389_vm3, %v1380_v63, 0 }
 0x28c   :  { %v5529_v43 = vpop.eup %5017  ;;  %1343 = vadd.xlane.f32.xlu0 %v1342_v42  ;;  %v1305_v44 = vpop.xlane.xlu1 %1304 }
 0x28d   :  { %v1326_v46 = vmul.f32 1.442695, %v1312_v41  ;;  %v1313_v47 = vsub.f32 %v1281_v9, %v1305_v44  ;;  %v1345_v48 = vsel %vm897_vm2, %v5529_v43, 0.0  ;;  %v4197_v9 = vld [vmem:[%s6163_s4 + $0x2] ss:$0 sm:$0xff] }
 0x28e   :  { %1346 = vadd.xlane.f32.xlu1 %v1345_v48  ;;  %v698_v10 = vadd.f32 %v4197_v9, %v5464_v30  ;;  %v701_v16 = vadd.f32 %v4197_v9, %v5469_v33 }
 0x28f   :  { %5019 = vpow2.f32 %v1326_v46  ;;  %v1328_v51 = vmul.f32 1.442695, %v1313_v47  ;;  %v164_v46 = vld [vmem:[%s6164_s30 + $0x4] sm:$0xf] }
 0x290   :  { %v1382_v15 = vpack.c.bf16 %v698_v10, %v698_v10  ;;  %v1383_v23 = vpack.c.bf16 %v701_v16, %v701_v16  ;;  %v1761_v47 = vsel %vm1389_vm3, %v164_v46, 0 }
 0x291   :  { %5021 = vpow2.f32 %v1328_v51 }
 0x292   :  { %v1575_v22 = vsel %vm1389_vm3, %v1382_v15, 0  ;;  %v1621_v26 = vsel %vm1389_vm3, %v1383_v23, 0 }
 0x299   :  { %v5533_v52 = vpop.eup %5019 }
 0x29a   :  { %v1348_v53 = vsel %vm897_vm2, %v5533_v52, 0.0 }
 0x29b   :  { %v5537_v54 = vpop.eup %5021  ;;  %1349 = vadd.xlane.f32.xlu0 %v1348_v53  ;;  %v166_v53 = vld [vmem:[%s6164_s30 + $0xc] sm:$0xf] }
 0x29c   :  { %v1351_v56 = vsel %vm897_vm2, %v5537_v54, 0.0  ;;  %v1906_v59 = vsel %vm1389_vm3, %v166_v53, 0 }
 0x29d   :  { %1352 = vadd.xlane.f32.xlu1 %v1351_v56 }
 0x301   :  { %v1332_v57 = vpop.xlane.xlu0 %1331 }
 0x302   :  { %5023 = vrcp.f32 %v1332_v57 }
 0x305   :  { %v1335_v58 = vpop.xlane.xlu1 %1334 }
 0x306   :  { %5025 = vrcp.f32 %v1335_v58 }
 0x30c   :  { %v5024_v62 = vpop.eup %5023 }
 0x30d   :  { %v1362_v2 = vmul.f32 %v5024_v62, %v5008_v18  ;;  %v4209_v18 = vld [vmem:[%s6163_s4 + $0x3] ss:$0 sm:$0xff] }
 0x30e   :  { %v878_v27 = vadd.f32 %v4209_v18, %v5489_v55 }
 0x30f   :  { %v1370_v4 = vpack.c.bf16 %v1362_v2, %v1362_v2 }
 0x310   :  { %v5026_v45 = vpop.eup %5025  ;;  %v1338_v5 = vpop.xlane.xlu0 %1337  ;;  %v1385_v31 = vpack.c.bf16 %v878_v27, %v878_v27 }
 0x311   :  { %v1363_v7 = vmul.f32 %v5026_v45, %v5010_v12  ;;  %4642 = vmatmul.mubr.msk.bf16.vlgmr.msra.gmra.mrb[40].mxu0 %vm897_vm2, %v1370_v4  ;;  %5027 = vrcp.f32 %v1338_v5  ;;  %v875_v12 = vadd.f32 %v4209_v18, %v5487_v50  ;;  %v165_v4 = vld [vmem:[%s6164_s30 + $0x8] sm:$0xf] }
 0x312   :  { %4652 = vmatpush3.bf16.msra.mxu0 %v1483_v6  ;;  %4653 = vmatprep.mubr.msk.bf16.mxu0 %vm5110_vm0, %v5109_v1  ;;  %v1713_v36 = vsel %vm1389_vm3, %v1385_v31, 0 }
 0x313   :  { %v1371_v60 = vpack.c.bf16 %v1363_v7, %v1363_v7  ;;  %4663 = vmatprep.subr.bf16.mxu0 %v5109_v1  ;;  %v1384_v20 = vpack.c.bf16 %v875_v12, %v875_v12  ;;  %v1856_v7 = vsel %vm1389_vm3, %v165_v4, 0 }
 0x314   :  { %v1341_v8 = vpop.xlane.xlu1 %1340 }
 0x315   :  { %4648 = vmatmul.mubr.msk.bf16.vlgmr.msra.gmra.mrb[40].mxu1 %vm897_vm2, %v1371_v60  ;;  %5029 = vrcp.f32 %v1341_v8  ;;  %v1667_v34 = vsel %vm1389_vm3, %v1384_v20, 0 }
 0x316   :  { %4658 = vmatpush3.bf16.msra.mxu1 %v1529_v3  ;;  %4659 = vmatprep.mubr.msk.bf16.mxu1 %vm5110_vm0, %v5109_v1 }
 0x317   :  { %4669 = vmatprep.subr.bf16.mxu1 %v5109_v1 }
 0x319   :  { %v1344_v11 = vpop.xlane.xlu0 %1343 }
 0x31a   :  { %5031 = vrcp.f32 %v1344_v11 }
 0x31b   :  { %v5028_v13 = vpop.eup %5027  ;;  %v1347_v14 = vpop.xlane.xlu1 %1346 }
 0x31c   :  { %v1364_v17 = vmul.f32 %v5028_v13, %v5517_v35  ;;  %5033 = vrcp.f32 %v1347_v14 }
 0x31e   :  { %v1372_v19 = vpack.c.bf16 %v1364_v17, %v1364_v17 }
 0x31f   :  { %v5030_v21 = vpop.eup %5029 }
 0x320   :  { %v1365_v30 = vmul.f32 %v5030_v21, %v5521_v37  ;;  %4654 = vmatmul.mubr.msk.bf16.vlgmr.msra.gmra.mrb[44].mxu0 %vm897_vm2, %v1372_v19 }
 0x321   :  { %4664 = vmatpush3.bf16.msra.mxu0 %v1575_v22  ;;  %4665 = vmatprep.mubr.msk.bf16.mxu0 %vm5110_vm0, %v5109_v1 }
 0x322   :  { %v1373_v33 = vpack.c.bf16 %v1365_v30, %v1365_v30  ;;  %4675 = vmatprep.subr.bf16.mxu0 %v5109_v1 }
 0x324   :  { %v5032_v25 = vpop.eup %5031  ;;  %4660 = vmatmul.mubr.msk.bf16.vlgmr.msra.gmra.mrb[44].mxu1 %vm897_vm2, %v1373_v33 }
 0x325   :  { %v1366_v28 = vmul.f32 %v5032_v25, %v5525_v39  ;;  %4670 = vmatpush3.bf16.msra.mxu1 %v1621_v26  ;;  %4671 = vmatprep.mubr.msk.bf16.mxu1 %vm5110_vm0, %v5109_v1 }
 0x326   :  { %v5034_v50 = vpop.eup %5033  ;;  %4681 = vmatprep.subr.bf16.mxu1 %v5109_v1 }
 0x327   :  { %v1367_v24 = vmul.f32 %v5034_v50, %v5529_v43  ;;  %v1374_v29 = vpack.c.bf16 %v1366_v28, %v1366_v28  ;;  %v163_v43 = vld [vmem:[%s6164_s30] sm:$0xf] }
 0x328   :  { %v1350_v32 = vpop.xlane.xlu0 %1349  ;;  %v1808_v44 = vsel %vm1389_vm3, %v163_v43, 0 }
 0x329   :  { %4666 = vmatmul.mubr.msk.bf16.vlgmr.msra.gmra.mrb[48].mxu0 %vm897_vm2, %v1374_v29  ;;  %5035 = vrcp.f32 %v1350_v32  ;;  %v1375_v35 = vpack.c.bf16 %v1367_v24, %v1367_v24 }
 0x32a   :  { %4676 = vmatpush3.bf16.msra.mxu0 %v1667_v34  ;;  %v1353_v55 = vpop.xlane.xlu1 %1352  ;;  %4677 = vmatprep.mubr.msk.bf16.mxu0 %vm5110_vm0, %v5109_v1 }
 0x32b   :  { %5037 = vrcp.f32 %v1353_v55  ;;  %4687 = vmatprep.subr.bf16.mxu0 %v5109_v1 }
 0x32c   :  { %4672 = vmatmul.mubr.msk.bf16.vlgmr.msra.gmra.mrb[48].mxu1 %vm897_vm2, %v1375_v35 }
 0x32d   :  { %4682 = vmatpush3.bf16.msra.mxu1 %v1713_v36  ;;  %4683 = vmatprep.mubr.msk.bf16.mxu1 %vm5110_vm0, %v5109_v1 }
 0x32e   :  { %4693 = vmatprep.subr.bf16.mxu1 %v5109_v1 }
 0x333   :  { %v5036_v37 = vpop.eup %5035 }
 0x334   :  { %v1368_v38 = vmul.f32 %v5036_v37, %v5533_v52 }
 0x335   :  { %v5038_v39 = vpop.eup %5037 }
 0x336   :  { %v1369_v40 = vmul.f32 %v5038_v39, %v5537_v54  ;;  %v1376_v41 = vpack.c.bf16 %v1368_v38, %v1368_v38 }
 0x338   :  { %4678 = vmatmul.mubr.msk.bf16.vlgmr.msra.gmra.mrb[52].mxu0 %vm897_vm2, %v1376_v41  ;;  %v1377_v42 = vpack.c.bf16 %v1369_v40, %v1369_v40  ;;  %v4233_v40 = vld [vmem:[%s6165_s9] ss:$0 sm:$0xff] }
 0x339   :  { %4689 = vmatprep.mubr.msk.bf16.mxu0 %vm5110_vm0, %v5109_v1  ;;  %4688 = vmatpush3.bf16.msra.mxu0 %v1761_v47 }
 0x33a   :  { %4684 = vmatmul.mubr.msk.bf16.vlgmr.msra.gmra.mrb[52].mxu1 %vm897_vm2, %v1377_v42  ;;  %4699 = vmatprep.subr.bf16.mxu0 %v5109_v1 }
 0x33b   :  { %4695 = vmatprep.mubr.msk.bf16.mxu1 %vm5110_vm0, %v5109_v1  ;;  %4694 = vmatpush3.bf16.msra.mxu1 %v1808_v44 }
 0x33c   :  { %4705 = vmatprep.subr.bf16.mxu1 %v5109_v1 }
 0x3e4   :  { %v1427_v48 = vpop.f32.mrb[40].mxu0 }
 0x3e5   :  { %v4643_v51 = vpop.f32.mrb[41].mxu0 }
 0x3e6   :  { %v1430_v52 = vpop.f32.mrb[42].mxu0 }
 0x3e7   :  { %v4644_v54 = vpop.f32.mrb[43].mxu0  ;;  %v5083_v52 = vld [vmem:[%s6159_s12] sm:$0xff] }
 0x3e8   :  { %v1473_v56 = vpop.f32.mrb[40].mxu1 }
 0x3e9   :  { %v1755_v57 = vpack.c.bf16 %v1473_v56, %v1427_v48  ;;  %v4649_v58 = vpop.f32.mrb[41].mxu1  ;;  %v5084_v56 = vld [vmem:[%s6159_s12 + $0x8] sm:$0xff]  ;;  %s6167_s12 = sld [smem:[#allocation17_spill]] }
 0x3ea   :  { %v1476_v61 = vpop.f32.mrb[42].mxu1 }
 0x3eb   :  { %v4650_v62 = vpop.f32.mrb[43].mxu1  ;;  %4696 = vmatmul.mubr.msk.bf16.vlgmr.msra.gmra.mrb[56].mxu1 %vm897_vm2, %v1755_v57 }
 0x3ec   :  { %4706 = vmatpush3.bf16.msra.mxu1 %v1906_v59  ;;  %4707 = vmatprep.mubr.msk.bf16.mxu1 %vm5110_vm0, %v5109_v1 }
 0x3f3   :  { %v1519_v63 = vpop.f32.mrb[44].mxu0 }
 0x3f4   :  { %v4655_v0 = vpop.f32.mrb[45].mxu0 }
 0x3f5   :  { %v1522_v2 = vpop.f32.mrb[46].mxu0 }
 0x3f6   :  { %v4656_v45 = vpop.f32.mrb[47].mxu0 }
 0x3f7   :  { %v1565_v5 = vpop.f32.mrb[44].mxu1 }
 0x3f8   :  { %v1756_v6 = vpack.c.bf16 %v1565_v5, %v1519_v63  ;;  %v4661_v49 = vpop.f32.mrb[45].mxu1 }
 0x3f9   :  { %v1568_v60 = vpop.f32.mrb[46].mxu1  ;;  %v4977_v49 = vld [vmem:[%s6119_s14] sm:$0xff]  }
 0x3fa   :  { %v4662_v8 = vpop.f32.mrb[47].mxu1  ;;  %4690 = vmatmul.mubr.msk.bf16.vlgmr.msra.gmra.mrb[56].mxu0 %vm897_vm2, %v1756_v6  ;;  %4719 = vmatprep.subr.bf16.mxu1 %v4977_v49  ;;  %v93_v60 = vld [vmem:[%s6166_s5] sm:$0xff] }
 0x3fb   :  { %4700 = vmatpush3.bf16.msra.mxu0 %v1856_v7  ;;  %4701 = vmatprep.mubr.msk.bf16.mxu0 %vm5110_vm0, %v5109_v1  ;;  %v4978_v7 = vld [vmem:[%s6119_s14 + $0x8] sm:$0xff]  }
 0x3fc   :  { %v1611_v3 = vpop.f32.mrb[48].mxu0  ;;  %4711 = vmatprep.subr.bf16.mxu0 %v5109_v1  ;;  %v94_v8 = vld [vmem:[%s6166_s5 + $0x8] sm:$0xff] }
 0x3fd   :  { %v4667_v9 = vpop.f32.mrb[49].mxu0 }
 0x3fe   :  { %v1614_v10 = vpop.f32.mrb[50].mxu0  ;;  %v95_v9 = vld [vmem:[%s6166_s5 + $0x10] sm:$0xff] }
 0x3ff   :  { %v4668_v11 = vpop.f32.mrb[51].mxu0  ;;  %v1657_v13 = vpop.f32.mrb[48].mxu1  ;;  %v96_v10 = vld [vmem:[%s6166_s5 + $0x18] sm:$0xff] }
 0x400   :  { %v1851_v14 = vpack.c.bf16 %v1657_v13, %v1611_v3  ;;  %v4673_v15 = vpop.f32.mrb[49].mxu1  ;;  %v5652_v3 = vpack.c.bf16 %v94_v8, %v93_v60  ;;  %v5660_v11 = vpack.c.bf16 %v96_v10, %v95_v9  ;;  %v4979_v13 = vld [vmem:[%s6167_s12] sm:$0xff]  }
 0x401   :  { %v1660_v16 = vpop.f32.mrb[50].mxu1  ;;  %v4981_v15 = vld [vmem:[%s6167_s12 + $0x8] sm:$0xff]  }
 0x402   :  { %v4674_v17 = vpop.f32.mrb[51].mxu1  ;;  %4702 = vmatmul.mubr.msk.bf16.vlgmr.msra.gmra.mrb[60].mxu0 %vm897_vm2, %v1851_v14  ;;  %v4980_v14 = vld [vmem:[%s6167_s12 + $0x10] sm:$0xff]   ;;  %v4982_v16 = vld [vmem:[%s6167_s12 + $0x18] sm:$0xff]  }
 0x403   :  { %4715 = vmatprep.mubr.msk.bf16.mxu0 %vm5110_vm0, %v5109_v1  ;;  %4712 = vmatpush3.bf16.msra.mxu0 %v4979_v13  ;;  %v4983_v17 = vld [vmem:[%s6121_s16] sm:$0xff]  }
 0x404   :  { %4713 = vmatprep.subr.bf16.mxu0 %v5109_v1 }
 0x407   :  { %4714 = vmatpush3.bf16.msra.mxu0 %v4981_v15  ;;  %v4259_v15 = vld [vmem:[%s6122_s17 + $0x1] ss:$0 sm:$0xff] }
 0x408   :  { %4727 = vmatprep.subr.bf16.mxu0 %v4983_v17 }
 0x40b   :  { %v1703_v18 = vpop.f32.mrb[52].mxu0 }
 0x40c   :  { %v4679_v19 = vpop.f32.mrb[53].mxu0 }
 0x40d   :  { %v1706_v21 = vpop.f32.mrb[54].mxu0  ;;  %v1749_v22 = vpop.f32.mrb[52].mxu1 }
 0x40e   :  { %v1901_v23 = vpack.c.bf16 %v1749_v22, %v1703_v18  ;;  %v4680_v30 = vpop.f32.mrb[55].mxu0  ;;  %v4685_v12 = vpop.f32.mrb[53].mxu1  ;;  %v4984_v18 = vld [vmem:[%s6121_s16 + $0x10] sm:$0xff]  }
 0x40f   :  { %v1752_v33 = vpop.f32.mrb[54].mxu1 }
 0x410   :  { %v4686_v25 = vpop.f32.mrb[55].mxu1  ;;  %4708 = vmatmul.mubr.msk.bf16.vlgmr.msra.gmra.mrb[60].mxu1 %vm897_vm2, %v1901_v23 }
 0x411   :  { %4720 = vmatpush3.bf16.msra.mxu1 %v4977_v49  ;;  %4723 = vmatprep.mubr.msk.bf16.mxu1 %vm187_vm1, %v5652_v3  ;;  %v4234_v25 = vld [vmem:[%s6168_s11] ss:$0 sm:$0xff]  ;;  %s5112_s11 = smov [#allocation2]  }
 0x412   :  { %4721 = vmatprep.subr.bf16.mxu1 %v4978_v7  ;;  %s4154_s6 = sshll.u32 %s5112_s11, 4  ;;  %s4155_s6 = int_to_ptr.vmem [resolvable:$true] %s4154_s6 }
 0x413   :  { %p5090_p1 = scmp.lt.s32.totalorder %s4155_s6, %s4155_s6 }
 0x415   :  { %4722 = vmatpush3.bf16.msra.mxu1 %v4978_v7 }
 0x416   :  { %4735 = vmatprep.subr.bf16.mxu1 %v5109_v1 }
 0x418   :  { %4724 = vmatmul.mubr.msk.bf16.vlgmr.msra.gmra.mrb[64].mxu1 %vm187_vm1, %v5660_v11 }
 0x419   :  { %4739 = vmatprep.mubr.msk.bf16.mxu1 %vm5110_vm0, %v5109_v1  ;;  %4736 = vmatpush3.bf16.msra.mxu1 %v4980_v14 }
 0x41a   :  { %4737 = vmatprep.subr.bf16.mxu1 %v5109_v1 }
 0x41d   :  { %4738 = vmatpush3.bf16.msra.mxu1 %v4982_v16 }
 0x41e   :  { %4751 = vmatprep.subr.bf16.mxu1 %v4984_v18 }
 0x4be   :  { %v1844_v26 = vpop.f32.mrb[56].mxu1 }
 0x4bf   :  { %v4697_v27 = vpop.f32.mrb[57].mxu1 }
 0x4c0   :  { %v1847_v20 = vpop.f32.mrb[58].mxu1 }
 0x4c1   :  { %v4698_v28 = vpop.f32.mrb[59].mxu1 }
 0x4cd   :  { %v1797_v50 = vpop.f32.mrb[56].mxu0 }
 0x4ce   :  { %v1845_v24 = vadd.f32 %v1844_v26, %v1797_v50  ;;  %v4691_v29 = vpop.f32.mrb[57].mxu0  ;;  %v4235_v50 = vld [vmem:[%s6169_s2] ss:$0 sm:$0xff] }
 0x4cf   :  { %v1800_v31 = vpop.f32.mrb[58].mxu0 }
 0x4d0   :  { %v1848_v32 = vadd.f32 %v1847_v20, %v1800_v31  ;;  %v4692_v34 = vpop.f32.mrb[59].mxu0 }
 0x4d1   :  { %v4985_v34 = vld [vmem:[%s6121_s16 + $0x8] sm:$0xff]  }
 0x4d5   :  { %v1892_v55 = vpop.f32.mrb[60].mxu0 }
 0x4d6   :  { %v1899_v35 = vadd.f32 %v1892_v55, %v1845_v24  ;;  %v4703_v36 = vpop.f32.mrb[61].mxu0  ;;  %v4986_v55 = vld [vmem:[%s6121_s16 + $0x18] sm:$0xff]  }
 0x4d7   :  { %v1895_v37 = vpop.f32.mrb[62].mxu0  ;;  %v4988_v36 = vld [vmem:[%s6119_s14 + $0x20] sm:$0xff]  }
 0x4d8   :  { %v1900_v38 = vadd.f32 %v1895_v37, %v1848_v32  ;;  %v4704_v39 = vpop.f32.mrb[63].mxu0  ;;  %v4989_v37 = vld [vmem:[%s6119_s14 + $0x18] sm:$0xff]  }
 0x4d9   :  { %v4991_v39 = vld [vmem:[%s6167_s12 + $0x20] sm:$0xff]  }
 0x4e3   :  { %v1942_v41 = vpop.f32.mrb[60].mxu1 }
 0x4e4   :  { %v1949_v42 = vadd.f32 %v1942_v41, %v1899_v35  ;;  %v4709_v43 = vpop.f32.mrb[61].mxu1  ;;  %v4987_v35 = vld [vmem:[%s6119_s14 + $0x10] sm:$0xff]   ;;  %v4993_v41 = vld [vmem:[%s6167_s12 + $0x28] sm:$0xff]  }
 0x4e5   :  { %v1945_v44 = vpop.f32.mrb[62].mxu1  ;;  %v4995_v43 = vld [vmem:[%s6121_s16 + $0x20] sm:$0xff]  }
 0x4e6   :  { %v1957_v46 = vadd.f32 %v4233_v40, %v1949_v42  ;;  %v1950_v47 = vadd.f32 %v1945_v44, %v1900_v38  ;;  %v4710_v48 = vpop.f32.mrb[63].mxu1  ;;  %v4990_v38 = vld [vmem:[%s6119_s14 + $0x28] sm:$0xff]   ;;  %v4994_v42 = vld [vmem:[%s6167_s12 + $0x38] sm:$0xff]   ;;  %v4999_v44 = vld [vmem:[%s6121_s16 + $0x30] sm:$0xff]  }
 0x4e7   :  { %v4997_v48 = vld [vmem:[%s6119_s14 + $0x30] sm:$0xff]  }
 0x4e8   :  { %v1958_v51 = vadd.f32 %v4233_v40, %v1950_v47  ;;  %v1959_v53 = vadd.f32 %v5083_v52, %v1957_v46  ;;  %v4992_v40 = vld [vmem:[%s6167_s12 + $0x30] sm:$0xff]   ;;  %v4996_v46 = vld [vmem:[%s6121_s16 + $0x28] sm:$0xff]   ;;  %v5000_v47 = vld [vmem:[%s6121_s16 + $0x38] sm:$0xff]  }
 0x4e9   :  { %v4240_v52 = vld [vmem:[%s6120_s15] ss:$0 sm:$0xff] }
 0x4ea   :  { %v1963_v54 = vsel %vm187_vm1, %v1959_v53, 0.0  ;;  %v1960_v57 = vadd.f32 %v5084_v56, %v1958_v51  ;;  %v4998_v51 = vld [vmem:[%s6119_s14 + $0x38] sm:$0xff]  }
 0x4eb   :  { %1964 = vadd.xlane.f32.xlu0 %v1963_v54 }
 0x4ec   :  { %v1966_v58 = vsel %vm187_vm1, %v1960_v57, 0.0 }
 0x4ed   :  { %1967 = vadd.xlane.f32.xlu1 %v1966_v58 }
 0x578   :  { %v1965_v59 = vpop.xlane.xlu0 %1964 }
 0x579   :  { %v1970_v61 = vmul.f32 0.03125, %v1965_v59 }
 0x57a   :  { %v1968_v62 = vpop.xlane.xlu1 %1967 }
 0x57b   :  { %v1972_v63 = vsub.f32 %v1959_v53, %v1970_v61  ;;  %v1971_v0 = vmul.f32 0.03125, %v1968_v62  ;;  %v4725_v53 = vpop.f32.mrb[64].mxu1 }
 0x57c   :  { %v2203_v54 = vadd.f32 %v4725_v53, %v4240_v52  ;;  %v2194_v56 = vpop.f32.mrb[65].mxu1 }
 0x57d   :  { %v1973_v2 = vsub.f32 %v1960_v57, %v1971_v0  ;;  %v1974_v4 = vmul.f32 %v1972_v63, %v1972_v63  ;;  %v2195_v57 = vadd.f32 %v4240_v52, %v2194_v56  ;;  %v4726_v58 = vpop.f32.mrb[66].mxu1 }
 0x57e   :  { %v2206_v59 = vadd.f32 %v4726_v58, %v4240_v52  ;;  %v2197_v61 = vpop.f32.mrb[67].mxu1 }
 0x57f   :  { %v1976_v45 = vsel %vm187_vm1, %v1974_v4, 0.0  ;;  %v1975_v5 = vmul.f32 %v1973_v2, %v1973_v2  ;;  %v2198_v62 = vadd.f32 %v4240_v52, %v2197_v61 }
 0x580   :  { %1977 = vadd.xlane.f32.xlu0 %v1976_v45  ;;  %v4236_v45 = vld [vmem:[%s6118_s13] ss:$0 sm:$0xff] }
 0x581   :  { %v1979_v6 = vsel %vm187_vm1, %v1975_v5, 0.0  ;;  %v2863_v0 = vpack.c.bf16 %v2198_v62, %v2195_v57 }
 0x582   :  { %1980 = vadd.xlane.f32.xlu1 %v1979_v6 }
 0x60d   :  { %v1978_v19 = vpop.xlane.xlu0 %1977 }
 0x60e   :  { %v1982_v21 = vmul.f32 0.03125, %v1978_v19 }
 0x60f   :  { %v1981_v22 = vpop.xlane.xlu1 %1980 }
 0x610   :  { %v1984_v23 = vadd.f32 1e-05, %v1982_v21  ;;  %v1983_v30 = vmul.f32 0.03125, %v1981_v22 }
 0x612   :  { %5039 = vrsqrt.f32 %v1984_v23  ;;  %v1985_v12 = vadd.f32 1e-05, %v1983_v30 }
 0x614   :  { %5041 = vrsqrt.f32 %v1985_v12 }
 0x61c   :  { %v5040_v33 = vpop.eup %5039 }
 0x61d   :  { %v1988_v26 = vmul.f32 %v5040_v33, %v1972_v63  ;;  %v2864_v63 = vpack.c.bf16 %v2206_v59, %v2203_v54 }
 0x61e   :  { %v5042_v27 = vpop.eup %5041 }
 0x61f   :  { %v1996_v20 = vmul.f32 %v4234_v25, %v1988_v26  ;;  %v1989_v28 = vmul.f32 %v5042_v27, %v1973_v2  ;;  %v2875_v2 = vsel %vm897_vm2, %v2863_v0, 0  ;;  %v2921_v4 = vsel %vm897_vm2, %v2864_v63, 0  ;;  %v4250_v63 = vld [vmem:[%s6118_s13 + $0x1] ss:$0 sm:$0xff] }
 0x621   :  { %v1997_v24 = vmul.f32 %v4234_v25, %v1989_v28  ;;  %v5695_v29 = vadd.f32 %v4235_v50, %v1996_v20 }
 0x623   :  { %v5697_v31 = vadd.f32 %v4235_v50, %v1997_v24 }
 0x625   :  { %v2071_v32 = vpack.c.bf16 %v5697_v31, %v5695_v29 }
 0x627   :  { %4716 = vmatmul.mubr.msk.bf16.vlgmr.msra.gmra.mrb[64].mxu0 %vm187_vm1, %v2071_v32  ;;  %4740 = vmatmul.mubr.msk.bf16.vlgmr.msra.gmra.mrb[68].mxu1 %vm187_vm1, %v2071_v32 }
 0x628   :  { %4728 = vmatpush3.bf16.msra.mxu0 %v4983_v17  ;;  %4752 = vmatpush3.bf16.msra.mxu1 %v4984_v18  ;;  %v4245_v17 = vld [vmem:[%s6122_s17] ss:$0 sm:$0xff] }
 0x629   :  { %4729 = vmatprep.subr.bf16.mxu0 %v4985_v34  ;;  %4753 = vmatprep.subr.bf16.mxu1 %v4986_v55 }
 0x62a   :  { %4731 = vmatprep.mubr.msk.bf16.mxu0 %vm187_vm1, %v5652_v3  ;;  %4755 = vmatprep.mubr.msk.bf16.mxu1 %vm187_vm1, %v5652_v3 }
 0x62c   :  { %4730 = vmatpush3.bf16.msra.mxu0 %v4985_v34  ;;  %4754 = vmatpush3.bf16.msra.mxu1 %v4986_v55 }
 0x62d   :  { %4743 = vmatprep.subr.bf16.mxu0 %v4987_v35  ;;  %4767 = vmatprep.subr.bf16.mxu1 %v4988_v36 }
 0x62f   :  { %4732 = vmatmul.mubr.msk.bf16.vlgmr.msra.gmra.mrb[68].mxu0 %vm187_vm1, %v5660_v11  ;;  %4756 = vmatmul.mubr.msk.bf16.vlgmr.msra.gmra.mrb[72].mxu1 %vm187_vm1, %v5660_v11 }
 0x630   :  { %4744 = vmatpush3.bf16.msra.mxu0 %v4987_v35  ;;  %4768 = vmatpush3.bf16.msra.mxu1 %v4988_v36  ;;  %v4268_v36 = vld [vmem:[%s6120_s15 + $0x2] ss:$0 sm:$0xff] }
 0x631   :  { %4745 = vmatprep.subr.bf16.mxu0 %v4989_v37  ;;  %4769 = vmatprep.subr.bf16.mxu1 %v4990_v38 }
 0x632   :  { %4747 = vmatprep.mubr.msk.bf16.mxu0 %vm187_vm1, %v5652_v3  ;;  %4771 = vmatprep.mubr.msk.bf16.mxu1 %vm187_vm1, %v5652_v3 }
 0x634   :  { %4746 = vmatpush3.bf16.msra.mxu0 %v4989_v37  ;;  %4770 = vmatpush3.bf16.msra.mxu1 %v4990_v38  ;;  %v4254_v38 = vld [vmem:[%s6120_s15 + $0x1] ss:$0 sm:$0xff] }
 0x635   :  { %4759 = vmatprep.subr.bf16.mxu0 %v5109_v1  ;;  %4783 = vmatprep.subr.bf16.mxu1 %v5109_v1 }
 0x637   :  { %4748 = vmatmul.mubr.msk.bf16.vlgmr.msra.gmra.mrb[72].mxu0 %vm187_vm1, %v5660_v11  ;;  %4772 = vmatmul.mubr.msk.bf16.vlgmr.msra.gmra.mrb[76].mxu1 %vm187_vm1, %v5660_v11 }
 0x638   :  { %4760 = vmatpush3.bf16.msra.mxu0 %v4991_v39  ;;  %4784 = vmatpush3.bf16.msra.mxu1 %v4992_v40 }
 0x639   :  { %4761 = vmatprep.subr.bf16.mxu0 %v5109_v1  ;;  %4785 = vmatprep.subr.bf16.mxu1 %v5109_v1 }
 0x63a   :  { %4763 = vmatprep.mubr.msk.bf16.mxu0 %vm5110_vm0, %v5109_v1  ;;  %4787 = vmatprep.mubr.msk.bf16.mxu1 %vm5110_vm0, %v5109_v1 }
 0x63c   :  { %4762 = vmatpush3.bf16.msra.mxu0 %v4993_v41  ;;  %4786 = vmatpush3.bf16.msra.mxu1 %v4994_v42 }
 0x63d   :  { %4775 = vmatprep.subr.bf16.mxu0 %v4995_v43  ;;  %4799 = vmatprep.subr.bf16.mxu1 %v4999_v44 }
 0x63f   :  { %4764 = vmatmul.mubr.msk.bf16.vlgmr.msra.gmra.mrb[76].mxu0 %vm187_vm1, %v2071_v32  ;;  %4788 = vmatmul.mubr.msk.bf16.vlgmr.msra.gmra.mrb[80].mxu1 %vm187_vm1, %v2071_v32 }
 0x640   :  { %4776 = vmatpush3.bf16.msra.mxu0 %v4995_v43  ;;  %4779 = vmatprep.mubr.msk.bf16.mxu0 %vm187_vm1, %v5652_v3 }
 0x641   :  { %4777 = vmatprep.subr.bf16.mxu0 %v4996_v46  ;;  %4800 = vmatpush3.bf16.msra.mxu1 %v4999_v44 }
 0x642   :  { %4801 = vmatprep.subr.bf16.mxu1 %v5000_v47  ;;  %4803 = vmatprep.mubr.msk.bf16.mxu1 %vm187_vm1, %v5652_v3 }
 0x644   :  { %4778 = vmatpush3.bf16.msra.mxu0 %v4996_v46 }
 0x645   :  { %4791 = vmatprep.subr.bf16.mxu0 %v4997_v48  ;;  %4802 = vmatpush3.bf16.msra.mxu1 %v5000_v47 }
 0x646   :  { %4813 = vmatprep.subr.bf16.mxu1 %v5109_v1 }
 0x647   :  { %4780 = vmatmul.mubr.msk.bf16.vlgmr.msra.gmra.mrb[80].mxu0 %vm187_vm1, %v5660_v11 }
 0x648   :  { %4792 = vmatpush3.bf16.msra.mxu0 %v4997_v48  ;;  %4795 = vmatprep.mubr.msk.bf16.mxu0 %vm187_vm1, %v5652_v3 }
 0x649   :  { %4793 = vmatprep.subr.bf16.mxu0 %v4998_v51  ;;  %4804 = vmatmul.mubr.msk.bf16.vlgmr.msra.gmra.mrb[84].mxu1 %vm187_vm1, %v5660_v11 }
 0x64a   :  { %4815 = vmatprep.mubr.msk.bf16.mxu1 %vm5110_vm0, %v5109_v1 }
 0x64c   :  { %4794 = vmatpush3.bf16.msra.mxu0 %v4998_v51 }
 0x64d   :  { %4807 = vmatprep.subr.bf16.mxu0 %v5109_v1 }
 0x64e   :  { %4814 = vmatpush3.bf16.xpose.msra.mxu1 %v2921_v4 }
 0x64f   :  { %4796 = vmatmul.mubr.msk.bf16.vlgmr.msra.gmra.mrb[84].mxu0 %vm187_vm1, %v5660_v11  ;;  %4825 = vmatprep.subr.bf16.mxu1 %v5109_v1 }
 0x650   :  { %4809 = vmatprep.mubr.msk.bf16.mxu0 %vm5110_vm0, %v5109_v1 }
 0x655   :  { %4808 = vmatpush3.bf16.xpose.msra.mxu0 %v2875_v2 }
 0x656   :  { %4819 = vmatprep.subr.bf16.mxu0 %v5109_v1 }
 0x6fa   :  { %v2129_v5 = vpop.f32.mrb[64].mxu0  ;;  %v5805_v6 = vpop.f32.mrb[68].mxu1 }
 0x6fb   :  { %v2130_v49 = vadd.f32 %v4236_v45, %v2129_v5  ;;  %v4717_v7 = vpop.f32.mrb[65].mxu0  ;;  %v4741_v60 = vpop.f32.mrb[69].mxu1 }
 0x6fc   :  { %v2132_v8 = vpop.f32.mrb[66].mxu0  ;;  %v2331_v3 = vpop.f32.mrb[70].mxu1  ;;  %v2329_v60 = vadd.f32 %v4250_v63, %v5805_v6  ;;  %v4273_v6 = vld [vmem:[%s6122_s17 + $0x2] ss:$0 sm:$0xff] }
 0x6fd   :  { %v2855_v9 = vpack.c.bf16 %v2130_v49, %v2130_v49  ;;  %v2133_v10 = vadd.f32 %v4236_v45, %v2132_v8  ;;  %v4718_v11 = vpop.f32.mrb[67].mxu0  ;;  %v4742_v13 = vpop.f32.mrb[71].mxu1  ;;  %v2332_v5 = vadd.f32 %v4250_v63, %v2331_v3  ;;  %v4264_v3 = vld [vmem:[%s6118_s13 + $0x2] ss:$0 sm:$0xff] }
 0x6ff   :  { %v2856_v14 = vpack.c.bf16 %v2133_v10, %v2133_v10  ;;  %4810 = vmatmul.mubr.msk.bf16.vlgmr.msra.gmra.mrb[88].mxu0 %vm897_vm2, %v2855_v9  ;;  %v2858_v13 = vpack.c.bf16 %v2332_v5, %v2332_v5 }
 0x700   :  { %4821 = vmatprep.mubr.msk.bf16.mxu0 %vm5110_vm0, %v5109_v1 }
 0x701   :  { %4816 = vmatmul.mubr.msk.bf16.vlgmr.msra.gmra.mrb[88].mxu1 %vm897_vm2, %v2856_v14 }
 0x702   :  { %v4733_v16 = vpop.f32.mrb[68].mxu0  ;;  %v4757_v18 = vpop.f32.mrb[72].mxu1  ;;  %4827 = vmatprep.mubr.msk.bf16.mxu1 %vm5110_vm0, %v5109_v1 }
 0x703   :  { %v2261_v19 = vpop.f32.mrb[69].mxu0  ;;  %v5819_v21 = vadd.f32 %v4757_v18, %v4259_v15  ;;  %v2454_v22 = vpop.f32.mrb[73].mxu1  ;;  %v5823_v33 = vadd.f32 %v4733_v16, %v4245_v17  ;;  %v4287_v18 = vld [vmem:[%s6122_s17 + $0x3] ss:$0 sm:$0xff] }
 0x704   :  { %v4734_v23 = vpop.f32.mrb[70].mxu0  ;;  %v5821_v30 = vadd.f32 %v4259_v15, %v2454_v22  ;;  %v4758_v12 = vpop.f32.mrb[74].mxu1  ;;  %v5829_v28 = vadd.f32 %v4245_v17, %v2261_v19 }
 0x705   :  { %v5825_v25 = vadd.f32 %v4734_v23, %v4245_v17  ;;  %v2264_v26 = vpop.f32.mrb[71].mxu0  ;;  %v5827_v27 = vadd.f32 %v4758_v12, %v4259_v15  ;;  %v2457_v20 = vpop.f32.mrb[75].mxu1 }
 0x706   :  { %v5831_v50 = vadd.f32 %v4245_v17, %v2264_v26  ;;  %v5833_v24 = vadd.f32 %v4259_v15, %v2457_v20  ;;  %v2857_v15 = vpack.c.bf16 %v2329_v60, %v2329_v60 }
 0x707   :  { %v3345_v32 = vpack.c.bf16 %v5825_v25, %v5823_v33  ;;  %v3347_v34 = vpack.c.bf16 %v5827_v27, %v5819_v21 }
 0x708   :  { %v3344_v55 = vpack.c.bf16 %v5831_v50, %v5829_v28  ;;  %v3346_v35 = vpack.c.bf16 %v5833_v24, %v5821_v30 }
 0x70a   :  { %v4749_v37 = vpop.f32.mrb[72].mxu0  ;;  %v4773_v39 = vpop.f32.mrb[76].mxu1 }
 0x70b   :  { %v2387_v40 = vpop.f32.mrb[73].mxu0  ;;  %v2589_v41 = vadd.f32 %v4773_v39, %v4268_v36  ;;  %v2580_v42 = vpop.f32.mrb[77].mxu1  ;;  %v2396_v47 = vadd.f32 %v4749_v37, %v4254_v38 }
 0x70c   :  { %v4750_v43 = vpop.f32.mrb[74].mxu0  ;;  %v2581_v44 = vadd.f32 %v4268_v36, %v2580_v42  ;;  %v4774_v46 = vpop.f32.mrb[78].mxu1  ;;  %v2388_v54 = vadd.f32 %v4254_v38, %v2387_v40 }
 0x70d   :  { %v2399_v48 = vadd.f32 %v4750_v43, %v4254_v38  ;;  %v2390_v51 = vpop.f32.mrb[75].mxu0  ;;  %v2592_v52 = vadd.f32 %v4774_v46, %v4268_v36  ;;  %v2583_v53 = vpop.f32.mrb[79].mxu1 }
 0x70e   :  { %v2391_v56 = vadd.f32 %v4254_v38, %v2390_v51  ;;  %v2584_v57 = vadd.f32 %v4268_v36, %v2583_v53  ;;  %v4282_v53 = vld [vmem:[%s6120_s15 + $0x3] ss:$0 sm:$0xff] }
 0x70f   :  { %v2866_v58 = vpack.c.bf16 %v2399_v48, %v2396_v47  ;;  %v2868_v59 = vpack.c.bf16 %v2592_v52, %v2589_v41 }
 0x710   :  { %v2865_v61 = vpack.c.bf16 %v2391_v56, %v2388_v54  ;;  %v2867_v62 = vpack.c.bf16 %v2584_v57, %v2581_v44 }
 0x711   :  { %v3013_v0 = vsel %vm897_vm2, %v2866_v58, 0  ;;  %v3105_v14 = vsel %vm897_vm2, %v2868_v59, 0 }
 0x712   :  { %v2521_v2 = vpop.f32.mrb[76].mxu0  ;;  %v5853_v4 = vpop.f32.mrb[80].mxu1  ;;  %4826 = vmatpush3.bf16.xpose.msra.mxu1 %v3013_v0  ;;  %v2967_v45 = vsel %vm897_vm2, %v2865_v61, 0  ;;  %v3059_v16 = vsel %vm897_vm2, %v2867_v62, 0 }
 0x713   :  { %v4765_v49 = vpop.f32.mrb[77].mxu0  ;;  %v4789_v7 = vpop.f32.mrb[81].mxu1  ;;  %4820 = vmatpush3.bf16.xpose.msra.mxu0 %v2967_v45  ;;  %4837 = vmatprep.subr.bf16.mxu1 %v5109_v1  ;;  %v2522_v23 = vadd.f32 %v4264_v3, %v2521_v2  ;;  %v4278_v2 = vld [vmem:[%s6118_s13 + $0x3] ss:$0 sm:$0xff] }
 0x714   :  { %v2524_v8 = vpop.f32.mrb[78].mxu0  ;;  %v2717_v9 = vpop.f32.mrb[82].mxu1  ;;  %4831 = vmatprep.subr.bf16.mxu0 %v5109_v1  ;;  %v2715_v7 = vadd.f32 %v4278_v2, %v5853_v4 }
 0x715   :  { %v4766_v10 = vpop.f32.mrb[79].mxu0  ;;  %v4790_v11 = vpop.f32.mrb[83].mxu1  ;;  %v2525_v19 = vadd.f32 %v4264_v3, %v2524_v8  ;;  %v2859_v47 = vpack.c.bf16 %v2522_v23, %v2522_v23  ;;  %v2718_v49 = vadd.f32 %v4278_v2, %v2717_v9 }
 0x716   :  { %v2861_v8 = vpack.c.bf16 %v2715_v7, %v2715_v7 }
 0x717   :  { %v2860_v43 = vpack.c.bf16 %v2525_v19, %v2525_v19  ;;  %v2862_v60 = vpack.c.bf16 %v2718_v49, %v2718_v49 }
 0x719   :  { %4828 = vmatmul.mubr.msk.bf16.vlgmr.msra.gmra.mrb[92].mxu1 %vm897_vm2, %v2858_v13 }
 0x71a   :  { %v4781_v17 = vpop.f32.mrb[80].mxu0  ;;  %4822 = vmatmul.mubr.msk.bf16.vlgmr.msra.gmra.mrb[92].mxu0 %vm897_vm2, %v2857_v15  ;;  %4838 = vmatpush3.bf16.xpose.msra.mxu1 %v3105_v14 }
 0x71b   :  { %v2647_v22 = vpop.f32.mrb[81].mxu0  ;;  %4832 = vmatpush3.bf16.xpose.msra.mxu0 %v3059_v16  ;;  %4839 = vmatprep.mubr.msk.bf16.mxu1 %vm5110_vm0, %v5109_v1  ;;  %v5877_v20 = vadd.f32 %v4781_v17, %v4273_v6 }
 0x71c   :  { %v4782_v12 = vpop.f32.mrb[82].mxu0  ;;  %4833 = vmatprep.mubr.msk.bf16.mxu0 %vm5110_vm0, %v5109_v1  ;;  %4849 = vmatprep.subr.bf16.mxu1 %v5109_v1  ;;  %v4805_v26 = vpop.f32.mrb[84].mxu1  ;;  %v5884_v40 = vadd.f32 %v4273_v6, %v2647_v22 }
 0x71d   :  { %v5879_v36 = vadd.f32 %v4782_v12, %v4273_v6  ;;  %v2650_v37 = vpop.f32.mrb[83].mxu0  ;;  %4843 = vmatprep.subr.bf16.mxu0 %v5109_v1  ;;  %v5882_v38 = vadd.f32 %v4805_v26, %v4287_v18  ;;  %v2840_v39 = vpop.f32.mrb[85].mxu1 }
 0x71e   :  { %v5886_v41 = vadd.f32 %v4273_v6, %v2650_v37  ;;  %v4806_v42 = vpop.f32.mrb[86].mxu1  ;;  %v5927_v4 = vadd.f32 %v4287_v18, %v2840_v39 }
 0x71f   :  { %v3349_v44 = vpack.c.bf16 %v5879_v36, %v5877_v20  ;;  %v5890_v46 = vadd.f32 %v4806_v42, %v4287_v18  ;;  %v2843_v9 = vpop.f32.mrb[87].mxu1 }
 0x720   :  { %v3348_v48 = vpack.c.bf16 %v5886_v41, %v5884_v40  ;;  %v5929_v10 = vadd.f32 %v4287_v18, %v2843_v9 }
 0x721   :  { %4840 = vmatmul.mubr.msk.bf16.vlgmr.msra.gmra.mrb[96].mxu1 %vm897_vm2, %v2860_v43  ;;  %v3351_v51 = vpack.c.bf16 %v5890_v46, %v5882_v38 }
 0x722   :  { %v4797_v52 = vpop.f32.mrb[84].mxu0  ;;  %4834 = vmatmul.mubr.msk.bf16.vlgmr.msra.gmra.mrb[96].mxu0 %vm897_vm2, %v2859_v47  ;;  %4851 = vmatprep.mubr.msk.bf16.mxu1 %vm5110_vm0, %v5109_v1  ;;  %v3350_v33 = vpack.c.bf16 %v5929_v10, %v5927_v4  ;;  %v2066_v4 = vld [vmem:[%s6123_s18] sm:$0xf] }
 0x723   :  { %v2773_v54 = vpop.f32.mrb[85].mxu0  ;;  %4845 = vmatprep.mubr.msk.bf16.mxu0 %vm5110_vm0, %v5109_v1  ;;  %v2782_v57 = vadd.f32 %v4797_v52, %v4282_v53  ;;  %v3749_v10 = vsel %vm1389_vm3, %v2066_v4, 0 }
 0x724   :  { %v4798_v56 = vpop.f32.mrb[86].mxu0  ;;  %v2774_v61 = vadd.f32 %v4282_v53, %v2773_v54 }
 0x725   :  { %v2785_v58 = vadd.f32 %v4798_v56, %v4282_v53  ;;  %v2776_v59 = vpop.f32.mrb[87].mxu0 }
 0x726   :  { %v2777_v62 = vadd.f32 %v4282_v53, %v2776_v59 }
 0x727   :  { %v2870_v63 = vpack.c.bf16 %v2785_v58, %v2782_v57 }
 0x728   :  { %v2869_v0 = vpack.c.bf16 %v2777_v62, %v2774_v61 }
 0x729   :  { %v3197_v45 = vsel %vm897_vm2, %v2870_v63, 0 }
 0x72a   :  { %4850 = vmatpush3.bf16.xpose.msra.mxu1 %v3197_v45  ;;  %v3151_v5 = vsel %vm897_vm2, %v2869_v0, 0 }
 0x72b   :  { %4844 = vmatpush3.bf16.xpose.msra.mxu0 %v3151_v5  ;;  %4861 = vmatprep.subr.bf16.mxu1 %v5109_v1 }
 0x72c   :  { %4855 = vmatprep.subr.bf16.mxu0 %v5109_v1 }
 0x731   :  { %4852 = vmatmul.mubr.msk.bf16.vlgmr.msra.gmra.mrb[100].mxu1 %vm897_vm2, %v2862_v60 }
 0x732   :  { %4846 = vmatmul.mubr.msk.bf16.vlgmr.msra.gmra.mrb[100].mxu0 %vm897_vm2, %v2861_v8  ;;  %4862 = vmatpush3.bf16.msra.mxu1 %v3345_v32 }
 0x733   :  { %4856 = vmatpush3.bf16.msra.mxu0 %v3344_v55  ;;  %4857 = vmatprep.mubr.msk.bf16.mxu0 %vm5110_vm0, %v5109_v1 }
 0x734   :  { %4867 = vmatprep.subr.bf16.mxu0 %v5109_v1  ;;  %4863 = vmatprep.mubr.msk.bf16.mxu1 %vm5110_vm0, %v5109_v1 }
 0x735   :  { %4873 = vmatprep.subr.bf16.mxu1 %v5109_v1 }
 0x7d2   :  { %v2911_v25 = vpop.f32.mrb[88].mxu0 }
 0x7d3   :  { %v3239_v28 = vmul.f32 0.35355338, %v2911_v25  ;;  %v4811_v50 = vpop.f32.mrb[89].mxu0 }
 0x7d4   :  { %v2914_v32 = vpop.f32.mrb[90].mxu0  ;;  %v2957_v55 = vpop.f32.mrb[88].mxu1 }
 0x7d5   :  { %v3240_v11 = vmul.f32 0.35355338, %v2957_v55  ;;  %v4812_v13 = vpop.f32.mrb[91].mxu0  ;;  %v4817_v14 = vpop.f32.mrb[89].mxu1  ;;  %v3248_v15 = vsel %vm3247_vm5, %v3239_v28, -inf }
 0x7d6   :  { %v2960_v16 = vpop.f32.mrb[90].mxu1  ;;  %3249 = vmax.xlane.f32.xlu0 %v3248_v15 }
 0x7d7   :  { %v4818_v3 = vpop.f32.mrb[91].mxu1  ;;  %v3251_v17 = vsel %vm3247_vm5, %v3240_v11, -inf }
 0x7d8   :  { %3252 = vmax.xlane.f32.xlu1 %v3251_v17 }
 0x7ec   :  { %v3049_v6 = vpop.f32.mrb[92].mxu1 }
 0x7ed   :  { %v3242_v18 = vmul.f32 0.35355338, %v3049_v6  ;;  %v3003_v19 = vpop.f32.mrb[92].mxu0  ;;  %v4829_v22 = vpop.f32.mrb[93].mxu1 }
 0x7ee   :  { %v3241_v23 = vmul.f32 0.35355338, %v3003_v19  ;;  %v4823_v12 = vpop.f32.mrb[93].mxu0  ;;  %v3052_v26 = vpop.f32.mrb[94].mxu1 }
 0x7ef   :  { %v3006_v37 = vpop.f32.mrb[94].mxu0  ;;  %v4830_v39 = vpop.f32.mrb[95].mxu1  ;;  %v3257_v42 = vsel %vm3247_vm5, %v3242_v18, -inf }
 0x7f0   :  { %3258 = vmax.xlane.f32.xlu1 %v3257_v42  ;;  %v4824_v43 = vpop.f32.mrb[95].mxu0  ;;  %v3254_v47 = vsel %vm3247_vm5, %v3241_v23, -inf }
 0x7f1   :  { %3255 = vmax.xlane.f32.xlu0 %v3254_v47 }
 0x7f4   :  { %v3141_v52 = vpop.f32.mrb[96].mxu1 }
 0x7f5   :  { %v3244_v53 = vmul.f32 0.35355338, %v3141_v52  ;;  %v3095_v54 = vpop.f32.mrb[96].mxu0  ;;  %v4841_v56 = vpop.f32.mrb[97].mxu1 }
 0x7f6   :  { %v3243_v57 = vmul.f32 0.35355338, %v3095_v54  ;;  %v4835_v58 = vpop.f32.mrb[97].mxu0  ;;  %v3144_v59 = vpop.f32.mrb[98].mxu1 }
 0x7f7   :  { %v3098_v61 = vpop.f32.mrb[98].mxu0  ;;  %v4842_v62 = vpop.f32.mrb[99].mxu1  ;;  %v3263_v63 = vsel %vm3247_vm5, %v3244_v53, -inf }
 0x7f8   :  { %3264 = vmax.xlane.f32.xlu1 %v3263_v63  ;;  %v4836_v0 = vpop.f32.mrb[99].mxu0  ;;  %v3260_v2 = vsel %vm3247_vm5, %v3243_v57, -inf }
 0x7f9   :  { %3261 = vmax.xlane.f32.xlu0 %v3260_v2 }
 0x804   :  { %v3233_v45 = vpop.f32.mrb[100].mxu1 }
 0x805   :  { %v3246_v5 = vmul.f32 0.35355338, %v3233_v45  ;;  %v3187_v49 = vpop.f32.mrb[100].mxu0  ;;  %v4853_v7 = vpop.f32.mrb[101].mxu1 }
 0x806   :  { %v3245_v60 = vmul.f32 0.35355338, %v3187_v49  ;;  %v4847_v8 = vpop.f32.mrb[101].mxu0  ;;  %v3236_v9 = vpop.f32.mrb[102].mxu1 }
 0x807   :  { %v3190_v25 = vpop.f32.mrb[102].mxu0  ;;  %v4854_v50 = vpop.f32.mrb[103].mxu1  ;;  %v3269_v32 = vsel %vm3247_vm5, %v3246_v5, -inf }
 0x808   :  { %3270 = vmax.xlane.f32.xlu1 %v3269_v32  ;;  %v4848_v55 = vpop.f32.mrb[103].mxu0  ;;  %v3266_v13 = vsel %vm3247_vm5, %v3245_v60, -inf }
 0x809   :  { %3267 = vmax.xlane.f32.xlu0 %v3266_v13 }
 0x863   :  { %v3250_v14 = vpop.xlane.xlu0 %3249 }
 0x864   :  { %v3272_v15 = vsub.f32 %v3239_v28, %v3250_v14 }
 0x865   :  { %v3253_v16 = vpop.xlane.xlu1 %3252 }
 0x866   :  { %v3280_v3 = vmul.f32 1.442695, %v3272_v15  ;;  %v3273_v17 = vsub.f32 %v3240_v11, %v3253_v16 }
 0x868   :  { %5043 = vpow2.f32 %v3280_v3  ;;  %v3282_v6 = vmul.f32 1.442695, %v3273_v17 }
 0x86a   :  { %5045 = vpow2.f32 %v3282_v6 }
 0x872   :  { %v5044_v19 = vpop.eup %5043 }
 0x873   :  { %v3296_v22 = vsel %vm3247_vm5, %v5044_v19, 0.0 }
 0x874   :  { %v5046_v12 = vpop.eup %5045  ;;  %3297 = vadd.xlane.f32.xlu0 %v3296_v22 }
 0x875   :  { %v3299_v26 = vsel %vm3247_vm5, %v5046_v12, 0.0 }
 0x876   :  { %3300 = vadd.xlane.f32.xlu1 %v3299_v26 }
 0x87d   :  { %v3259_v37 = vpop.xlane.xlu1 %3258 }
 0x87e   :  { %v3275_v39 = vsub.f32 %v3242_v18, %v3259_v37  ;;  %v3256_v42 = vpop.xlane.xlu0 %3255 }
 0x87f   :  { %v3274_v43 = vsub.f32 %v3241_v23, %v3256_v42 }
 0x880   :  { %v3286_v47 = vmul.f32 1.442695, %v3275_v39 }
 0x881   :  { %v3284_v28 = vmul.f32 1.442695, %v3274_v43 }
 0x882   :  { %5047 = vpow2.f32 %v3286_v47 }
 0x883   :  { %5049 = vpow2.f32 %v3284_v28 }
 0x885   :  { %v3265_v11 = vpop.xlane.xlu1 %3264 }
 0x886   :  { %v3277_v52 = vsub.f32 %v3244_v53, %v3265_v11  ;;  %v3262_v54 = vpop.xlane.xlu0 %3261  ;;  %v2069_v11 = vld [vmem:[%s6123_s18 + $0xc] sm:$0xf] }
 0x887   :  { %v3276_v56 = vsub.f32 %v3243_v57, %v3262_v54 }
 0x888   :  { %v3290_v58 = vmul.f32 1.442695, %v3277_v52 }
 0x889   :  { %v3288_v59 = vmul.f32 1.442695, %v3276_v56 }
 0x88a   :  { %5051 = vpow2.f32 %v3290_v58 }
 0x88b   :  { %5053 = vpow2.f32 %v3288_v59 }
 0x88c   :  { %v5048_v61 = vpop.eup %5047 }
 0x88d   :  { %v5050_v62 = vpop.eup %5049  ;;  %v3305_v63 = vsel %vm3247_vm5, %v5048_v61, 0.0 }
 0x88e   :  { %3306 = vadd.xlane.f32.xlu1 %v3305_v63  ;;  %v3302_v18 = vsel %vm3247_vm5, %v5050_v62, 0.0 }
 0x88f   :  { %3303 = vadd.xlane.f32.xlu0 %v3302_v18 }
 0x894   :  { %v5052_v23 = vpop.eup %5051 }
 0x895   :  { %v5054_v0 = vpop.eup %5053  ;;  %v3271_v2 = vpop.xlane.xlu1 %3270  ;;  %v3311_v45 = vsel %vm3247_vm5, %v5052_v23, 0.0 }
 0x896   :  { %v3279_v53 = vsub.f32 %v3246_v5, %v3271_v2  ;;  %3312 = vadd.xlane.f32.xlu1 %v3311_v45  ;;  %v3268_v57 = vpop.xlane.xlu0 %3267  ;;  %v3308_v49 = vsel %vm3247_vm5, %v5054_v0, 0.0 }
 0x897   :  { %v3278_v7 = vsub.f32 %v3245_v60, %v3268_v57  ;;  %3309 = vadd.xlane.f32.xlu0 %v3308_v49 }
 0x898   :  { %v3294_v8 = vmul.f32 1.442695, %v3279_v53 }
 0x899   :  { %v3292_v9 = vmul.f32 1.442695, %v3278_v7 }
 0x89a   :  { %5055 = vpow2.f32 %v3294_v8 }
 0x89b   :  { %5057 = vpow2.f32 %v3292_v9 }
 0x8a4   :  { %v5947_v25 = vpop.eup %5055 }
 0x8a5   :  { %v5949_v50 = vpop.eup %5057  ;;  %v3317_v32 = vsel %vm3247_vm5, %v5947_v25, 0.0 }
 0x8a6   :  { %3318 = vadd.xlane.f32.xlu1 %v3317_v32  ;;  %v3314_v5 = vsel %vm3247_vm5, %v5949_v50, 0.0 }
 0x8a7   :  { %3315 = vadd.xlane.f32.xlu0 %v3314_v5 }
 0x901   :  { %v3298_v55 = vpop.xlane.xlu0 %3297 }
 0x902   :  { %5059 = vrcp.f32 %v3298_v55 }
 0x903   :  { %v3301_v60 = vpop.xlane.xlu1 %3300 }
 0x904   :  { %5061 = vrcp.f32 %v3301_v60 }
 0x90c   :  { %v5060_v13 = vpop.eup %5059 }
 0x90d   :  { %v3328_v14 = vmul.f32 %v5060_v13, %v5044_v19 }
 0x90e   :  { %v5062_v15 = vpop.eup %5061 }
 0x90f   :  { %v3329_v16 = vmul.f32 %v5062_v15, %v5046_v12  ;;  %v3336_v3 = vpack.c.bf16 %v3328_v14, %v3328_v14 }
 0x911   :  { %4858 = vmatmul.mubr.msk.bf16.vlgmr.msra.gmra.mrb[104].mxu0 %vm3247_vm5, %v3336_v3  ;;  %v3337_v17 = vpack.c.bf16 %v3329_v16, %v3329_v16 }
 0x912   :  { %4868 = vmatpush3.bf16.msra.mxu0 %v3346_v35  ;;  %4869 = vmatprep.mubr.msk.bf16.mxu0 %vm5110_vm0, %v5109_v1 }
 0x913   :  { %4864 = vmatmul.mubr.msk.bf16.vlgmr.msra.gmra.mrb[104].mxu1 %vm3247_vm5, %v3337_v17  ;;  %4879 = vmatprep.subr.bf16.mxu0 %v5109_v1 }
 0x914   :  { %4874 = vmatpush3.bf16.msra.mxu1 %v3347_v34  ;;  %4875 = vmatprep.mubr.msk.bf16.mxu1 %vm5110_vm0, %v5109_v1 }
 0x915   :  { %4885 = vmatprep.subr.bf16.mxu1 %v5109_v1 }
 0x91b   :  { %v3307_v6 = vpop.xlane.xlu1 %3306 }
 0x91c   :  { %5063 = vrcp.f32 %v3307_v6  ;;  %v3304_v30 = vpop.xlane.xlu0 %3303 }
 0x91d   :  { %5065 = vrcp.f32 %v3304_v30 }
 0x923   :  { %v3313_v24 = vpop.xlane.xlu1 %3312 }
 0x924   :  { %5067 = vrcp.f32 %v3313_v24  ;;  %v3310_v35 = vpop.xlane.xlu0 %3309 }
 0x925   :  { %5069 = vrcp.f32 %v3310_v35 }
 0x926   :  { %v5064_v19 = vpop.eup %5063 }
 0x927   :  { %v5066_v22 = vpop.eup %5065  ;;  %v3331_v12 = vmul.f32 %v5064_v19, %v5048_v61 }
 0x928   :  { %v3330_v26 = vmul.f32 %v5066_v22, %v5050_v62  ;;  %v3847_v62 = vsel %vm1389_vm3, %v2069_v11, 0 }
 0x929   :  { %v3339_v37 = vpack.c.bf16 %v3331_v12, %v3331_v12 }
 0x92a   :  { %v3338_v21 = vpack.c.bf16 %v3330_v26, %v3330_v26 }
 0x92b   :  { %4876 = vmatmul.mubr.msk.bf16.vlgmr.msra.gmra.mrb[108].mxu1 %vm3247_vm5, %v3339_v37 }
 0x92c   :  { %4886 = vmatpush3.bf16.msra.mxu1 %v3349_v44  ;;  %4870 = vmatmul.mubr.msk.bf16.vlgmr.msra.gmra.mrb[108].mxu0 %vm3247_vm5, %v3338_v21 }
 0x92d   :  { %4880 = vmatpush3.bf16.msra.mxu0 %v3348_v48  ;;  %4887 = vmatprep.mubr.msk.bf16.mxu1 %vm5110_vm0, %v5109_v1 }
 0x92e   :  { %v5068_v27 = vpop.eup %5067  ;;  %4897 = vmatprep.subr.bf16.mxu1 %v5109_v1  ;;  %4881 = vmatprep.mubr.msk.bf16.mxu0 %vm5110_vm0, %v5109_v1 }
 0x92f   :  { %v5070_v34 = vpop.eup %5069  ;;  %v3333_v39 = vmul.f32 %v5068_v27, %v5052_v23  ;;  %4891 = vmatprep.subr.bf16.mxu0 %v5109_v1  ;;  %v2068_v23 = vld [vmem:[%s6123_s18 + $0x8] sm:$0xf] }
 0x930   :  { %v3332_v20 = vmul.f32 %v5070_v34, %v5054_v0  ;;  %v3797_v7 = vsel %vm1389_vm3, %v2068_v23, 0 }
 0x931   :  { %v3341_v36 = vpack.c.bf16 %v3333_v39, %v3333_v39 }
 0x932   :  { %v3340_v44 = vpack.c.bf16 %v3332_v20, %v3332_v20 }
 0x933   :  { %4888 = vmatmul.mubr.msk.bf16.vlgmr.msra.gmra.mrb[112].mxu1 %vm3247_vm5, %v3341_v36  ;;  %v3319_v40 = vpop.xlane.xlu1 %3318 }
 0x934   :  { %4898 = vmatpush3.bf16.msra.mxu1 %v3351_v51  ;;  %5071 = vrcp.f32 %v3319_v40  ;;  %v3316_v41 = vpop.xlane.xlu0 %3315  ;;  %4882 = vmatmul.mubr.msk.bf16.vlgmr.msra.gmra.mrb[112].mxu0 %vm3247_vm5, %v3340_v44 }
 0x935   :  { %5073 = vrcp.f32 %v3316_v41  ;;  %4892 = vmatpush3.bf16.msra.mxu0 %v3350_v33  ;;  %4899 = vmatprep.mubr.msk.bf16.mxu1 %vm5110_vm0, %v5109_v1  ;;  %v2067_v33 = vld [vmem:[%s6123_s18 + $0x4] sm:$0xf]  ;;  %s5085_s18 = scalar_lea.vmem %s4155_s6, 256 }
 0x936   :  { %4893 = vmatprep.mubr.msk.bf16.mxu0 %vm5110_vm0, %v5109_v1  ;;  %4909 = vmatprep.subr.bf16.mxu1 %v5109_v1  ;;  %v3702_v47 = vsel %vm1389_vm3, %v2067_v33, 0  ;;  %p5086_p0 = scmp.ne.s32.totalorder %s4155_s6, %s5085_s18  ;;  %p5091_p2 = scmp.lt.s32.totalorder %s5085_s18, %s5085_s18 }
 0x937   :  { %4903 = vmatprep.subr.bf16.mxu0 %v5109_v1 }
 0x938   :  { %p5092_p3 = por %p5091_p2, %p5090_p1 }
 0x93a   :  { %p5093_p4 = pnand %p5092_p3, %p5086_p0 }
 0x93e   :  { %v5072_v38 = vpop.eup %5071 }
 0x93f   :  { %v5074_v46 = vpop.eup %5073  ;;  %v3335_v48 = vmul.f32 %v5072_v38, %v5947_v25 }
 0x940   :  { %v3334_v51 = vmul.f32 %v5074_v46, %v5949_v50 }
 0x941   :  { %v3343_v42 = vpack.c.bf16 %v3335_v48, %v3335_v48 }
 0x942   :  { %v3342_v43 = vpack.c.bf16 %v3334_v51, %v3334_v51 }
 0x943   :  { %4900 = vmatmul.mubr.msk.bf16.vlgmr.msra.gmra.mrb[116].mxu1 %vm3247_vm5, %v3343_v42 }
 0x944   :  { %4894 = vmatmul.mubr.msk.bf16.vlgmr.msra.gmra.mrb[116].mxu0 %vm3247_vm5, %v3342_v43  ;;  %4911 = vmatprep.mubr.msk.bf16.mxu1 %vm5110_vm0, %v5109_v1  ;;  %v4312_v43 = vld [vmem:[%s6124_s19] ss:$0 sm:$0xff] }
 0x945   :  { %4905 = vmatprep.mubr.msk.bf16.mxu0 %vm5110_vm0, %v5109_v1  ;;  %4910 = vmatpush3.bf16.msra.mxu1 %v3749_v10 }
 0x946   :  { %4921 = vmatprep.subr.bf16.mxu1 %v5109_v1  ;;  %4904 = vmatpush3.bf16.msra.mxu0 %v3702_v47 }
 0x947   :  { %4915 = vmatprep.subr.bf16.mxu0 %v5109_v1 }
 0x9e4   :  { %v3389_v28 = vpop.f32.mrb[104].mxu0 }
 0x9e5   :  { %v4859_v52 = vpop.f32.mrb[105].mxu0 }
 0x9e6   :  { %v3392_v54 = vpop.f32.mrb[106].mxu0  ;;  %v3432_v56 = vpop.f32.mrb[104].mxu1 }
 0x9e7   :  { %v3696_v58 = vpack.c.bf16 %v3432_v56, %v3389_v28  ;;  %v4860_v59 = vpop.f32.mrb[107].mxu0  ;;  %v4865_v61 = vpop.f32.mrb[105].mxu1 }
 0x9e8   :  { %v3435_v63 = vpop.f32.mrb[106].mxu1 }
 0x9e9   :  { %v4866_v18 = vpop.f32.mrb[107].mxu1  ;;  %4912 = vmatmul.mubr.msk.bf16.vlgmr.msra.gmra.mrb[120].mxu1 %vm897_vm2, %v3696_v58 }
 0x9ea   :  { %4922 = vmatpush3.bf16.msra.mxu1 %v3847_v62  ;;  %4923 = vmatprep.mubr.msk.bf16.mxu1 %vm5110_vm0, %v5109_v1 }
 0x9eb   :  { %4935 = vmatprep.subr.bf16.mxu1 %v5109_v1 }
 0x9fe   :  { %v3518_v0 = vpop.f32.mrb[108].mxu1 }
 0x9ff   :  { %v3475_v2 = vpop.f32.mrb[108].mxu0  ;;  %v4877_v45 = vpop.f32.mrb[109].mxu1 }
 0xa00   :  { %v3697_v53 = vpack.c.bf16 %v3518_v0, %v3475_v2  ;;  %v4871_v57 = vpop.f32.mrb[109].mxu0  ;;  %v3521_v49 = vpop.f32.mrb[110].mxu1 }
 0xa01   :  { %v3478_v8 = vpop.f32.mrb[110].mxu0  ;;  %v4878_v9 = vpop.f32.mrb[111].mxu1  ;;  %v5002_v49 = vld [vmem:[%s6127_s22 + $0x8] sm:$0xff]  }
 0xa02   :  { %v4872_v25 = vpop.f32.mrb[111].mxu0  ;;  %4906 = vmatmul.mubr.msk.bf16.vlgmr.msra.gmra.mrb[120].mxu0 %vm897_vm2, %v3697_v53  ;;  %v5004_v8 = vld [vmem:[%s6129_s24 + $0x8] sm:$0xff]  }
 0xa03   :  { %4916 = vmatpush3.bf16.msra.mxu0 %v3797_v7  ;;  %4917 = vmatprep.mubr.msk.bf16.mxu0 %vm5110_vm0, %v5109_v1  ;;  %v5003_v7 = vld [vmem:[%s6129_s24] sm:$0xff]  }
 0xa04   :  { %4927 = vmatprep.subr.bf16.mxu0 %v5109_v1 }
 0xa06   :  { %v3604_v50 = vpop.f32.mrb[112].mxu1 }
 0xa07   :  { %v3561_v32 = vpop.f32.mrb[112].mxu0  ;;  %v4889_v5 = vpop.f32.mrb[113].mxu1 }
 0xa08   :  { %v3792_v55 = vpack.c.bf16 %v3604_v50, %v3561_v32  ;;  %v4883_v60 = vpop.f32.mrb[113].mxu0  ;;  %v3607_v13 = vpop.f32.mrb[114].mxu1 }
 0xa09   :  { %v3564_v14 = vpop.f32.mrb[114].mxu0  ;;  %v4890_v15 = vpop.f32.mrb[115].mxu1  ;;  %v4313_v13 = vld [vmem:[%s6125_s20] ss:$0 sm:$0xff] }
 0xa0a   :  { %v4884_v16 = vpop.f32.mrb[115].mxu0  ;;  %4918 = vmatmul.mubr.msk.bf16.vlgmr.msra.gmra.mrb[124].mxu0 %vm897_vm2, %v3792_v55 }
 0xa0b   :  { %4931 = vmatprep.mubr.msk.bf16.mxu0 %vm5110_vm0, %v5109_v1 }
 0xa16   :  { %v3690_v3 = vpop.f32.mrb[116].mxu1 }
 0xa17   :  { %v3647_v17 = vpop.f32.mrb[116].mxu0  ;;  %v4901_v6 = vpop.f32.mrb[117].mxu1 }
 0xa18   :  { %v3842_v30 = vpack.c.bf16 %v3690_v3, %v3647_v17  ;;  %v4895_v24 = vpop.f32.mrb[117].mxu0  ;;  %v3693_v35 = vpop.f32.mrb[118].mxu1  ;;  %v4314_v17 = vld [vmem:[%s6126_s21] ss:$0 sm:$0xff] }
 0xa19   :  { %v3650_v19 = vpop.f32.mrb[118].mxu0  ;;  %v4902_v22 = vpop.f32.mrb[119].mxu1 }
 0xa1a   :  { %v4896_v12 = vpop.f32.mrb[119].mxu0  ;;  %4924 = vmatmul.mubr.msk.bf16.vlgmr.msra.gmra.mrb[124].mxu1 %vm897_vm2, %v3842_v30  ;;  %v5005_v19 = vld [vmem:[%s6129_s24 + $0x10] sm:$0xff]   ;;  %v5006_v22 = vld [vmem:[%s6129_s24 + $0x18] sm:$0xff]  }
 0xa1b   :  { %4943 = vmatprep.mubr.msk.bf16.mxu1 %vm5110_vm0, %v5109_v1  ;;  %4936 = vmatpush3.bf16.msra.mxu1 %v5003_v7  ;;  %v4315_v12 = vld [vmem:[%s6128_s23] ss:$0 sm:$0xff] }
 0xa1c   :  { %4937 = vmatprep.subr.bf16.mxu1 %v5109_v1 }
 0xa1f   :  { %4938 = vmatpush3.bf16.msra.mxu1 %v5004_v8 }
 0xa20   :  { %4939 = vmatprep.subr.bf16.mxu1 %v5109_v1 }
 0xa23   :  { %4940 = vmatpush3.bf16.msra.mxu1 %v5005_v19 }
 0xa24   :  { %4941 = vmatprep.subr.bf16.mxu1 %v5109_v1 }
 0xa27   :  { %4942 = vmatpush3.bf16.msra.mxu1 %v5006_v22 }
 0xabc   :  { %v3785_v26 = vpop.f32.mrb[120].mxu1 }
 0xabd   :  { %v4913_v37 = vpop.f32.mrb[121].mxu1 }
 0xabe   :  { %v3788_v21 = vpop.f32.mrb[122].mxu1 }
 0xabf   :  { %v4914_v27 = vpop.f32.mrb[123].mxu1 }
 0xad5   :  { %v3738_v34 = vpop.f32.mrb[120].mxu0 }
 0xad6   :  { %v3786_v39 = vadd.f32 %v3785_v26, %v3738_v34  ;;  %v4907_v20 = vpop.f32.mrb[121].mxu0 }
 0xad7   :  { %v3741_v36 = vpop.f32.mrb[122].mxu0 }
 0xad8   :  { %v3789_v44 = vadd.f32 %v3788_v21, %v3741_v36  ;;  %v4908_v40 = vpop.f32.mrb[123].mxu0 }
 0xadd   :  { %v3833_v41 = vpop.f32.mrb[124].mxu0 }
 0xade   :  { %v3840_v38 = vadd.f32 %v3833_v41, %v3786_v39  ;;  %v4919_v46 = vpop.f32.mrb[125].mxu0 }
 0xadf   :  { %v3836_v48 = vpop.f32.mrb[126].mxu0 }
 0xae0   :  { %v3841_v51 = vadd.f32 %v3836_v48, %v3789_v44  ;;  %v4920_v42 = vpop.f32.mrb[127].mxu0 }
 0xaed   :  { %v3883_v4 = vpop.f32.mrb[124].mxu1 }
 0xaee   :  { %v3890_v10 = vadd.f32 %v3883_v4, %v3840_v38  ;;  %v4925_v33 = vpop.f32.mrb[125].mxu1 }
 0xaef   :  { %v3886_v47 = vpop.f32.mrb[126].mxu1 }
 0xaf0   :  { %v3898_v28 = vadd.f32 %v4312_v43, %v3890_v10  ;;  %v3891_v11 = vadd.f32 %v3886_v47, %v3841_v51  ;;  %v4926_v52 = vpop.f32.mrb[127].mxu1 }
 0xaf2   :  { %v3899_v54 = vadd.f32 %v4312_v43, %v3891_v11  ;;  %v3900_v56 = vadd.f32 %v3898_v28, %v5695_v29 }
 0xaf4   :  { %v3904_v58 = vsel %vm187_vm1, %v3900_v56, 0.0  ;;  %v3901_v59 = vadd.f32 %v3899_v54, %v5697_v31  ;;  %v5001_v31 = vld [vmem:[%s6127_s22] sm:$0xff]  }
 0xaf5   :  { %3905 = vadd.xlane.f32.xlu0 %v3904_v58  ;;  %4928 = vmatpush3.bf16.msra.mxu0 %v5001_v31  ;;  %v4326_v31 = vld [vmem:[%s6132_s27] ss:$0 sm:$0xff] }
 0xaf6   :  { %v3907_v61 = vsel %vm187_vm1, %v3901_v59, 0.0  ;;  %4929 = vmatprep.subr.bf16.mxu0 %v5109_v1  ;;  %v4319_v1 = vld [vmem:[%s6130_s25] ss:$0 sm:$0xff] }
 0xaf7   :  { %3908 = vadd.xlane.f32.xlu1 %v3907_v61 }
 0xaf9   :  { %4930 = vmatpush3.bf16.msra.mxu0 %v5002_v49 }
 0xb82   :  { %v3906_v62 = vpop.xlane.xlu0 %3905 }
 0xb83   :  { %v3910_v63 = vmul.f32 0.03125, %v3906_v62 }
 0xb84   :  { %v3909_v18 = vpop.xlane.xlu1 %3908 }
 0xb85   :  { %v3912_v23 = vsub.f32 %v3900_v56, %v3910_v63  ;;  %v3911_v0 = vmul.f32 0.03125, %v3909_v18 }
 0xb87   :  { %v3913_v2 = vsub.f32 %v3901_v59, %v3911_v0  ;;  %v3914_v45 = vmul.f32 %v3912_v23, %v3912_v23 }
 0xb89   :  { %v3916_v53 = vsel %vm187_vm1, %v3914_v45, 0.0  ;;  %v3915_v57 = vmul.f32 %v3913_v2, %v3913_v2 }
 0xb8a   :  { %3917 = vadd.xlane.f32.xlu0 %v3916_v53  ;;  %v4325_v53 = vld [vmem:[%s6131_s26] ss:$0 sm:$0xff] }
 0xb8b   :  { %v3919_v29 = vsel %vm187_vm1, %v3915_v57, 0.0 }
 0xb8c   :  { %3920 = vadd.xlane.f32.xlu1 %v3919_v29 }
 0xc17   :  { %v3918_v9 = vpop.xlane.xlu0 %3917 }
 0xc18   :  { %v3922_v25 = vmul.f32 0.03125, %v3918_v9 }
 0xc19   :  { %v3921_v50 = vpop.xlane.xlu1 %3920 }
 0xc1a   :  { %v3924_v32 = vadd.f32 1e-05, %v3922_v25  ;;  %v3923_v5 = vmul.f32 0.03125, %v3921_v50 }
 0xc1c   :  { %5075 = vrsqrt.f32 %v3924_v32  ;;  %v3925_v55 = vadd.f32 1e-05, %v3923_v5 }
 0xc1e   :  { %5077 = vrsqrt.f32 %v3925_v55 }
 0xc26   :  { %v5076_v60 = vpop.eup %5075 }
 0xc27   :  { %v3928_v14 = vmul.f32 %v5076_v60, %v3912_v23 }
 0xc28   :  { %v5078_v15 = vpop.eup %5077 }
 0xc29   :  { %v3936_v16 = vmul.f32 %v4313_v13, %v3928_v14  ;;  %v3929_v3 = vmul.f32 %v5078_v15, %v3913_v2 }
 0xc2b   :  { %v3937_v6 = vmul.f32 %v4313_v13, %v3929_v3  ;;  %v3944_v30 = vadd.f32 %v4314_v17, %v3936_v16 }
 0xc2d   :  { %v3945_v24 = vadd.f32 %v4314_v17, %v3937_v6 }
 0xc2f   :  { %v3946_v35 = vpack.c.bf16 %v3945_v24, %v3944_v30 }
 0xc31   :  { %4932 = vmatmul.mubr.msk.bf16.vlgmr.msra.gmra.mrb[128].mxu0 %vm187_vm1, %v3946_v35 }
 0xd04   :  { %v4007_v26 = vpop.f32.mrb[128].mxu0 }
 0xd05   :  { %v4008_v37 = vadd.f32 %v4315_v12, %v4007_v26  ;;  %v4933_v21 = vpop.f32.mrb[129].mxu0 }
 0xd06   :  { %v4010_v27 = vpop.f32.mrb[130].mxu0 }
 0xd07   :  { %v4011_v34 = vadd.f32 %v4315_v12, %v4010_v27  ;;  %v4934_v39 = vpop.f32.mrb[131].mxu0  ;;  %v4014_v20 = vmax.f32 %v4008_v37, 0.0 }
 0xd09   :  { %v4015_v36 = vmax.f32 %v4011_v34, 0.0 }
 0xd0b   :  { %v4016_v44 = vpack.c.bf16 %v4015_v36, %v4014_v20 }
 0xd0d   :  { %4944 = vmatmul.mubr.msk.bf16.vlgmr.msra.gmra.mrb[128].mxu1 %vm4056_vm6, %v4016_v44 }
 0xde0   :  { %v4094_v40 = vpop.f32.mrb[128].mxu1 }
 0xde1   :  { %v4095_v41 = vadd.f32 %v4319_v1, %v4094_v40  ;;  %v4945_v38 = vpop.f32.mrb[129].mxu1 }
 0xde2   :  { %v4097_v46 = vpop.f32.mrb[130].mxu1 }
 0xde3   :  { %v4098_v48 = vadd.f32 %v4319_v1, %v4097_v46  ;;  %v4946_v51 = vpop.f32.mrb[131].mxu1  ;;  %v4101_v42 = vadd.f32 %v4095_v41, %v3944_v30 }
 0xde5   :  { %v4105_v43 = vsel %vm187_vm1, %v4101_v42, 0.0  ;;  %v4102_v4 = vadd.f32 %v4098_v48, %v3945_v24 }
 0xde6   :  { %4106 = vadd.xlane.f32.xlu0 %v4105_v43 }
 0xde7   :  { %v4108_v10 = vsel %vm187_vm1, %v4102_v4, 0.0 }
 0xde8   :  { %4109 = vadd.xlane.f32.xlu1 %v4108_v10 }
 0xe73   :  { %v4107_v33 = vpop.xlane.xlu0 %4106 }
 0xe74   :  { %v4111_v47 = vmul.f32 0.03125, %v4107_v33 }
 0xe75   :  { %v4110_v28 = vpop.xlane.xlu1 %4109 }
 0xe76   :  { %v4113_v11 = vsub.f32 %v4101_v42, %v4111_v47  ;;  %v4112_v52 = vmul.f32 0.03125, %v4110_v28 }
 0xe78   :  { %v4114_v54 = vsub.f32 %v4102_v4, %v4112_v52  ;;  %v4115_v56 = vmul.f32 %v4113_v11, %v4113_v11 }
 0xe7a   :  { %v4117_v58 = vsel %vm187_vm1, %v4115_v56, 0.0  ;;  %v4116_v59 = vmul.f32 %v4114_v54, %v4114_v54 }
 0xe7b   :  { %4118 = vadd.xlane.f32.xlu0 %v4117_v58 }
 0xe7c   :  { %v4120_v61 = vsel %vm187_vm1, %v4116_v59, 0.0 }
 0xe7d   :  { %4121 = vadd.xlane.f32.xlu1 %v4120_v61 }
 0xf08   :  { %v4119_v62 = vpop.xlane.xlu0 %4118 }
 0xf09   :  { %v4123_v63 = vmul.f32 0.03125, %v4119_v62 }
 0xf0a   :  { %v4122_v18 = vpop.xlane.xlu1 %4121 }
 0xf0b   :  { %v4125_v23 = vadd.f32 1e-05, %v4123_v63  ;;  %v4124_v0 = vmul.f32 0.03125, %v4122_v18 }
 0xf0d   :  { %5079 = vrsqrt.f32 %v4125_v23  ;;  %v4126_v2 = vadd.f32 1e-05, %v4124_v0 }
 0xf0f   :  { %5081 = vrsqrt.f32 %v4126_v2 }
 0xf17   :  { %v5080_v45 = vpop.eup %5079 }
 0xf18   :  { %v4129_v57 = vmul.f32 %v5080_v45, %v4113_v11 }
 0xf19   :  { %v5082_v29 = vpop.eup %5081 }
 0xf1a   :  { %v4130_v49 = vmul.f32 %v5082_v29, %v4114_v54  ;;  %v4137_v7 = vmul.f32 %v4325_v53, %v4129_v57 }
 0xf1c   :  { %v4138_v8 = vmul.f32 %v4325_v53, %v4130_v49  ;;  %v4145_v9 = vadd.f32 %v4326_v31, %v4137_v7 }
 0xf1e   :  { %v4146_v25 = vadd.f32 %v4326_v31, %v4138_v8  ;;  %4147 = vst.msk [vmem:[#allocation2] sm:$0xff] %vm187_vm1, %v4145_v9 }
 0xf20   :  { %4148 = vst.msk [vmem:[#allocation2 + $0x8] sm:$0xff] %vm187_vm1, %v4146_v25 }
 0xf21   :  { %5096 = shalt.err (!%p5093_p4)
}
 0xf22   :  { %s5097_s30 = scalar_lea.hbm %s6133_s28, 256 }
 0xf23   :  { %p5098_p5 = scmp.ne.s32.totalorder %s6133_s28, %s5097_s30  ;;  %p5101_p6 = scmp.lt.u32.totalorder %s5097_s30, %s6133_s28 }
 0xf25   :  { %p5103_p7 = pnand %p5101_p6, %p5098_p5 }
 0xf27   :  { %5106 = shalt.err (!%p5103_p7)
}
 0xf28   :  { %s5113_s4 = smov 128   ;;  %s5114_s14 = smov 8  }
 0xf29   :  { %4160 = dma.vmem_to_hbm [thread:$0]  %s4155_s6, 256, %s6133_s28, [#allocation3], %s5113_s4, %s5113_s4, %s5114_s14  }
 0xf2a   :  { %5107 = dma.done.wait [#allocation3], 256  }
 0xf2b   :  { %5108 = vsyncadd [#allocation3], 4294967040 }
 0xf2c   :  { %4164 = vsyncpa [#allocation3], 1 }

</bundles_post_ra>
